<compile_context>
chip_gen: v7x
topology: tpu7x:2x2x1
jax: 0.10.0
libtpu: 0.0.40
codegen_flags: <defaults>
</compile_context>

<pallas_src>
import jax
import jax.numpy as jnp
from jax.experimental import pallas as pl
from jax.experimental.pallas import tpu as pltpu

EPS = 1e-5
LANE = 128      # vreg lane width
SUBLANE = 8     # vreg sublane height
WOFF = 8        # sublane-aligned W offset of the conv2-scratch interior


def _round_up(x, m):
    return (x + m - 1) // m * m


def _make_kernel(proj, stride, N, Ho, Wo, Cin, Cout_p, Wpad):
    M = N * Ho * Wo
    inv_M = 1.0 / float(M)
    s = stride

    def _bn(y, g, b):
        # Training-mode BatchNorm (biased batch variance) folded to one FMA.
        # Stats + scale/shift stay in f32.  Zero-padded channels have mean=0,
        # var=0 and g=b=0, so they stay exactly 0.
        s1 = jnp.sum(y, axis=0, keepdims=True)
        s2 = jnp.sum(y * y, axis=0, keepdims=True)
        mean = s1 * inv_M
        var = s2 * inv_M - mean * mean
        scale = g * jax.lax.rsqrt(var + EPS)
        shift = b - mean * scale
        return y * scale + shift

    def kernel(*refs):
        if proj:
            (xs_ref, w1_ref, g1_ref, b1_ref, w2_ref, g2_ref, b2_ref,
             wr_ref, gr_ref, br_ref, out_ref, y1pad_ref) = refs
        else:
            (xs_ref, w1_ref, g1_ref, b1_ref, w2_ref, g2_ref, b2_ref,
             out_ref, y1pad_ref) = refs

        def conv1_tap(dy, dx):
            # Tap (dy,dx) of the 3x3 conv over the padded, space-to-depth'd
            # input: a contiguous window (no wrapper-side 9x im2col blow-up).
            lead = (dy % s) * s + (dx % s)          # space-to-depth plane
            a, b = dy // s, dx // s                 # offset inside the plane
            return xs_ref[lead, :, a:a + Ho, b:b + Wo, :]   # (N,Ho,Wo,Cin) bf16

        # ---- conv1: 9 taps concatenated on the lane axis -> ONE K=9*Cin bf16
        #      matmul with f32 accumulation.  patch1 has no later uses, so it
        #      is dead before patch2 is materialized (perf item 2). ----
        patch1 = jnp.concatenate(
            [conv1_tap(dy, dx) for dy in range(3) for dx in range(3)],
            axis=-1).reshape(M, 9 * Cin)
        y1 = jnp.dot(patch1, w1_ref[...], preferred_element_type=jnp.float32)
        y1 = jnp.maximum(_bn(y1, g1_ref[...], b1_ref[...]), 0.0)

        # ---- stash y1 (bf16, single cast) in the conv2 scratch.  Interior at
        #      W offset WOFF=8 -> sublane-aligned, full-width stores; only the
        #      halo read by the off-centre taps is zeroed. ----
        y1pad_ref[:, 0:1, :, :] = jnp.zeros((N, 1, Wpad, Cout_p), jnp.bfloat16)
        y1pad_ref[:, Ho + 1:Ho + 2, :, :] = jnp.zeros((N, 1, Wpad, Cout_p),
                                                      jnp.bfloat16)
        y1pad_ref[:, 1:Ho + 1, 0:WOFF, :] = jnp.zeros((N, Ho, WOFF, Cout_p),
                                                      jnp.bfloat16)
        y1pad_ref[:, 1:Ho + 1, WOFF + Wo:Wpad, :] = jnp.zeros(
            (N, Ho, Wpad - WOFF - Wo, Cout_p), jnp.bfloat16)
        y1pad_ref[:, 1:Ho + 1, WOFF:WOFF + Wo, :] = (
            y1.astype(jnp.bfloat16).reshape(N, Ho, Wo, Cout_p))

        # ---- conv2: same fused trick, ONE K=9*Cout_p bf16 matmul; the lane
        #      concat is tile-aligned because Cout_p % 128 == 0. ----
        patch2 = jnp.concatenate(
            [y1pad_ref[:, dy:dy + Ho, WOFF - 1 + dx:WOFF - 1 + dx + Wo, :]
             for dy in range(3) for dx in range(3)],
            axis=-1).reshape(M, 9 * Cout_p)
        y2 = jnp.dot(patch2, w2_ref[...], preferred_element_type=jnp.float32)
        y2 = _bn(y2, g2_ref[...], b2_ref[...])

        # ---- residual: its input is exactly the conv1 centre tap (identity at
        #      stride 1, the stride-sampled x for the 1x1 projection); read it
        #      straight from xs_ref so patch1 need not stay live. ----
        centre = conv1_tap(1, 1).reshape(M, Cin)
        if proj:
            r = jnp.dot(centre, wr_ref[...], preferred_element_type=jnp.float32)
            res = _bn(r, gr_ref[...], br_ref[...])
        else:
            res = centre.astype(jnp.float32)
            if Cout_p > Cin:
                res = jnp.concatenate(
                    [res, jnp.zeros((M, Cout_p - Cin), jnp.float32)], axis=-1)

        # Lane-dense (Cout_p = k*128) bf16 store (perf items 1 & 11).
        out_ref[...] = jnp.maximum(y2 + res, 0.0).astype(jnp.bfloat16)

    return kernel


def resnet_block_forward(x_nchw, params, stride):
    """Fused ResNet basic block. x_nchw: [N, Cin, H, W] f32 -> [N, Cout, Ho, Wo] f32."""
    N, Cin, H, W = x_nchw.shape
    Cout = params["w1"].shape[-1]
    s = int(stride)
    Ho = (H + 2 - 3) // s + 1
    Wo = (W + 2 - 3) // s + 1
    M = N * Ho * Wo
    proj = (s != 1) or (Cin != Cout)

    # Output-channel axis zero-padded to the 128-lane width (perf items 1 & 10).
    Cout_p = _round_up(Cout, LANE)
    # conv2-scratch W extent: interior at [WOFF, WOFF+Wo), one extra read column
    # on the right for the dx=2 tap, rounded to a sublane multiple.
    Wpad = _round_up(WOFF + Wo + 1, SUBLANE)

    # NHWC + bf16 operands; pad by 1 and space-to-depth by the stride so every
    # conv1 tap (and the residual's strided input) is a contiguous window in
    # the kernel.  Copy-only ops, fused by XLA into one pass feeding the call.
    x = jnp.transpose(x_nchw, (0, 2, 3, 1)).astype(jnp.bfloat16)
    Us = Ho + (2 // s)          # rows so every tap window [dy//s, dy//s+Ho) fits
    Vs = Wo + (2 // s)
    pad_b = s * Us - H - 1      # bottom zero-pad (top pad is 1)
    pad_r = s * Vs - W - 1
    assert pad_b >= 0 and pad_r >= 0
    xpad = jnp.pad(x, ((0, 0), (1, pad_b), (1, pad_r), (0, 0)))
    xs = xpad.reshape(N, Us, s, Vs, s, Cin)
    xs = jnp.transpose(xs, (2, 4, 0, 1, 3, 5)).reshape(s * s, N, Us, Vs, Cin)

    def pad_cols(w2d):                       # [K, Cout] -> [K, Cout_p] bf16
        K = w2d.shape[0]
        return (jnp.zeros((K, Cout_p), jnp.float32)
                .at[:, :Cout].set(w2d).astype(jnp.bfloat16))

    def pad_row(v):                          # [Cout] -> [1, Cout_p] f32 (zero pad)
        return jnp.zeros((1, Cout_p), jnp.float32).at[0, :Cout].set(v)

    w1 = pad_cols(params["w1"].reshape(9 * Cin, Cout))
    # conv2 consumes the Cout_p-wide (zero-padded) y1 -> pad its rows per tap.
    w2 = (jnp.zeros((9, Cout_p, Cout_p), jnp.float32)
          .at[:, :Cout, :Cout].set(params["w2"].reshape(9, Cout, Cout))
          .reshape(9 * Cout_p, Cout_p).astype(jnp.bfloat16))

    args = [xs, w1, pad_row(params["g1"]), pad_row(params["b1"]),
            w2, pad_row(params["g2"]), pad_row(params["b2"])]
    if proj:
        args += [pad_cols(params["wr"].reshape(Cin, Cout)),
                 pad_row(params["gr"]), pad_row(params["br"])]

    # VMEM budget from the actual buffers + large in-kernel temporaries
    # (perf item 8); clamped so it is legal on v7x's 64 MiB physical VMEM.
    buf_bytes = (
        s * s * N * Us * Vs * Cin * 2            # xs (bf16)
        + 9 * Cin * Cout_p * 2                   # w1
        + 9 * Cout_p * Cout_p * 2                # w2
        + (Cin * Cout_p * 2 if proj else 0)      # wr
        + 6 * SUBLANE * LANE * 4                 # BN gamma/beta rows
        + M * Cout_p * 2                         # output (bf16)
        + N * (Ho + 2) * Wpad * Cout_p * 2       # y1 scratch (bf16)
        + M * 9 * Cin * 2 + M * 9 * Cout_p * 2   # patch1 / patch2 temps
        + 4 * M * Cout_p * 4)                    # y1/y2/res f32 temps
    vmem_limit = min(max(int(buf_bytes * 1.5), 16 * 1024 * 1024),
                     48 * 1024 * 1024)

    kernel = _make_kernel(proj, s, N, Ho, Wo, Cin, Cout_p, Wpad)
    vmem = pl.BlockSpec(memory_space=pltpu.MemorySpace.VMEM)

    out = pl.pallas_call(
        kernel,
        out_shape=jax.ShapeDtypeStruct((M, Cout_p), jnp.bfloat16),
        in_specs=[vmem] * len(args),
        out_specs=vmem,
        scratch_shapes=[pltpu.VMEM((N, Ho + 2, Wpad, Cout_p), jnp.bfloat16)],
        compiler_params=pltpu.CompilerParams(vmem_limit_bytes=vmem_limit),
    )(*args)

    out = out[:, :Cout].reshape(N, Ho, Wo, Cout)
    # Upcast + NCHW transpose only for drop-in parity with the PyTorch module;
    # a bf16/NHWC consumer (the next block) should take `out` directly.
    return jnp.transpose(out, (0, 3, 1, 2)).astype(jnp.float32)


# ---------------- plain-JAX reference (for correctness check) ----------------
def reference_forward(x_nchw, params, stride):
    x32 = jnp.transpose(x_nchw, (0, 2, 3, 1)).astype(jnp.float32)
    x = x32.astype(jnp.bfloat16)          # mirror the kernel's operand precision
    Cin = x.shape[-1]
    Cout = params["w1"].shape[-1]
    proj = (stride != 1) or (Cin != Cout)

    def conv(a, w, s, pad):
        return jax.lax.conv_general_dilated(
            a, w.astype(jnp.bfloat16), (s, s), pad,
            dimension_numbers=("NHWC", "HWIO", "NHWC"),
            preferred_element_type=jnp.float32)

    def bn(y, g, b):
        m = jnp.mean(y, axis=(0, 1, 2), keepdims=True)
        v = jnp.mean((y - m) ** 2, axis=(0, 1, 2), keepdims=True)
        return (y - m) * jax.lax.rsqrt(v + EPS) * g + b

    y = jax.nn.relu(bn(conv(x, params["w1"], stride, ((1, 1), (1, 1))),
                       params["g1"], params["b1"]))
    y = bn(conv(y.astype(jnp.bfloat16), params["w2"], 1, ((1, 1), (1, 1))),
           params["g2"], params["b2"])
    if proj:
        r = bn(conv(x, params["wr"], stride, ((0, 0), (0, 0))),
               params["gr"], params["br"])
    else:
        r = x.astype(jnp.float32)
    out = jax.nn.relu(y + r)
    return jnp.transpose(out, (0, 3, 1, 2))


def init_params(key, Cin, Cout, stride):
    ks = jax.random.split(key, 9)
    p = {
        "w1": 0.1 * jax.random.normal(ks[0], (3, 3, Cin, Cout), jnp.float32),
        "g1": 1.0 + 0.1 * jax.random.normal(ks[1], (Cout,), jnp.float32),
        "b1": 0.1 * jax.random.normal(ks[2], (Cout,), jnp.float32),
        "w2": 0.1 * jax.random.normal(ks[3], (3, 3, Cout, Cout), jnp.float32),
        "g2": 1.0 + 0.1 * jax.random.normal(ks[4], (Cout,), jnp.float32),
        "b2": 0.1 * jax.random.normal(ks[5], (Cout,), jnp.float32),
    }
    if stride != 1 or Cin != Cout:
        p["wr"] = 0.1 * jax.random.normal(ks[6], (1, 1, Cin, Cout), jnp.float32)
        p["gr"] = 1.0 + 0.1 * jax.random.normal(ks[7], (Cout,), jnp.float32)
        p["br"] = 0.1 * jax.random.normal(ks[8], (Cout,), jnp.float32)
    return p


if __name__ == "__main__":
    key = jax.random.PRNGKey(0)
    kx1, kx2, kp1, kp2 = jax.random.split(key, 4)

    # Case 1: projection residual (4 -> 8 channels, stride 2), NCHW [2, 4, 16, 16]
    x1 = jax.random.normal(kx1, (2, 4, 16, 16), jnp.float32)
    p1 = init_params(kp1, 4, 8, 2)
    out1 = resnet_block_forward(x1, p1, stride=2)
    jax.block_until_ready(out1)
    ref1 = reference_forward(x1, p1, 2)
    assert out1.shape == (2, 8, 8, 8)
    assert jnp.allclose(out1, ref1, atol=2e-2, rtol=2e-2), \
        float(jnp.max(jnp.abs(out1 - ref1)))

    # Case 2: identity residual (8 -> 8 channels, stride 1), NCHW [2, 8, 16, 16]
    x2 = jax.random.normal(kx2, (2, 8, 16, 16), jnp.float32)
    p2 = init_params(kp2, 8, 8, 1)
    out2 = resnet_block_forward(x2, p2, stride=1)
    jax.block_until_ready(out2)
    ref2 = reference_forward(x2, p2, 1)
    assert out2.shape == (2, 8, 16, 16)
    assert jnp.allclose(out2, ref2, atol=2e-2, rtol=2e-2), \
        float(jnp.max(jnp.abs(out2 - ref2)))

    print("KERNEL_OK")
</pallas_src>

<mosaic_0001>
module attributes {stable_mosaic.version = 11 : i64} {
  func.func @kernel(%arg0: memref<4x2x9x9x4xbf16, #tpu.memory_space<vmem>>, %arg1: memref<36x128xbf16, #tpu.memory_space<vmem>>, %arg2: memref<1x128xf32, #tpu.memory_space<vmem>>, %arg3: memref<1x128xf32, #tpu.memory_space<vmem>>, %arg4: memref<1152x128xbf16, #tpu.memory_space<vmem>>, %arg5: memref<1x128xf32, #tpu.memory_space<vmem>>, %arg6: memref<1x128xf32, #tpu.memory_space<vmem>>, %arg7: memref<4x128xbf16, #tpu.memory_space<vmem>>, %arg8: memref<1x128xf32, #tpu.memory_space<vmem>>, %arg9: memref<1x128xf32, #tpu.memory_space<vmem>>, %arg10: memref<128x128xbf16, #tpu.memory_space<vmem>>, %arg11: memref<2x10x24x128xbf16, #tpu.memory_space<vmem>>) attributes {dimension_semantics = [], scalar_prefetch = 0 : i64, scratch_operands = 1 : i64, tpu.core_type = #tpu.core_type<tc>} {
    %c0 = arith.constant 0 : index
    %c0_0 = arith.constant 0 : index
    %c0_1 = arith.constant 0 : index
    %c0_2 = arith.constant 0 : index
    %c0_3 = arith.constant 0 : index
    %0 = vector.load %arg0[%c0, %c0_0, %c0_1, %c0_2, %c0_3] : memref<4x2x9x9x4xbf16, #tpu.memory_space<vmem>>, vector<1x2x8x8x4xbf16>
    %1 = vector.shape_cast %0 : vector<1x2x8x8x4xbf16> to vector<2x8x8x4xbf16>
    %c1 = arith.constant 1 : index
    %c0_4 = arith.constant 0 : index
    %c0_5 = arith.constant 0 : index
    %c0_6 = arith.constant 0 : index
    %c0_7 = arith.constant 0 : index
    %2 = vector.load %arg0[%c1, %c0_4, %c0_5, %c0_6, %c0_7] : memref<4x2x9x9x4xbf16, #tpu.memory_space<vmem>>, vector<1x2x8x8x4xbf16>
    %3 = vector.shape_cast %2 : vector<1x2x8x8x4xbf16> to vector<2x8x8x4xbf16>
    %c0_8 = arith.constant 0 : index
    %c0_9 = arith.constant 0 : index
    %c0_10 = arith.constant 0 : index
    %c1_11 = arith.constant 1 : index
    %c0_12 = arith.constant 0 : index
    %4 = vector.load %arg0[%c0_8, %c0_9, %c0_10, %c1_11, %c0_12] : memref<4x2x9x9x4xbf16, #tpu.memory_space<vmem>>, vector<1x2x8x8x4xbf16>
    %5 = vector.shape_cast %4 : vector<1x2x8x8x4xbf16> to vector<2x8x8x4xbf16>
    %c2 = arith.constant 2 : index
    %c0_13 = arith.constant 0 : index
    %c0_14 = arith.constant 0 : index
    %c0_15 = arith.constant 0 : index
    %c0_16 = arith.constant 0 : index
    %6 = vector.load %arg0[%c2, %c0_13, %c0_14, %c0_15, %c0_16] : memref<4x2x9x9x4xbf16, #tpu.memory_space<vmem>>, vector<1x2x8x8x4xbf16>
    %7 = vector.shape_cast %6 : vector<1x2x8x8x4xbf16> to vector<2x8x8x4xbf16>
    %c3 = arith.constant 3 : index
    %c0_17 = arith.constant 0 : index
    %c0_18 = arith.constant 0 : index
    %c0_19 = arith.constant 0 : index
    %c0_20 = arith.constant 0 : index
    %8 = vector.load %arg0[%c3, %c0_17, %c0_18, %c0_19, %c0_20] : memref<4x2x9x9x4xbf16, #tpu.memory_space<vmem>>, vector<1x2x8x8x4xbf16>
    %9 = vector.shape_cast %8 : vector<1x2x8x8x4xbf16> to vector<2x8x8x4xbf16>
    %c2_21 = arith.constant 2 : index
    %c0_22 = arith.constant 0 : index
    %c0_23 = arith.constant 0 : index
    %c1_24 = arith.constant 1 : index
    %c0_25 = arith.constant 0 : index
    %10 = vector.load %arg0[%c2_21, %c0_22, %c0_23, %c1_24, %c0_25] : memref<4x2x9x9x4xbf16, #tpu.memory_space<vmem>>, vector<1x2x8x8x4xbf16>
    %11 = vector.shape_cast %10 : vector<1x2x8x8x4xbf16> to vector<2x8x8x4xbf16>
    %c0_26 = arith.constant 0 : index
    %c0_27 = arith.constant 0 : index
    %c1_28 = arith.constant 1 : index
    %c0_29 = arith.constant 0 : index
    %c0_30 = arith.constant 0 : index
    %12 = vector.load %arg0[%c0_26, %c0_27, %c1_28, %c0_29, %c0_30] : memref<4x2x9x9x4xbf16, #tpu.memory_space<vmem>>, vector<1x2x8x8x4xbf16>
    %13 = vector.shape_cast %12 : vector<1x2x8x8x4xbf16> to vector<2x8x8x4xbf16>
    %c1_31 = arith.constant 1 : index
    %c0_32 = arith.constant 0 : index
    %c1_33 = arith.constant 1 : index
    %c0_34 = arith.constant 0 : index
    %c0_35 = arith.constant 0 : index
    %14 = vector.load %arg0[%c1_31, %c0_32, %c1_33, %c0_34, %c0_35] : memref<4x2x9x9x4xbf16, #tpu.memory_space<vmem>>, vector<1x2x8x8x4xbf16>
    %15 = vector.shape_cast %14 : vector<1x2x8x8x4xbf16> to vector<2x8x8x4xbf16>
    %c0_36 = arith.constant 0 : index
    %c0_37 = arith.constant 0 : index
    %c1_38 = arith.constant 1 : index
    %c1_39 = arith.constant 1 : index
    %c0_40 = arith.constant 0 : index
    %16 = vector.load %arg0[%c0_36, %c0_37, %c1_38, %c1_39, %c0_40] : memref<4x2x9x9x4xbf16, #tpu.memory_space<vmem>>, vector<1x2x8x8x4xbf16>
    %17 = vector.shape_cast %16 : vector<1x2x8x8x4xbf16> to vector<2x8x8x4xbf16>
    %18 = tpu.concatenate %1, %3, %5, %7, %9, %11, %13, %15, %17 in 3 : vector<2x8x8x4xbf16>, vector<2x8x8x4xbf16>, vector<2x8x8x4xbf16>, vector<2x8x8x4xbf16>, vector<2x8x8x4xbf16>, vector<2x8x8x4xbf16>, vector<2x8x8x4xbf16>, vector<2x8x8x4xbf16>, vector<2x8x8x4xbf16> -> vector<2x8x8x36xbf16>
    %19 = vector.shape_cast %18 : vector<2x8x8x36xbf16> to vector<128x36xbf16>
    %c0_41 = arith.constant 0 : index
    %c0_42 = arith.constant 0 : index
    %20 = vector.load %arg1[%c0_41, %c0_42] : memref<36x128xbf16, #tpu.memory_space<vmem>>, vector<36x128xbf16>
    %cst = arith.constant dense<0.000000e+00> : vector<128x128xf32>
    %21 = tpu.matmul %19, %20, %cst {dimension_numbers = #tpu.dot_dimension_numbers<[1], [0], [0], [1], [0, 0, 1, 1], [], []>} : vector<128x36xbf16>, vector<36x128xbf16>, vector<128x128xf32> -> vector<128x128xf32>
    %c0_43 = arith.constant 0 : index
    %c0_44 = arith.constant 0 : index
    %22 = vector.load %arg2[%c0_43, %c0_44] : memref<1x128xf32, #tpu.memory_space<vmem>>, vector<1x128xf32>
    %c0_45 = arith.constant 0 : index
    %c0_46 = arith.constant 0 : index
    %23 = vector.load %arg3[%c0_45, %c0_46] : memref<1x128xf32, #tpu.memory_space<vmem>>, vector<1x128xf32>
    %cst_47 = arith.constant dense<0.000000e+00> : vector<128xf32>
    %24 = vector.multi_reduction <add>, %21, %cst_47 [0] : vector<128x128xf32> to vector<128xf32>
    %25 = vector.shape_cast %24 : vector<128xf32> to vector<1x128xf32>
    %26 = arith.mulf %21, %21 : vector<128x128xf32>
    %cst_48 = arith.constant dense<0.000000e+00> : vector<128xf32>
    %27 = vector.multi_reduction <add>, %26, %cst_48 [0] : vector<128x128xf32> to vector<128xf32>
    %28 = vector.shape_cast %27 : vector<128xf32> to vector<1x128xf32>
    %cst_49 = arith.constant 7.812500e-03 : f32
    %29 = vector.broadcast %cst_49 : f32 to vector<1x128xf32>
    %30 = arith.mulf %25, %29 : vector<1x128xf32>
    %cst_50 = arith.constant 7.812500e-03 : f32
    %31 = vector.broadcast %cst_50 : f32 to vector<1x128xf32>
    %32 = arith.mulf %28, %31 : vector<1x128xf32>
    %33 = arith.mulf %30, %30 : vector<1x128xf32>
    %34 = arith.subf %32, %33 : vector<1x128xf32>
    %cst_51 = arith.constant 9.99999974E-6 : f32
    %35 = vector.broadcast %cst_51 : f32 to vector<1x128xf32>
    %36 = arith.addf %34, %35 : vector<1x128xf32>
    %37 = math.rsqrt %36 : vector<1x128xf32>
    %38 = arith.mulf %22, %37 : vector<1x128xf32>
    %39 = arith.mulf %30, %38 : vector<1x128xf32>
    %40 = arith.subf %23, %39 : vector<1x128xf32>
    %41 = vector.broadcast %38 : vector<1x128xf32> to vector<128x128xf32>
    %42 = arith.mulf %21, %41 : vector<128x128xf32>
    %43 = vector.broadcast %40 : vector<1x128xf32> to vector<128x128xf32>
    %44 = arith.addf %42, %43 : vector<128x128xf32>
    %cst_52 = arith.constant 0.000000e+00 : f32
    %45 = vector.broadcast %cst_52 : f32 to vector<128x128xf32>
    %46 = arith.maximumf %44, %45 : vector<128x128xf32>
    %cst_53 = arith.constant 0.000000e+00 : bf16
    %47 = vector.broadcast %cst_53 : bf16 to vector<2x1x24x128xbf16>
    %c0_54 = arith.constant 0 : index
    %c0_55 = arith.constant 0 : index
    %c0_56 = arith.constant 0 : index
    %c0_57 = arith.constant 0 : index
    %48 = vector.load %arg11[%c0_54, %c0_55, %c0_56, %c0_57] : memref<2x10x24x128xbf16, #tpu.memory_space<vmem>>, vector<2x1x24x128xbf16>
    tpu.vector_store %arg11[%c0_54, %c0_55, %c0_56, %c0_57], %47 {strides = array<i32>} : memref<2x10x24x128xbf16, #tpu.memory_space<vmem>>, vector<2x1x24x128xbf16>,
    %cst_58 = arith.constant 0.000000e+00 : bf16
    %49 = vector.broadcast %cst_58 : bf16 to vector<2x1x24x128xbf16>
    %c0_59 = arith.constant 0 : index
    %c9 = arith.constant 9 : index
    %c0_60 = arith.constant 0 : index
    %c0_61 = arith.constant 0 : index
    %50 = vector.load %arg11[%c0_59, %c9, %c0_60, %c0_61] : memref<2x10x24x128xbf16, #tpu.memory_space<vmem>>, vector<2x1x24x128xbf16>
    tpu.vector_store %arg11[%c0_59, %c9, %c0_60, %c0_61], %49 {strides = array<i32>} : memref<2x10x24x128xbf16, #tpu.memory_space<vmem>>, vector<2x1x24x128xbf16>,
    %cst_62 = arith.constant 0.000000e+00 : bf16
    %51 = vector.broadcast %cst_62 : bf16 to vector<2x8x8x128xbf16>
    %c0_63 = arith.constant 0 : index
    %c1_64 = arith.constant 1 : index
    %c0_65 = arith.constant 0 : index
    %c0_66 = arith.constant 0 : index
    %52 = vector.load %arg11[%c0_63, %c1_64, %c0_65, %c0_66] : memref<2x10x24x128xbf16, #tpu.memory_space<vmem>>, vector<2x8x8x128xbf16>
    tpu.vector_store %arg11[%c0_63, %c1_64, %c0_65, %c0_66], %51 {strides = array<i32>} : memref<2x10x24x128xbf16, #tpu.memory_space<vmem>>, vector<2x8x8x128xbf16>,
    %cst_67 = arith.constant 0.000000e+00 : bf16
    %53 = vector.broadcast %cst_67 : bf16 to vector<2x8x8x128xbf16>
    %c0_68 = arith.constant 0 : index
    %c1_69 = arith.constant 1 : index
    %c16 = arith.constant 16 : index
    %c0_70 = arith.constant 0 : index
    %54 = vector.load %arg11[%c0_68, %c1_69, %c16, %c0_70] : memref<2x10x24x128xbf16, #tpu.memory_space<vmem>>, vector<2x8x8x128xbf16>
    tpu.vector_store %arg11[%c0_68, %c1_69, %c16, %c0_70], %53 {strides = array<i32>} : memref<2x10x24x128xbf16, #tpu.memory_space<vmem>>, vector<2x8x8x128xbf16>,
    %55 = arith.truncf %46 : vector<128x128xf32> to vector<128x128xbf16>
    %56 = vector.shape_cast %55 : vector<128x128xbf16> to vector<2x8x8x128xbf16>
    %c0_71 = arith.constant 0 : index
    %c1_72 = arith.constant 1 : index
    %c8 = arith.constant 8 : index
    %c0_73 = arith.constant 0 : index
    %57 = vector.load %arg11[%c0_71, %c1_72, %c8, %c0_73] : memref<2x10x24x128xbf16, #tpu.memory_space<vmem>>, vector<2x8x8x128xbf16>
    tpu.vector_store %arg11[%c0_71, %c1_72, %c8, %c0_73], %56 {strides = array<i32>} : memref<2x10x24x128xbf16, #tpu.memory_space<vmem>>, vector<2x8x8x128xbf16>,
    %c0_74 = arith.constant 0 : index
    %c0_75 = arith.constant 0 : index
    %c7 = arith.constant 7 : index
    %c0_76 = arith.constant 0 : index
    %58 = vector.load %arg11[%c0_74, %c0_75, %c7, %c0_76] : memref<2x10x24x128xbf16, #tpu.memory_space<vmem>>, vector<2x8x8x128xbf16>
    %c0_77 = arith.constant 0 : index
    %c0_78 = arith.constant 0 : index
    %c8_79 = arith.constant 8 : index
    %c0_80 = arith.constant 0 : index
    %59 = vector.load %arg11[%c0_77, %c0_78, %c8_79, %c0_80] : memref<2x10x24x128xbf16, #tpu.memory_space<vmem>>, vector<2x8x8x128xbf16>
    %c0_81 = arith.constant 0 : index
    %c0_82 = arith.constant 0 : index
    %c9_83 = arith.constant 9 : index
    %c0_84 = arith.constant 0 : index
    %60 = vector.load %arg11[%c0_81, %c0_82, %c9_83, %c0_84] : memref<2x10x24x128xbf16, #tpu.memory_space<vmem>>, vector<2x8x8x128xbf16>
    %c0_85 = arith.constant 0 : index
    %c1_86 = arith.constant 1 : index
    %c7_87 = arith.constant 7 : index
    %c0_88 = arith.constant 0 : index
    %61 = vector.load %arg11[%c0_85, %c1_86, %c7_87, %c0_88] : memref<2x10x24x128xbf16, #tpu.memory_space<vmem>>, vector<2x8x8x128xbf16>
    %c0_89 = arith.constant 0 : index
    %c1_90 = arith.constant 1 : index
    %c8_91 = arith.constant 8 : index
    %c0_92 = arith.constant 0 : index
    %62 = vector.load %arg11[%c0_89, %c1_90, %c8_91, %c0_92] : memref<2x10x24x128xbf16, #tpu.memory_space<vmem>>, vector<2x8x8x128xbf16>
    %c0_93 = arith.constant 0 : index
    %c1_94 = arith.constant 1 : index
    %c9_95 = arith.constant 9 : index
    %c0_96 = arith.constant 0 : index
    %63 = vector.load %arg11[%c0_93, %c1_94, %c9_95, %c0_96] : memref<2x10x24x128xbf16, #tpu.memory_space<vmem>>, vector<2x8x8x128xbf16>
    %c0_97 = arith.constant 0 : index
    %c2_98 = arith.constant 2 : index
    %c7_99 = arith.constant 7 : index
    %c0_100 = arith.constant 0 : index
    %64 = vector.load %arg11[%c0_97, %c2_98, %c7_99, %c0_100] : memref<2x10x24x128xbf16, #tpu.memory_space<vmem>>, vector<2x8x8x128xbf16>
    %c0_101 = arith.constant 0 : index
    %c2_102 = arith.constant 2 : index
    %c8_103 = arith.constant 8 : index
    %c0_104 = arith.constant 0 : index
    %65 = vector.load %arg11[%c0_101, %c2_102, %c8_103, %c0_104] : memref<2x10x24x128xbf16, #tpu.memory_space<vmem>>, vector<2x8x8x128xbf16>
    %c0_105 = arith.constant 0 : index
    %c2_106 = arith.constant 2 : index
    %c9_107 = arith.constant 9 : index
    %c0_108 = arith.constant 0 : index
    %66 = vector.load %arg11[%c0_105, %c2_106, %c9_107, %c0_108] : memref<2x10x24x128xbf16, #tpu.memory_space<vmem>>, vector<2x8x8x128xbf16>
    %67 = tpu.concatenate %58, %59, %60, %61, %62, %63, %64, %65, %66 in 3 : vector<2x8x8x128xbf16>, vector<2x8x8x128xbf16>, vector<2x8x8x128xbf16>, vector<2x8x8x128xbf16>, vector<2x8x8x128xbf16>, vector<2x8x8x128xbf16>, vector<2x8x8x128xbf16>, vector<2x8x8x128xbf16>, vector<2x8x8x128xbf16> -> vector<2x8x8x1152xbf16>
    %68 = vector.shape_cast %67 : vector<2x8x8x1152xbf16> to vector<128x1152xbf16>
    %c0_109 = arith.constant 0 : index
    %c0_110 = arith.constant 0 : index
    %69 = vector.load %arg4[%c0_109, %c0_110] : memref<1152x128xbf16, #tpu.memory_space<vmem>>, vector<1152x128xbf16>
    %cst_111 = arith.constant dense<0.000000e+00> : vector<128x128xf32>
    %70 = tpu.matmul %68, %69, %cst_111 {dimension_numbers = #tpu.dot_dimension_numbers<[1], [0], [0], [1], [0, 0, 1, 1], [], []>} : vector<128x1152xbf16>, vector<1152x128xbf16>, vector<128x128xf32> -> vector<128x128xf32>
    %c0_112 = arith.constant 0 : index
    %c0_113 = arith.constant 0 : index
    %71 = vector.load %arg5[%c0_112, %c0_113] : memref<1x128xf32, #tpu.memory_space<vmem>>, vector<1x128xf32>
    %c0_114 = arith.constant 0 : index
    %c0_115 = arith.constant 0 : index
    %72 = vector.load %arg6[%c0_114, %c0_115] : memref<1x128xf32, #tpu.memory_space<vmem>>, vector<1x128xf32>
    %cst_116 = arith.constant dense<0.000000e+00> : vector<128xf32>
    %73 = vector.multi_reduction <add>, %70, %cst_116 [0] : vector<128x128xf32> to vector<128xf32>
    %74 = vector.shape_cast %73 : vector<128xf32> to vector<1x128xf32>
    %75 = arith.mulf %70, %70 : vector<128x128xf32>
    %cst_117 = arith.constant dense<0.000000e+00> : vector<128xf32>
    %76 = vector.multi_reduction <add>, %75, %cst_117 [0] : vector<128x128xf32> to vector<128xf32>
    %77 = vector.shape_cast %76 : vector<128xf32> to vector<1x128xf32>
    %cst_118 = arith.constant 7.812500e-03 : f32
    %78 = vector.broadcast %cst_118 : f32 to vector<1x128xf32>
    %79 = arith.mulf %74, %78 : vector<1x128xf32>
    %cst_119 = arith.constant 7.812500e-03 : f32
    %80 = vector.broadcast %cst_119 : f32 to vector<1x128xf32>
    %81 = arith.mulf %77, %80 : vector<1x128xf32>
    %82 = arith.mulf %79, %79 : vector<1x128xf32>
    %83 = arith.subf %81, %82 : vector<1x128xf32>
    %cst_120 = arith.constant 9.99999974E-6 : f32
    %84 = vector.broadcast %cst_120 : f32 to vector<1x128xf32>
    %85 = arith.addf %83, %84 : vector<1x128xf32>
    %86 = math.rsqrt %85 : vector<1x128xf32>
    %87 = arith.mulf %71, %86 : vector<1x128xf32>
    %88 = arith.mulf %79, %87 : vector<1x128xf32>
    %89 = arith.subf %72, %88 : vector<1x128xf32>
    %90 = vector.broadcast %87 : vector<1x128xf32> to vector<128x128xf32>
    %91 = arith.mulf %70, %90 : vector<128x128xf32>
    %92 = vector.broadcast %89 : vector<1x128xf32> to vector<128x128xf32>
    %93 = arith.addf %91, %92 : vector<128x128xf32>
    %c3_121 = arith.constant 3 : index
    %c0_122 = arith.constant 0 : index
    %c0_123 = arith.constant 0 : index
    %c0_124 = arith.constant 0 : index
    %c0_125 = arith.constant 0 : index
    %94 = vector.load %arg0[%c3_121, %c0_122, %c0_123, %c0_124, %c0_125] : memref<4x2x9x9x4xbf16, #tpu.memory_space<vmem>>, vector<1x2x8x8x4xbf16>
    %95 = vector.shape_cast %94 : vector<1x2x8x8x4xbf16> to vector<2x8x8x4xbf16>
    %96 = vector.shape_cast %95 : vector<2x8x8x4xbf16> to vector<128x4xbf16>
    %c0_126 = arith.constant 0 : index
    %c0_127 = arith.constant 0 : index
    %97 = vector.load %arg7[%c0_126, %c0_127] : memref<4x128xbf16, #tpu.memory_space<vmem>>, vector<4x128xbf16>
    %cst_128 = arith.constant dense<0.000000e+00> : vector<128x128xf32>
    %98 = tpu.matmul %96, %97, %cst_128 {dimension_numbers = #tpu.dot_dimension_numbers<[1], [0], [0], [1], [0, 0, 1, 1], [], []>} : vector<128x4xbf16>, vector<4x128xbf16>, vector<128x128xf32> -> vector<128x128xf32>
    %c0_129 = arith.constant 0 : index
    %c0_130 = arith.constant 0 : index
    %99 = vector.load %arg8[%c0_129, %c0_130] : memref<1x128xf32, #tpu.memory_space<vmem>>, vector<1x128xf32>
    %c0_131 = arith.constant 0 : index
    %c0_132 = arith.constant 0 : index
    %100 = vector.load %arg9[%c0_131, %c0_132] : memref<1x128xf32, #tpu.memory_space<vmem>>, vector<1x128xf32>
    %cst_133 = arith.constant dense<0.000000e+00> : vector<128xf32>
    %101 = vector.multi_reduction <add>, %98, %cst_133 [0] : vector<128x128xf32> to vector<128xf32>
    %102 = vector.shape_cast %101 : vector<128xf32> to vector<1x128xf32>
    %103 = arith.mulf %98, %98 : vector<128x128xf32>
    %cst_134 = arith.constant dense<0.000000e+00> : vector<128xf32>
    %104 = vector.multi_reduction <add>, %103, %cst_134 [0] : vector<128x128xf32> to vector<128xf32>
    %105 = vector.shape_cast %104 : vector<128xf32> to vector<1x128xf32>
    %cst_135 = arith.constant 7.812500e-03 : f32
    %106 = vector.broadcast %cst_135 : f32 to vector<1x128xf32>
    %107 = arith.mulf %102, %106 : vector<1x128xf32>
    %cst_136 = arith.constant 7.812500e-03 : f32
    %108 = vector.broadcast %cst_136 : f32 to vector<1x128xf32>
    %109 = arith.mulf %105, %108 : vector<1x128xf32>
    %110 = arith.mulf %107, %107 : vector<1x128xf32>
    %111 = arith.subf %109, %110 : vector<1x128xf32>
    %cst_137 = arith.constant 9.99999974E-6 : f32
    %112 = vector.broadcast %cst_137 : f32 to vector<1x128xf32>
    %113 = arith.addf %111, %112 : vector<1x128xf32>
    %114 = math.rsqrt %113 : vector<1x128xf32>
    %115 = arith.mulf %99, %114 : vector<1x128xf32>
    %116 = arith.mulf %107, %115 : vector<1x128xf32>
    %117 = arith.subf %100, %116 : vector<1x128xf32>
    %118 = vector.broadcast %115 : vector<1x128xf32> to vector<128x128xf32>
    %119 = arith.mulf %98, %118 : vector<128x128xf32>
    %120 = vector.broadcast %117 : vector<1x128xf32> to vector<128x128xf32>
    %121 = arith.addf %119, %120 : vector<128x128xf32>
    %122 = arith.addf %93, %121 : vector<128x128xf32>
    %cst_138 = arith.constant 0.000000e+00 : f32
    %123 = vector.broadcast %cst_138 : f32 to vector<128x128xf32>
    %124 = arith.maximumf %122, %123 : vector<128x128xf32>
    %125 = arith.truncf %124 : vector<128x128xf32> to vector<128x128xbf16>
    %c0_139 = arith.constant 0 : index
    %c0_140 = arith.constant 0 : index
    %126 = vector.load %arg10[%c0_139, %c0_140] : memref<128x128xbf16, #tpu.memory_space<vmem>>, vector<128x128xbf16>
    tpu.vector_store %arg10[%c0_139, %c0_140], %125 {strides = array<i32>} : memref<128x128xbf16, #tpu.memory_space<vmem>>, vector<128x128xbf16>,
    return
  }
}

</mosaic_0001>

<bundles_post_ra>
// kernel: tpu_custom_call.1
= control target key start
LH: loop header
LB: loop body
LE: loop exit
PB: predicated region body
PF: predicated region fallthrough
CT: control target
= control target key end

     0   :  { %s7799_s17 = smov 4   ;;  %s7800_s19 = smov 8   ;;  %vm1559_vm0 = vcmask 1041408   ;;  %s10119_s0 = inlined_call_operand.vmem [shape: bf16[4,2,9,9,4], index: 0, kind: input, shape index: {}]   ;;  %s10120_s1 = inlined_call_operand.vmem [shape: bf16[36,128], index: 1, kind: input, shape index: {}]   ;;  %s10121_s2 = inlined_call_operand.vmem [shape: f32[1,128], index: 2, kind: input, shape index: {}]   ;;  %s10122_s3 = inlined_call_operand.vmem [shape: f32[1,128], index: 3, kind: input, shape index: {}]   ;;  %s10123_s4 = inlined_call_operand.vmem [shape: bf16[1152,128], index: 4, kind: input, shape index: {}]   ;;  %s10124_s5 = inlined_call_operand.vmem [shape: f32[1,128], index: 5, kind: input, shape index: {}]   ;;  %s10125_s6 = inlined_call_operand.vmem [shape: f32[1,128], index: 6, kind: input, shape index: {}]   ;;  %s10126_s7 = inlined_call_operand.vmem [shape: bf16[4,128], index: 7, kind: input, shape index: {}]   ;;  %s10127_s8 = inlined_call_operand.vmem [shape: f32[1,128], index: 8, kind: input, shape index: {}]   ;;  %s10128_s9 = inlined_call_operand.vmem [shape: f32[1,128], index: 9, kind: input, shape index: {}]   ;;  %s10129_s10 = inlined_call_operand.hbm [shape: bf16[128,128], index: 10, kind: output, shape index: {}]  }
   0x1   :  { %v7430_v0 = vld [vmem:[%s10119_s0 + $0xa0] ss:$0 sps:$4 sm:$0xff]   ;;  %v7431_v1 = vld [vmem:[%s10119_s0 + $0x90] ss:$0 sps:$4 sm:$0xff]   ;;  %v7432_v2 = vld [vmem:[%s10119_s0 + $0xa8] ss:$0 sps:$4 sm:$0xff]  }
   0x2   :  { %238 = vrot.lane.b32.xlu1 %v7430_v0, %s7799_s17  ;;  %v7433_v3 = vld [vmem:[%s10119_s0 + $0x98] ss:$0 sps:$4 sm:$0xff]   ;;  %234 = vrot.lane.b32.xlu0 %v7431_v1, %s7799_s17  ;;  %v38_v4 = vld [vmem:[%s10119_s0 + $0x8] sm:$0xf]  ;;  %s7801_s12 = smov 12   ;;  %s7802_s23 = smov 16  }
   0x3   :  { %v71_v5 = vld [vmem:[%s10119_s0 + $0xc] sm:$0x1]  ;;  %v37_v6 = vld [vmem:[%s10119_s0] sm:$0xf]  ;;  %v70_v8 = vld [vmem:[%s10119_s0 + $0x4] sm:$0x1] }
   0x4   :  { %v6284_v7 = vcombine.low %v38_v4, %v71_v5  ;;  %v40_v9 = vld [vmem:[%s10119_s0 + $0x18] sm:$0xf]  ;;  %v73_v10 = vld [vmem:[%s10119_s0 + $0x1c] sm:$0x1]  ;;  %v6283_v11 = vcombine.low %v37_v6, %v70_v8  ;;  %v39_v13 = vld [vmem:[%s10119_s0 + $0x10] sm:$0xf] }
   0x5   :  { %v6286_v12 = vcombine.low %v40_v9, %v73_v10  ;;  %v72_v14 = vld [vmem:[%s10119_s0 + $0x14] sm:$0x1]  ;;  %v6172_v32 = vld [vmem:[%s10119_s0 + $0x128] sm:$0xf]  ;;  %v6171_v33 = vld [vmem:[%s10119_s0 + $0x120] sm:$0xf] }
   0x6   :  { %240 = vrot.lane.b32.xlu1 %v7432_v2, %s7799_s17  ;;  %v354_v15 = vshrl.u32 %v6284_v7, 16  ;;  %v356_v16 = vshll.u32 %v6284_v7, 16  ;;  %v6285_v17 = vcombine.low %v39_v13, %v72_v14  ;;  %236 = vrot.lane.b32.xlu0 %v7433_v3, %s7799_s17  ;;  %v347_v18 = vshrl.u32 %v6283_v11, 16  ;;  %v6204_v35 = vld [vmem:[%s10119_s0 + $0x12c] sm:$0x1]  ;;  %s7803_s28 = smov 20  }
   0x7   :  { %v349_v19 = vshll.u32 %v6283_v11, 16  ;;  %v370_v20 = vshll.u32 %v6286_v12, 16  ;;  %v368_v22 = vshrl.u32 %v6286_v12, 16  ;;  %v6300_v34 = vcombine.low %v6172_v32, %v6172_v32  ;;  %v6174_v37 = vld [vmem:[%s10119_s0 + $0x138] sm:$0xf]  ;;  %s7804_s25 = smov 24  }
   0x8   :  { %v358_v21 = vrot.slane %v356_v16, 1  ;;  %v363_v23 = vshll.u32 %v6285_v17, 16  ;;  %v361_v26 = vshrl.u32 %v6285_v17, 16  ;;  %v6299_v36 = vcombine.low %v6171_v33, %v6171_v33  ;;  %v6203_v38 = vld [vmem:[%s10119_s0 + $0x124] sm:$0x1]  ;;  %s7805_s16 = smov 28  }
   0x9   :  { %v351_v24 = vrot.slane %v349_v19, 1  ;;  %v372_v25 = vrot.slane %v370_v20, 1  ;;  %v6173_v39 = vld [vmem:[%s10119_s0 + $0x130] sm:$0xf]  ;;  %v6332_v40 = vcombine.low %v6172_v32, %v6204_v35  ;;  %v6302_v41 = vcombine.low %v6174_v37, %v6174_v37  ;;  %v6206_v43 = vld [vmem:[%s10119_s0 + $0x13c] sm:$0x1] }
   0xa   :  { %v359_v27 = vor.u32 %v358_v21, %v354_v15  ;;  %v365_v28 = vrot.slane %v363_v23, 1  ;;  %v6331_v42 = vcombine.low %v6171_v33, %v6203_v38  ;;  %v6301_v44 = vcombine.low %v6173_v39, %v6173_v39  ;;  %v6205_v45 = vld [vmem:[%s10119_s0 + $0x134] sm:$0x1]  ;;  %v7446_v47 = vld [vmem:[%s10119_s0 + $0x1b8] ss:$0 sps:$4 sm:$0xff]   ;;  %v7518_v35 = vld [vmem:[%s10120_s1] sm:$0xff]  }
   0xb   :  { %v352_v29 = vor.u32 %v351_v24, %v347_v18  ;;  %v373_v30 = vor.u32 %v372_v25, %v368_v22  ;;  %v6334_v46 = vcombine.low %v6174_v37, %v6206_v43  ;;  %v708_v48 = vshll.u32 %v6332_v40, 16  ;;  %v7447_v50 = vld [vmem:[%s10119_s0 + $0x1b0] ss:$0 sps:$4 sm:$0xff]   ;;  %v7448_v52 = vld [vmem:[%s10119_s0 + $0x1c8] ss:$0 sps:$4 sm:$0xff]   ;;  %7345 = vmatprep.subr.bf16.mxu0 %v7518_v35  ;;  %s7806_s22 = smov 32  }
   0xc   :  { %460 = vrot.lane.b32.xlu1 %v359_v27, %s7800_s19  ;;  %v366_v31 = vor.u32 %v365_v28, %v361_v26  ;;  %v6333_v49 = vcombine.low %v6173_v39, %v6205_v45  ;;  %v701_v51 = vshll.u32 %v6331_v42, 16  ;;  %v706_v53 = vshrl.u32 %v6332_v40, 16  ;;  %v7449_v56 = vld [vmem:[%s10119_s0 + $0x1c0] ss:$0 sps:$4 sm:$0xff]   ;;  %v6220_v4 = vld [vmem:[%s10119_s0 + $0x10] sm:$0xf]  ;;  %7346 = vmatpush3.bf16.msra.mxu0 %v7518_v35 }
   0xd   :  { %458 = vrot.lane.b32.xlu0 %v352_v29, %s7800_s19  ;;  %v710_v54 = vrot.slane %v708_v48, 1  ;;  %v722_v55 = vshll.u32 %v6334_v46, 16  ;;  %v699_v57 = vshrl.u32 %v6331_v42, 16  ;;  %v720_v61 = vshrl.u32 %v6334_v46, 16  ;;  %v6219_v5 = vld [vmem:[%s10119_s0 + $0x8] sm:$0xf] }
   0xe   :  { %v703_v58 = vrot.slane %v701_v51, 1  ;;  %v715_v59 = vshll.u32 %v6333_v49, 16  ;;  %v713_v0 = vshrl.u32 %v6333_v49, 16  ;;  %v6348_v6 = vcombine.low %v6220_v4, %v6220_v4  ;;  %v6252_v7 = vld [vmem:[%s10119_s0 + $0x14] sm:$0x1]  ;;  %v7523_v39 = vld [vmem:[%s10120_s1 + $0x8] sm:$0xff]  }
   0xf   :  { %v711_v60 = vor.u32 %v710_v54, %v706_v53  ;;  %v724_v62 = vrot.slane %v722_v55, 1  ;;  %v6347_v8 = vcombine.low %v6219_v5, %v6219_v5  ;;  %v6222_v9 = vld [vmem:[%s10119_s0 + $0x20] sm:$0xf]  ;;  %v6251_v10 = vld [vmem:[%s10119_s0 + $0xc] sm:$0x1]  ;;  %v6380_v12 = vcombine.low %v6220_v4, %v6252_v7  ;;  %7347 = vmatprep.subr.bf16.mxu0 %v7523_v39 }
  0x10   :  { %464 = vrot.lane.b32.xlu1 %v373_v30, %s7800_s19  ;;  %v704_v63 = vor.u32 %v703_v58, %v699_v57  ;;  %v717_v1 = vrot.slane %v715_v59, 1  ;;  %v6221_v11 = vld [vmem:[%s10119_s0 + $0x18] sm:$0xf]  ;;  %v6350_v13 = vcombine.low %v6222_v9, %v6222_v9  ;;  %v6379_v14 = vcombine.low %v6219_v5, %v6251_v10  ;;  %v6254_v16 = vld [vmem:[%s10119_s0 + $0x24] sm:$0x1]  ;;  %7348 = vmatpush3.bf16.msra.mxu0 %v7523_v39 }
  0x11   :  { %462 = vrot.lane.b32.xlu0 %v366_v31, %s7800_s19  ;;  %v725_v2 = vor.u32 %v724_v62, %v720_v61  ;;  %v6349_v15 = vcombine.low %v6221_v11, %v6221_v11  ;;  %v7458_v17 = vld [vmem:[%s10119_s0 + $0xa0] ss:$0 sps:$4 sm:$0xff]   ;;  %v1060_v18 = vshll.u32 %v6380_v12, 16  ;;  %v6253_v19 = vld [vmem:[%s10119_s0 + $0x1c] sm:$0x1]  ;;  %v6382_v22 = vcombine.low %v6222_v9, %v6254_v16 }
  0x12   :  { %v718_v3 = vor.u32 %v717_v1, %v713_v0  ;;  %v7459_v20 = vld [vmem:[%s10119_s0 + $0x98] ss:$0 sps:$4 sm:$0xff]   ;;  %v1053_v21 = vshll.u32 %v6379_v14, 16  ;;  %v6381_v23 = vcombine.low %v6221_v11, %v6253_v19  ;;  %v7460_v24 = vld [vmem:[%s10119_s0 + $0xb0] ss:$0 sps:$4 sm:$0xff]   ;;  %v1058_v25 = vshrl.u32 %v6380_v12, 16 }
  0x13   :  { %v1062_v26 = vrot.slane %v1060_v18, 1  ;;  %v7461_v27 = vld [vmem:[%s10119_s0 + $0xa8] ss:$0 sps:$4 sm:$0xff]   ;;  %v1051_v28 = vshrl.u32 %v6379_v14, 16  ;;  %v1074_v30 = vshll.u32 %v6382_v22, 16  ;;  %v1072_v43 = vshrl.u32 %v6382_v22, 16 }
  0x14   :  { %540 = vrot.lane.b32.xlu1 %v6300_v34, %s7801_s12  ;;  %v1055_v29 = vrot.slane %v1053_v21, 1  ;;  %v1067_v32 = vshll.u32 %v6381_v23, 16  ;;  %v42_v33 = vld [vmem:[%s10119_s0 + $0x28] sm:$0xf]  ;;  %v75_v34 = vld [vmem:[%s10119_s0 + $0x2c] sm:$0x1] }
  0x15   :  { %538 = vrot.lane.b32.xlu0 %v6299_v36, %s7801_s12  ;;  %v1063_v31 = vor.u32 %v1062_v26, %v1058_v25  ;;  %v41_v37 = vld [vmem:[%s10119_s0 + $0x20] sm:$0xf]  ;;  %v74_v38 = vld [vmem:[%s10119_s0 + $0x24] sm:$0x1]  ;;  %v6288_v40 = vcombine.low %v42_v33, %v75_v34  ;;  %v7463_v42 = vld [vmem:[%s10119_s0 + $0xb0] ss:$0 sps:$4 sm:$0xff]  }
  0x16   :  { %v1056_v36 = vor.u32 %v1055_v29, %v1051_v28  ;;  %v1065_v45 = vshrl.u32 %v6381_v23, 16  ;;  %v1069_v46 = vrot.slane %v1067_v32, 1  ;;  %v44_v48 = vld [vmem:[%s10119_s0 + $0x38] sm:$0xf]  ;;  %v77_v49 = vld [vmem:[%s10119_s0 + $0x3c] sm:$0x1] }
  0x17   :  { %v76_v51 = vld [vmem:[%s10119_s0 + $0x34] sm:$0x1]  ;;  %v6290_v54 = vcombine.low %v44_v48, %v77_v49  ;;  %v7464_v58 = vld [vmem:[%s10119_s0 + $0xc8] ss:$0 sps:$4 sm:$0xff]   ;;  %v7465_v59 = vld [vmem:[%s10119_s0 + $0xc0] ss:$0 sps:$4 sm:$0xff]  }
  0x18   :  { %544 = vrot.lane.b32.xlu1 %v6302_v41, %s7801_s12  ;;  %v7462_v41 = vld [vmem:[%s10119_s0 + $0xb8] ss:$0 sps:$4 sm:$0xff]   ;;  %v1070_v55 = vor.u32 %v1069_v46, %v1065_v45  ;;  %v6176_v12 = vld [vmem:[%s10119_s0 + $0x148] sm:$0xf]  ;;  %v6175_v14 = vld [vmem:[%s10119_s0 + $0x140] sm:$0xf] }
  0x19   :  { %542 = vrot.lane.b32.xlu0 %v6301_v44, %s7801_s12  ;;  %v1076_v44 = vrot.slane %v1074_v30, 1  ;;  %v398_v62 = vshll.u32 %v6290_v54, 16  ;;  %v396_v5 = vshrl.u32 %v6290_v54, 16  ;;  %v6304_v16 = vcombine.low %v6176_v12, %v6176_v12  ;;  %v6178_v18 = vld [vmem:[%s10119_s0 + $0x158] sm:$0xf] }
  0x1a   :  { %v6177_v21 = vld [vmem:[%s10119_s0 + $0x150] sm:$0xf]  ;;  %v6210_v22 = vld [vmem:[%s10119_s0 + $0x15c] sm:$0x1]  ;;  %v6306_v23 = vcombine.low %v6178_v18, %v6178_v18  ;;  %v7478_v26 = vld [vmem:[%s10119_s0 + $0x1d8] ss:$0 sps:$4 sm:$0xff]  }
  0x1b   :  { %v1077_v53 = vor.u32 %v1076_v44, %v1072_v43  ;;  %v6305_v25 = vcombine.low %v6177_v21, %v6177_v21  ;;  %v6338_v29 = vcombine.low %v6178_v18, %v6210_v22  ;;  %v7480_v34 = vld [vmem:[%s10119_s0 + $0x1e8] ss:$0 sps:$4 sm:$0xff]   ;;  %v7481_v35 = vld [vmem:[%s10119_s0 + $0x1e0] ss:$0 sps:$4 sm:$0xff]   ;;  %v6224_v43 = vld [vmem:[%s10119_s0 + $0x30] sm:$0xf] }
  0x1c   :  { %620 = vrot.lane.b32.xlu1 %v7446_v47, %s7802_s23  ;;  %v6287_v47 = vcombine.low %v41_v37, %v74_v38  ;;  %v6226_v54 = vld [vmem:[%s10119_s0 + $0x40] sm:$0xf] }
  0x1d   :  { %618 = vrot.lane.b32.xlu0 %v7447_v50, %s7802_s23  ;;  %v43_v50 = vld [vmem:[%s10119_s0 + $0x30] sm:$0xf]  ;;  %v750_v38 = vshll.u32 %v6338_v29, 16 }
  0x1e   :  { %v6289_v57 = vcombine.low %v43_v50, %v76_v51  ;;  %v6223_v50 = vld [vmem:[%s10119_s0 + $0x28] sm:$0xf] }
  0x20   :  { %624 = vrot.lane.b32.xlu1 %v7448_v52, %s7802_s23  ;;  %v384_v52 = vshll.u32 %v6288_v40, 16  ;;  %v391_v1 = vshll.u32 %v6289_v57, 16 }
  0x21   :  { %622 = vrot.lane.b32.xlu0 %v7449_v56, %s7802_s23  ;;  %v377_v56 = vshll.u32 %v6287_v47, 16 }
  0x22   :  { %v386_v61 = vrot.slane %v384_v52, 1  ;;  %v393_v9 = vrot.slane %v391_v1, 1  ;;  %v6255_v52 = vld [vmem:[%s10119_s0 + $0x2c] sm:$0x1] }
  0x23   :  { %v379_v0 = vrot.slane %v377_v56, 1  ;;  %v6383_v56 = vcombine.low %v6223_v50, %v6255_v52 }
  0x24   :  { %812 = vrot.lane.b32.xlu1 %v711_v60, %s7803_s28  ;;  %v382_v60 = vshrl.u32 %v6288_v40, 16  ;;  %v6256_v40 = vld [vmem:[%s10119_s0 + $0x34] sm:$0x1] }
  0x25   :  { %810 = vrot.lane.b32.xlu0 %v704_v63, %s7803_s28  ;;  %v375_v63 = vshrl.u32 %v6287_v47, 16  ;;  %v6384_v48 = vcombine.low %v6224_v43, %v6256_v40  ;;  %v1081_v1 = vshll.u32 %v6383_v56, 16 }
  0x26   :  { %v387_v4 = vor.u32 %v386_v61, %v382_v60  ;;  %v6257_v60 = vld [vmem:[%s10119_s0 + $0x3c] sm:$0x1]  ;;  %v6354_v61 = vcombine.low %v6226_v54, %v6226_v54 }
  0x27   :  { %v380_v7 = vor.u32 %v379_v0, %v375_v63  ;;  %v1079_v0 = vshrl.u32 %v6383_v56, 16 }
  0x28   :  { %816 = vrot.lane.b32.xlu1 %v725_v2, %s7803_s28  ;;  %v7526_v2 = vld [vmem:[%s10120_s1 + $0x10] ss:$0 sps:$4 sm:$0x33]  }
  0x29   :  { %814 = vrot.lane.b32.xlu0 %v718_v3, %s7803_s28  ;;  %7417 = vmatprep.subr.msk.bf16.mxu0 %vm1559_vm0, %v7526_v2  ;;  %v1561_v3 = vsel %vm1559_vm0, %v7526_v2, 0 }
  0x2a   :  { %7350 = vmatpush3.bf16.msra.mxu0 %v1561_v3  ;;  %v7490_v3 = vld [vmem:[%s10119_s0 + $0xc0] ss:$0 sps:$4 sm:$0xff]  }
  0x2c   :  { %892 = vrot.lane.b32.xlu1 %v6348_v6, %s7804_s25  ;;  %v400_v6 = vrot.slane %v398_v62, 1  ;;  %v1086_v62 = vshrl.u32 %v6384_v48, 16 }
  0x2d   :  { %890 = vrot.lane.b32.xlu0 %v6347_v8, %s7804_s25  ;;  %v389_v8 = vshrl.u32 %v6289_v57, 16  ;;  %v6351_v57 = vcombine.low %v6223_v50, %v6223_v50 }
  0x2e   :  { %v401_v10 = vor.u32 %v400_v6, %v396_v5  ;;  %v79_v5 = vld [vmem:[%s10119_s0 + $0x54] sm:$0x1] }
  0x2f   :  { %v394_v11 = vor.u32 %v393_v9, %v389_v8  ;;  %v7491_v8 = vld [vmem:[%s10119_s0 + $0xb8] ss:$0 sps:$4 sm:$0xff]   ;;  %v45_v9 = vld [vmem:[%s10119_s0 + $0x48] sm:$0xf] }
  0x30   :  { %896 = vrot.lane.b32.xlu1 %v6350_v13, %s7804_s25  ;;  %v6208_v13 = vld [vmem:[%s10119_s0 + $0x14c] sm:$0x1] }
  0x31   :  { %894 = vrot.lane.b32.xlu0 %v6349_v15, %s7804_s25  ;;  %v6207_v15 = vld [vmem:[%s10119_s0 + $0x144] sm:$0x1]  ;;  %v6336_v19 = vcombine.low %v6176_v12, %v6208_v13  ;;  %v47_v13 = vld [vmem:[%s10119_s0 + $0x58] sm:$0xf] }
  0x32   :  { %v81_v12 = vld [vmem:[%s10119_s0 + $0x64] sm:$0x1] }
  0x33   :  { %v734_v32 = vshrl.u32 %v6336_v19, 16 }
  0x34   :  { %972 = vrot.lane.b32.xlu1 %v7458_v17, %s7805_s16  ;;  %v6303_v17 = vcombine.low %v6175_v14, %v6175_v14 }
  0x35   :  { %970 = vrot.lane.b32.xlu0 %v7459_v20, %s7805_s16  ;;  %v6335_v20 = vcombine.low %v6175_v14, %v6207_v15  ;;  %v80_v14 = vld [vmem:[%s10119_s0 + $0x5c] sm:$0x1]  ;;  %v7492_v15 = vld [vmem:[%s10119_s0 + $0xd0] ss:$0 sps:$4 sm:$0xff]  }
  0x37   :  { %v729_v28 = vshll.u32 %v6335_v20, 16  ;;  %v727_v33 = vshrl.u32 %v6335_v20, 16 }
  0x38   :  { %976 = vrot.lane.b32.xlu1 %v7460_v24, %s7805_s16  ;;  %v6209_v24 = vld [vmem:[%s10119_s0 + $0x154] sm:$0x1] }
  0x39   :  { %974 = vrot.lane.b32.xlu0 %v7461_v27, %s7805_s16  ;;  %v736_v27 = vshll.u32 %v6336_v19, 16  ;;  %v6337_v30 = vcombine.low %v6177_v21, %v6209_v24  ;;  %v731_v37 = vrot.slane %v729_v28, 1 }
  0x3b   :  { %v743_v39 = vshll.u32 %v6337_v30, 16  ;;  %v732_v45 = vor.u32 %v731_v37, %v727_v33  ;;  %v741_v46 = vshrl.u32 %v6337_v30, 16 }
  0x3c   :  { %1164 = vrot.lane.b32.xlu1 %v1063_v31, %s7806_s22  ;;  %v7479_v31 = vld [vmem:[%s10119_s0 + $0x1d0] ss:$0 sps:$4 sm:$0xff]  }
  0x3d   :  { %1162 = vrot.lane.b32.xlu0 %v1056_v36, %s7806_s22  ;;  %v738_v36 = vrot.slane %v736_v27, 1  ;;  %v745_v47 = vrot.slane %v743_v39, 1 }
  0x3f   :  { %v739_v44 = vor.u32 %v738_v36, %v734_v32  ;;  %v746_v51 = vor.u32 %v745_v47, %v741_v46 }
  0x40   :  { %244 = vrot.lane.b32.xlu1 %v7462_v41, %s7799_s17  ;;  %v748_v41 = vshrl.u32 %v6338_v29, 16 }
  0x41   :  { %242 = vrot.lane.b32.xlu0 %v7463_v42, %s7799_s17  ;;  %v752_v42 = vrot.slane %v750_v38, 1  ;;  %v7494_v38 = vld [vmem:[%s10119_s0 + $0xe0] ss:$0 sps:$4 sm:$0xff]  }
  0x43   :  { %v753_v49 = vor.u32 %v752_v42, %v748_v41  ;;  %v7495_v41 = vld [vmem:[%s10119_s0 + $0xd8] ss:$0 sps:$4 sm:$0xff]  }
  0x44   :  { %1168 = vrot.lane.b32.xlu1 %v1077_v53, %s7806_s22  ;;  %v1088_v53 = vshll.u32 %v6384_v48, 16 }
  0x45   :  { %1166 = vrot.lane.b32.xlu0 %v1070_v55, %s7806_s22  ;;  %v6352_v55 = vcombine.low %v6224_v43, %v6224_v43 }
  0x46   :  { %v1090_v63 = vrot.slane %v1088_v53, 1  ;;  %v7496_v53 = vld [vmem:[%s10119_s0 + $0xf0] ss:$0 sps:$4 sm:$0xff]  }
  0x48   :  { %248 = vrot.lane.b32.xlu1 %v7464_v58, %s7799_s17  ;;  %v6258_v58 = vld [vmem:[%s10119_s0 + $0x44] sm:$0x1] }
  0x49   :  { %246 = vrot.lane.b32.xlu0 %v7465_v59, %s7799_s17  ;;  %v6225_v59 = vld [vmem:[%s10119_s0 + $0x38] sm:$0xf]  ;;  %v6386_v6 = vcombine.low %v6226_v54, %v6258_v58 }
  0x4a   :  { %v6353_v2 = vcombine.low %v6225_v59, %v6225_v59 }
  0x4b   :  { %v1102_v18 = vshll.u32 %v6386_v6, 16 }
  0x4c   :  { %468 = vrot.lane.b32.xlu1 %v387_v4, %s7800_s19  ;;  %v46_v4 = vld [vmem:[%s10119_s0 + $0x50] sm:$0xf] }
  0x4d   :  { %466 = vrot.lane.b32.xlu0 %v380_v7, %s7800_s19  ;;  %v6385_v7 = vcombine.low %v6225_v59, %v6257_v60  ;;  %v6292_v20 = vcombine.low %v46_v4, %v79_v5  ;;  %v1104_v27 = vrot.slane %v1102_v18, 1  ;;  %v6212_v4 = vld [vmem:[%s10119_s0 + $0x174] sm:$0x1]  ;;  %v6182_v5 = vld [vmem:[%s10119_s0 + $0x180] sm:$0xf] }
  0x4f   :  { %v1095_v19 = vshll.u32 %v6385_v7, 16  ;;  %v1093_v28 = vshrl.u32 %v6385_v7, 16  ;;  %v412_v29 = vshll.u32 %v6292_v20, 16  ;;  %v410_v39 = vshrl.u32 %v6292_v20, 16  ;;  %v6211_v7 = vld [vmem:[%s10119_s0 + $0x16c] sm:$0x1] }
  0x50   :  { %472 = vrot.lane.b32.xlu1 %v401_v10, %s7800_s19  ;;  %v78_v10 = vld [vmem:[%s10119_s0 + $0x4c] sm:$0x1] }
  0x51   :  { %470 = vrot.lane.b32.xlu0 %v394_v11, %s7800_s19  ;;  %v48_v11 = vld [vmem:[%s10119_s0 + $0x60] sm:$0xf]  ;;  %v414_v42 = vrot.slane %v412_v29, 1 }
  0x52   :  { %v6294_v24 = vcombine.low %v48_v11, %v81_v12 }
  0x53   :  { %v415_v58 = vor.u32 %v414_v42, %v410_v39 }
  0x54   :  { %548 = vrot.lane.b32.xlu1 %v6304_v16, %s7801_s12  ;;  %v7493_v16 = vld [vmem:[%s10119_s0 + $0xc8] ss:$0 sps:$4 sm:$0xff]   ;;  %v426_v36 = vshll.u32 %v6294_v24, 16  ;;  %v424_v43 = vshrl.u32 %v6294_v24, 16 }
  0x55   :  { %546 = vrot.lane.b32.xlu0 %v6303_v17, %s7801_s12  ;;  %v1083_v17 = vrot.slane %v1081_v1, 1 }
  0x57   :  { %v1084_v32 = vor.u32 %v1083_v17, %v1079_v0  ;;  %v6179_v0 = vld [vmem:[%s10119_s0 + $0x168] sm:$0xf] }
  0x58   :  { %552 = vrot.lane.b32.xlu1 %v6306_v23, %s7801_s12  ;;  %v6291_v23 = vcombine.low %v45_v9, %v78_v10  ;;  %v6307_v9 = vcombine.low %v6179_v0, %v6179_v0 }
  0x59   :  { %550 = vrot.lane.b32.xlu0 %v6305_v25, %s7801_s12  ;;  %v6293_v25 = vcombine.low %v47_v13, %v80_v14  ;;  %v6310_v13 = vcombine.low %v6182_v5, %v6182_v5 }
  0x5a   :  { %v403_v40 = vshrl.u32 %v6291_v23, 16 }
  0x5b   :  { %v419_v37 = vshll.u32 %v6293_v25, 16  ;;  %v417_v46 = vshrl.u32 %v6293_v25, 16 }
  0x5c   :  { %628 = vrot.lane.b32.xlu1 %v7478_v26, %s7802_s23  ;;  %v1100_v26 = vshrl.u32 %v6386_v6, 16 }
  0x5d   :  { %626 = vrot.lane.b32.xlu0 %v7479_v31, %s7802_s23  ;;  %v1091_v31 = vor.u32 %v1090_v63, %v1086_v62  ;;  %v421_v47 = vrot.slane %v419_v37, 1  ;;  %v6180_v62 = vld [vmem:[%s10119_s0 + $0x170] sm:$0xf] }
  0x5e   :  { %v1105_v50 = vor.u32 %v1104_v27, %v1100_v26  ;;  %v6308_v6 = vcombine.low %v6180_v62, %v6180_v62  ;;  %v6340_v12 = vcombine.low %v6180_v62, %v6212_v4 }
  0x5f   :  { %v422_v1 = vor.u32 %v421_v47, %v417_v46 }
  0x60   :  { %632 = vrot.lane.b32.xlu1 %v7480_v34, %s7802_s23  ;;  %v1097_v34 = vrot.slane %v1095_v19, 1 }
  0x61   :  { %630 = vrot.lane.b32.xlu0 %v7481_v35, %s7802_s23  ;;  %v405_v35 = vshll.u32 %v6291_v23, 16 }
  0x64   :  { %820 = vrot.lane.b32.xlu1 %v739_v44, %s7803_s28  ;;  %v407_v44 = vrot.slane %v405_v35, 1 }
  0x65   :  { %818 = vrot.lane.b32.xlu0 %v732_v45, %s7803_s28  ;;  %v428_v45 = vrot.slane %v426_v36, 1 }
  0x66   :  { %v408_v59 = vor.u32 %v407_v44, %v403_v40 }
  0x67   :  { %v429_v63 = vor.u32 %v428_v45, %v424_v43 }
  0x68   :  { %824 = vrot.lane.b32.xlu1 %v753_v49, %s7803_s28 }
  0x69   :  { %822 = vrot.lane.b32.xlu0 %v746_v51, %s7803_s28  ;;  %v1098_v51 = vor.u32 %v1097_v34, %v1093_v28 }
  0x6c   :  { %900 = vrot.lane.b32.xlu1 %v6352_v55, %s7804_s25  ;;  %v7497_v55 = vld [vmem:[%s10119_s0 + $0xe8] ss:$0 sps:$4 sm:$0xff]  }
  0x6d   :  { %898 = vrot.lane.b32.xlu0 %v6351_v57, %s7804_s25 }
  0x70   :  { %904 = vrot.lane.b32.xlu1 %v6354_v61, %s7804_s25 }
  0x71   :  { %902 = vrot.lane.b32.xlu0 %v6353_v2, %s7804_s25 }
  0x74   :  { %980 = vrot.lane.b32.xlu1 %v7490_v3, %s7805_s16  ;;  %v8173_v21 = vpop.permute.xlu1 %238  ;;  %v8176_v22 = vpop.permute.xlu0 %234 }
  0x75   :  { %978 = vrot.lane.b32.xlu0 %v7491_v8, %s7805_s16  ;;  %v6181_v8 = vld [vmem:[%s10119_s0 + $0x178] sm:$0xf] }
  0x78   :  { %984 = vrot.lane.b32.xlu1 %v7492_v15, %s7805_s16  ;;  %v8179_v30 = vpop.permute.xlu1 %240  ;;  %v8182_v33 = vpop.permute.xlu0 %236 }
  0x79   :  { %982 = vrot.lane.b32.xlu0 %v7493_v16, %s7805_s16 }
  0x7c   :  { %1172 = vrot.lane.b32.xlu1 %v1091_v31, %s7806_s22 }
  0x7d   :  { %1170 = vrot.lane.b32.xlu0 %v1084_v32, %s7806_s22 }
  0x7e   :  { %v8192_v48 = vpop.permute.xlu1 %460 }
  0x7f   :  { %v8194_v49 = vpop.permute.xlu0 %458 }
  0x80   :  { %252 = vrot.lane.b32.xlu1 %v7494_v38, %s7799_s17 }
  0x81   :  { %250 = vrot.lane.b32.xlu0 %v7495_v41, %s7799_s17 }
  0x82   :  { %v8198_v52 = vpop.permute.xlu1 %464 }
  0x83   :  { %v8203_v54 = vpop.permute.xlu0 %462 }
  0x84   :  { %1176 = vrot.lane.b32.xlu1 %v1105_v50, %s7806_s22 }
  0x85   :  { %1174 = vrot.lane.b32.xlu0 %v1098_v51, %s7806_s22 }
  0x86   :  { %v8210_v56 = vpop.permute.xlu1 %540 }
  0x87   :  { %v8212_v57 = vpop.permute.xlu0 %538 }
  0x88   :  { %256 = vrot.lane.b32.xlu1 %v7496_v53, %s7799_s17 }
  0x89   :  { %254 = vrot.lane.b32.xlu0 %v7497_v55, %s7799_s17 }
  0x8a   :  { %v8216_v60 = vpop.permute.xlu1 %544 }
  0x8b   :  { %v8218_v61 = vpop.permute.xlu0 %542 }
  0x8c   :  { %476 = vrot.lane.b32.xlu1 %v415_v58, %s7800_s19 }
  0x8d   :  { %474 = vrot.lane.b32.xlu0 %v408_v59, %s7800_s19 }
  0x8e   :  { %v8228_v2 = vpop.permute.xlu1 %620 }
  0x8f   :  { %v8230_v3 = vpop.permute.xlu0 %618 }
  0x90   :  { %480 = vrot.lane.b32.xlu1 %v429_v63, %s7800_s19 }
  0x91   :  { %478 = vrot.lane.b32.xlu0 %v422_v1, %s7800_s19 }
  0x92   :  { %v8246_v10 = vpop.permute.xlu1 %624 }
  0x93   :  { %v8248_v11 = vpop.permute.xlu0 %622 }
  0x94   :  { %556 = vrot.lane.b32.xlu1 %v6308_v6, %s7801_s12 }
  0x95   :  { %15 = vsyncpa [#allocation4], 0  ;;  %v6339_v14 = vcombine.low %v6179_v0, %v6211_v7  ;;  %554 = vrot.lane.b32.xlu0 %v6307_v9, %s7801_s12  ;;  %v6214_v15 = vld [vmem:[%s10119_s0 + $0x184] sm:$0x1]  ;;  %v6309_v16 = vcombine.low %v6181_v8, %v6181_v8  ;;  %v6213_v18 = vld [vmem:[%s10119_s0 + $0x17c] sm:$0x1] }
  0x96   :  { %v8255_v17 = vpop.permute.xlu1 %812  ;;  %v6342_v20 = vcombine.low %v6182_v5, %v6214_v15  ;;  %v7510_v23 = vld [vmem:[%s10119_s0 + $0x200] ss:$0 sps:$4 sm:$0xff]   ;;  %v764_v24 = vshll.u32 %v6340_v12, 16  ;;  %v6341_v25 = vcombine.low %v6181_v8, %v6213_v18  ;;  %v7511_v26 = vld [vmem:[%s10119_s0 + $0x1f8] ss:$0 sps:$4 sm:$0xff]   ;;  %v762_v32 = vshrl.u32 %v6340_v12, 16 }
  0x97   :  { %v8260_v19 = vpop.permute.xlu0 %810  ;;  %v757_v27 = vshll.u32 %v6339_v14, 16  ;;  %v7512_v31 = vld [vmem:[%s10119_s0 + $0x210] ss:$0 sps:$4 sm:$0xff]   ;;  %v7513_v36 = vld [vmem:[%s10119_s0 + $0x208] ss:$0 sps:$4 sm:$0xff]   ;;  %v755_v37 = vshrl.u32 %v6339_v14, 16 }
  0x98   :  { %560 = vrot.lane.b32.xlu1 %v6310_v13, %s7801_s12  ;;  %v766_v34 = vrot.slane %v764_v24, 1  ;;  %v778_v35 = vshll.u32 %v6342_v20, 16  ;;  %v771_v39 = vshll.u32 %v6341_v25, 16  ;;  %v776_v43 = vshrl.u32 %v6342_v20, 16  ;;  %v6228_v58 = vld [vmem:[%s10119_s0 + $0x58] sm:$0xf] }
  0x99   :  { %558 = vrot.lane.b32.xlu0 %v6309_v16, %s7801_s12  ;;  %v759_v38 = vrot.slane %v757_v27, 1  ;;  %v769_v46 = vshrl.u32 %v6341_v25, 16  ;;  %vm1194_vm1 = vcmask 31744   ;;  %vm1243_vm2 = vcmask 64512   ;;  %v6227_v62 = vld [vmem:[%s10119_s0 + $0x50] sm:$0xf] }
  0x9a   :  { %v8270_v28 = vpop.permute.xlu1 %816  ;;  %v767_v42 = vor.u32 %v766_v34, %v762_v32  ;;  %v780_v44 = vrot.slane %v778_v35, 1  ;;  %v773_v47 = vrot.slane %v771_v39, 1  ;;  %vm1276_vm3 = vcmask 97280   ;;  %v7741_v0 = vld [vmem:[%s10119_s0 + $0x8] sm:$0xf] }
  0x9b   :  { %v8272_v29 = vpop.permute.xlu0 %814  ;;  %v760_v45 = vor.u32 %v759_v38, %v755_v37  ;;  %v1200_v1 = vsel %vm1194_vm1, %v7741_v0, %v8182_v33  ;;  %vm1309_vm4 = vcmask 130048   ;;  %v6260_v4 = vld [vmem:[%s10119_s0 + $0x5c] sm:$0x1]  ;;  %v6356_v5 = vcombine.low %v6228_v58, %v6228_v58  ;;  %v7742_v6 = vld [vmem:[%s10119_s0] sm:$0xf] }
  0x9c   :  { %636 = vrot.lane.b32.xlu1 %v7510_v23, %s7802_s23  ;;  %v781_v53 = vor.u32 %v780_v44, %v776_v43  ;;  %v774_v55 = vor.u32 %v773_v47, %v769_v46  ;;  %v1197_v7 = vsel %vm1194_vm1, %v7742_v6, %v8176_v22  ;;  %v1247_v8 = vsel %vm1243_vm2, %v1200_v1, %v8192_v48  ;;  %v6230_v9 = vld [vmem:[%s10119_s0 + $0x68] sm:$0xf]  ;;  %v6259_v22 = vld [vmem:[%s10119_s0 + $0x54] sm:$0x1]  ;;  %v6229_v48 = vld [vmem:[%s10119_s0 + $0x60] sm:$0xf] }
  0x9d   :  { %634 = vrot.lane.b32.xlu0 %v7511_v26, %s7802_s23  ;;  %vm1342_vm5 = vcmask 162816   ;;  %v6355_v33 = vcombine.low %v6227_v62, %v6227_v62  ;;  %v1245_v12 = vsel %vm1243_vm2, %v1197_v7, %v8194_v49  ;;  %v1280_v13 = vsel %vm1276_vm3, %v1247_v8, %v8210_v56  ;;  %v7743_v34 = vld [vmem:[%s10119_s0 + $0x18] sm:$0xf]  ;;  %v6261_v37 = vld [vmem:[%s10119_s0 + $0x64] sm:$0x1] }
  0x9e   :  { %v893_v40 = vpop.permute.xlu1 %892  ;;  %vm1375_vm6 = vcmask 195584   ;;  %v1278_v15 = vsel %vm1276_vm3, %v1245_v12, %v8212_v57  ;;  %v1313_v49 = vsel %vm1309_vm4, %v1280_v13, %v8228_v2  ;;  %vm1408_vm7 = vcmask 228352   ;;  %v7524_v38 = vld [vmem:[%s10119_s0 + $0xe8] ss:$0 sps:$4 sm:$0xff]   ;;  %v7525_v43 = vld [vmem:[%s10119_s0 + $0xe0] ss:$0 sps:$4 sm:$0xff]  }
  0x9f   :  { %v891_v41 = vpop.permute.xlu0 %890  ;;  %v8332_v56 = vcombine.low %v6228_v58, %v6260_v4  ;;  %v1311_v18 = vsel %vm1309_vm4, %v1278_v15, %v8230_v3  ;;  %v1346_v20 = vsel %vm1342_vm5, %v1313_v49, %v8255_v17  ;;  %vm1441_vm8 = vcmask 261120   ;;  %v8417_v13 = vld [vmem:[%s10119_s0 + $0x70] sm:$0xf]  ;;  %v82_v15 = vld [vmem:[%s10119_s0 + $0x6c] sm:$0x1] }
  0xa0   :  { %640 = vrot.lane.b32.xlu1 %v7512_v31, %s7802_s23  ;;  %v6358_v23 = vcombine.low %v6230_v9, %v6230_v9  ;;  %v1344_v57 = vsel %vm1342_vm5, %v1311_v18, %v8260_v19  ;;  %v1379_v24 = vsel %vm1375_vm6, %v1346_v20, %v893_v40  ;;  %v6387_v2 = vcombine.low %v6227_v62, %v6259_v22  ;;  %v6262_v19 = vld [vmem:[%s10119_s0 + $0x6c] sm:$0x1]  ;;  %v7744_v40 = vld [vmem:[%s10119_s0 + $0x10] sm:$0xf] }
  0xa1   :  { %638 = vrot.lane.b32.xlu0 %v7513_v36, %s7802_s23  ;;  %v6357_v25 = vcombine.low %v6229_v48, %v6229_v48  ;;  %v1377_v26 = vsel %vm1375_vm6, %v1344_v57, %v891_v41  ;;  %v1206_v35 = vsel %vm1194_vm1, %v7743_v34, %v8179_v30  ;;  %vm1534_vm9 = vcmask 293888  }
  0xa2   :  { %v8284_v50 = vpop.permute.xlu1 %896  ;;  %v1116_v39 = vshll.u32 %v8332_v56, 16  ;;  %v1203_v30 = vsel %vm1194_vm1, %v7744_v40, %v8173_v21  ;;  %v1251_v41 = vsel %vm1243_vm2, %v1206_v35, %v8198_v52  ;;  %v1109_v44 = vshll.u32 %v6387_v2, 16  ;;  %v7531_v40 = vld [vmem:[%s10119_s0 + $0x110] ss:$0 sps:$4 sm:$0xff]  }
  0xa3   :  { %v8286_v51 = vpop.permute.xlu0 %894  ;;  %v1284_v46 = vsel %vm1276_vm3, %v1251_v41, %v8216_v60  ;;  %vm6531_vm10 = vcmask 1043456  ;;  %vm3228_vm11 = vsmask.f32 256  ;;  %vm3229_vm12 = vsmask.f32 4368 }
  0xa4   :  { %828 = vrot.lane.b32.xlu1 %v767_v42, %s7803_s28  ;;  %v1317_v52 = vsel %vm1309_vm4, %v1284_v46, %v8246_v10  ;;  %v1114_v10 = vshrl.u32 %v8332_v56, 16  ;;  %v1111_v0 = vrot.slane %v1109_v44, 1  ;;  %v7530_v56 = vld [vmem:[%s10119_s0 + $0xf8] ss:$0 sps:$4 sm:$0xff]   ;;  %vm9050_vm13 = vmor %vm3228_vm11, %vm3229_vm12 }
  0xa5   :  { %826 = vrot.lane.b32.xlu0 %v760_v45, %s7803_s28  ;;  %v1249_v45 = vsel %vm1243_vm2, %v1203_v30, %v8203_v54  ;;  %v1350_v60 = vsel %vm1342_vm5, %v1317_v52, %v8270_v28  ;;  %v1107_v28 = vshrl.u32 %v6387_v2, 16 }
  0xa6   :  { %v973_v59 = vpop.permute.xlu1 %972  ;;  %v1282_v21 = vsel %vm1276_vm3, %v1249_v45, %v8218_v61  ;;  %v7527_v61 = vld [vmem:[%s10119_s0 + $0xf8] ss:$0 sps:$4 sm:$0xff]  }
  0xa7   :  { %v971_v63 = vpop.permute.xlu0 %970  ;;  %v1412_v3 = vsel %vm1408_vm7, %v1379_v24, %v973_v59  ;;  %v1315_v54 = vsel %vm1309_vm4, %v1282_v21, %v8248_v11  ;;  %v1118_v59 = vrot.slane %v1116_v39, 1  ;;  %v7528_v11 = vld [vmem:[%s10119_s0 + $0xf0] ss:$0 sps:$4 sm:$0xff]   ;;  %v1112_v12 = vor.u32 %v1111_v0, %v1107_v28 }
  0xa8   :  { %832 = vrot.lane.b32.xlu1 %v781_v53, %s7803_s28  ;;  %v1410_v17 = vsel %vm1408_vm7, %v1377_v26, %v971_v63  ;;  %v6390_v53 = vcombine.low %v6230_v9, %v6262_v19  ;;  %v1348_v62 = vsel %vm1342_vm5, %v1315_v54, %v8272_v29  ;;  %v1383_v63 = vsel %vm1375_vm6, %v1350_v60, %v8284_v50  ;;  %v85_v26 = vld [vmem:[%s10119_s0 + $0x84] sm:$0x1]  ;;  %v6184_v28 = vld [vmem:[%s10119_s0 + $0x190] sm:$0xf] }
  0xa9   :  { %830 = vrot.lane.b32.xlu0 %v774_v55, %s7803_s28  ;;  %v6389_v55 = vcombine.low %v6229_v48, %v6261_v37  ;;  %v1381_v1 = vsel %vm1375_vm6, %v1348_v62, %v8286_v51  ;;  %v1119_v8 = vor.u32 %v1118_v59, %v1114_v10  ;;  %v8427_v48 = vld [vmem:[%s10119_s0 + $0x68] sm:$0xf] }
  0xaa   :  { %v8320_v14 = vpop.permute.xlu1 %976  ;;  %v1128_v18 = vshrl.u32 %v6390_v53, 16  ;;  %v6295_v2 = vcombine.low %v8427_v48, %v82_v15  ;;  %v6218_v15 = vld [vmem:[%s10119_s0 + $0x1a4] sm:$0x1] }
  0xab   :  { %v975_v16 = vpop.permute.xlu0 %974  ;;  %v1416_v4 = vsel %vm1408_vm7, %v1383_v63, %v8320_v14  ;;  %v1123_v51 = vshll.u32 %v6389_v55, 16  ;;  %v83_v14 = vld [vmem:[%s10119_s0 + $0x74] sm:$0x1]  ;;  %v1121_v57 = vshrl.u32 %v6389_v55, 16 }
  0xac   :  { %908 = vrot.lane.b32.xlu1 %v6356_v5, %s7804_s25  ;;  %v1414_v29 = vsel %vm1408_vm7, %v1381_v1, %v975_v16  ;;  %v7529_v16 = vld [vmem:[%s10119_s0 + $0x100] ss:$0 sps:$4 sm:$0xff]   ;;  %v431_v44 = vshrl.u32 %v6295_v2, 16  ;;  %v6183_v1 = vld [vmem:[%s10119_s0 + $0x188] sm:$0xf] }
  0xad   :  { %906 = vrot.lane.b32.xlu0 %v6355_v33, %s7804_s25  ;;  %v1130_v33 = vshll.u32 %v6390_v53, 16  ;;  %v1125_v24 = vrot.slane %v1123_v51, 1 }
  0xae   :  { %v1165_v27 = vpop.permute.xlu1 %1164 }
  0xaf   :  { %v1445_v31 = vsel %vm1441_vm8, %v1412_v3, %v1165_v27  ;;  %v1163_v32 = vpop.permute.xlu0 %1162  ;;  %v1132_v20 = vrot.slane %v1130_v33, 1  ;;  %v8458_v27 = vld [vmem:[%s10119_s0 + $0x78] sm:$0xf]  ;;  %v1126_v35 = vor.u32 %v1125_v24, %v1121_v57  ;;  %v7545_v57 = vld [vmem:[%s10119_s0 + $0x220] ss:$0 sps:$4 sm:$0xff]  }
  0xb0   :  { %v1443_v36 = vsel %vm1441_vm8, %v1410_v17, %v1163_v32  ;;  %912 = vrot.lane.b32.xlu1 %v6358_v23, %s7804_s25  ;;  %v6296_v23 = vcombine.low %v8417_v13, %v83_v14  ;;  %v84_v17 = vld [vmem:[%s10119_s0 + $0x7c] sm:$0x1]  ;;  %v6185_v33 = vld [vmem:[%s10119_s0 + $0x198] sm:$0xf] }
  0xb1   :  { %910 = vrot.lane.b32.xlu0 %v6357_v25, %s7804_s25  ;;  %v6395_v42 = vcombine.low %v1443_v36, %v1445_v31  ;;  %v8448_v25 = vld [vmem:[%s10119_s0 + $0x80] sm:$0xf]  ;;  %v1133_v32 = vor.u32 %v1132_v20, %v1128_v18  ;;  %v433_v36 = vshll.u32 %v6295_v2, 16  ;;  %v6297_v37 = vcombine.low %v8458_v27, %v84_v17  ;;  %v6217_v18 = vld [vmem:[%s10119_s0 + $0x19c] sm:$0x1] }
  0xb2   :  { %v8379_v47 = vpop.permute.xlu1 %244  ;;  %v440_v19 = vshll.u32 %v6296_v23, 16  ;;  %v6298_v34 = vcombine.low %v8448_v25, %v85_v26  ;;  %v438_v30 = vshrl.u32 %v6296_v23, 16  ;;  %v6345_v2 = vcombine.low %v6185_v33, %v6217_v18  ;;  %v7546_v26 = vld [vmem:[%s10119_s0 + $0x218] ss:$0 sps:$4 sm:$0xff]  }
  0xb3   :  { %7351 = vmatprep.mubr.msk.bf16.mxu0 %vm1534_vm9, %v6395_v42  ;;  %v8386_v58 = vpop.permute.xlu0 %242  ;;  %v435_v45 = vrot.slane %v433_v36, 1  ;;  %v447_v46 = vshll.u32 %v6297_v37, 16 }
  0xb4   :  { %988 = vrot.lane.b32.xlu1 %v7524_v38, %s7805_s16  ;;  %v442_v41 = vrot.slane %v440_v19, 1  ;;  %v454_v42 = vshll.u32 %v6298_v34, 16  ;;  %v452_v55 = vshrl.u32 %v6298_v34, 16  ;;  %v7547_v34 = vld [vmem:[%s10119_s0 + $0x230] ss:$0 sps:$4 sm:$0xff]  }
  0xb5   :  { %986 = vrot.lane.b32.xlu0 %v7525_v43, %s7805_s16  ;;  %v7532_v43 = vld [vmem:[%s10119_s0 + $0x108] ss:$0 sps:$4 sm:$0xff]   ;;  %v436_v60 = vor.u32 %v435_v45, %v431_v44  ;;  %v449_v10 = vrot.slane %v447_v46, 1 }
  0xb6   :  { %v1169_v5 = vpop.permute.xlu1 %1168  ;;  %v443_v53 = vor.u32 %v442_v41, %v438_v30  ;;  %v456_v54 = vrot.slane %v454_v42, 1  ;;  %v799_v42 = vshll.u32 %v6345_v2, 16 }
  0xb7   :  { %v1449_v6 = vsel %vm1441_vm8, %v1416_v4, %v1169_v5  ;;  %v1167_v50 = vpop.permute.xlu0 %1166  ;;  %v6312_v5 = vcombine.low %v6184_v28, %v6184_v28 }
  0xb8   :  { %v1447_v7 = vsel %vm1441_vm8, %v1414_v29, %v1167_v50  ;;  %992 = vrot.lane.b32.xlu1 %v7527_v61, %s7805_s16  ;;  %v445_v61 = vshrl.u32 %v6297_v37, 16  ;;  %v457_v63 = vor.u32 %v456_v54, %v452_v55  ;;  %v6216_v29 = vld [vmem:[%s10119_s0 + $0x194] sm:$0x1]  ;;  %v6186_v50 = vld [vmem:[%s10119_s0 + $0x1a0] sm:$0xf]  ;;  %v797_v54 = vshrl.u32 %v6345_v2, 16 }
  0xb9   :  { %v6396_v9 = vcombine.low %v1447_v7, %v1449_v6  ;;  %990 = vrot.lane.b32.xlu0 %v7528_v11, %s7805_s16  ;;  %v6311_v6 = vcombine.low %v6183_v1, %v6183_v1  ;;  %v6314_v51 = vcombine.low %v6186_v50, %v6186_v50  ;;  %v6346_v23 = vcombine.low %v6186_v50, %v6218_v15  ;;  %v6234_v15 = vld [vmem:[%s10119_s0 + $0x88] sm:$0xf] }
  0xba   :  { %v8422_v22 = vpop.permute.xlu1 %248  ;;  %v450_v11 = vor.u32 %v449_v10, %v445_v61 }
  0xbb   :  { %7352 = vmatmul.mubr.msk.bf16.vlgmr.msra.gmra.mrb[0].mxu0 %vm1534_vm9, %v6396_v9  ;;  %v8433_v49 = vpop.permute.xlu0 %246  ;;  %v806_v37 = vshll.u32 %v6346_v23, 16  ;;  %v804_v46 = vshrl.u32 %v6346_v23, 16 }
  0xbc   :  { %1180 = vrot.lane.b32.xlu1 %v1119_v8, %s7806_s22  ;;  %v6215_v8 = vld [vmem:[%s10119_s0 + $0x18c] sm:$0x1] }
  0xbd   :  { %1178 = vrot.lane.b32.xlu0 %v1112_v12, %s7806_s22  ;;  %v6344_v12 = vcombine.low %v6184_v28, %v6216_v29  ;;  %v6343_v14 = vcombine.low %v6183_v1, %v6215_v8  ;;  %v6232_v28 = vld [vmem:[%s10119_s0 + $0x78] sm:$0xf]  ;;  %v6264_v8 = vld [vmem:[%s10119_s0 + $0x7c] sm:$0x1] }
  0xbe   :  { %v8453_v3 = vpop.permute.xlu1 %468 }
  0xbf   :  { %v8463_v31 = vpop.permute.xlu0 %466  ;;  %v792_v24 = vshll.u32 %v6344_v12, 16  ;;  %v785_v17 = vshll.u32 %v6343_v14, 16  ;;  %v783_v30 = vshrl.u32 %v6343_v14, 16 }
  0xc0   :  { %260 = vrot.lane.b32.xlu1 %v7529_v16, %s7799_s17  ;;  %v6313_v16 = vcombine.low %v6185_v33, %v6185_v33  ;;  %v6360_v33 = vcombine.low %v6232_v28, %v6232_v28 }
  0xc1   :  { %258 = vrot.lane.b32.xlu0 %v7530_v56, %s7799_s17  ;;  %v794_v36 = vrot.slane %v792_v24, 1  ;;  %v787_v41 = vrot.slane %v785_v17, 1  ;;  %v6362_v17 = vcombine.low %v6234_v15, %v6234_v15 }
  0xc2   :  { %v8469_v38 = vpop.permute.xlu1 %472 }
  0xc3   :  { %v8471_v39 = vpop.permute.xlu0 %470  ;;  %v788_v55 = vor.u32 %v787_v41, %v783_v30 }
  0xc4   :  { %1184 = vrot.lane.b32.xlu1 %v1133_v32, %s7806_s22 }
  0xc5   :  { %1182 = vrot.lane.b32.xlu0 %v1126_v35, %s7806_s22  ;;  %v790_v35 = vshrl.u32 %v6344_v12, 16  ;;  %v7746_v12 = vld [vmem:[%s10119_s0 + $0x20] sm:$0xf] }
  0xc6   :  { %v8481_v21 = vpop.permute.xlu1 %548 }
  0xc7   :  { %v8483_v52 = vpop.permute.xlu0 %546  ;;  %v795_v45 = vor.u32 %v794_v36, %v790_v35 }
  0xc8   :  { %264 = vrot.lane.b32.xlu1 %v7531_v40, %s7799_s17  ;;  %v7548_v40 = vld [vmem:[%s10119_s0 + $0x228] ss:$0 sps:$4 sm:$0xff]  }
  0xc9   :  { %262 = vrot.lane.b32.xlu0 %v7532_v43, %s7799_s17 }
  0xca   :  { %v8487_v59 = vpop.permute.xlu1 %552 }
  0xcb   :  { %v8489_v62 = vpop.permute.xlu0 %550 }
  0xcc   :  { %484 = vrot.lane.b32.xlu1 %v443_v53, %s7800_s19  ;;  %v808_v53 = vrot.slane %v806_v37, 1 }
  0xcd   :  { %482 = vrot.lane.b32.xlu0 %v436_v60, %s7800_s19  ;;  %v801_v60 = vrot.slane %v799_v42, 1 }
  0xce   :  { %v8496_v0 = vpop.permute.xlu1 %628 }
  0xcf   :  { %v8501_v4 = vpop.permute.xlu0 %626 }
  0xd0   :  { %488 = vrot.lane.b32.xlu1 %v457_v63, %s7800_s19  ;;  %v809_v63 = vor.u32 %v808_v53, %v804_v46 }
  0xd1   :  { %486 = vrot.lane.b32.xlu0 %v450_v11, %s7800_s19  ;;  %v802_v11 = vor.u32 %v801_v60, %v797_v54  ;;  %v7748_v54 = vld [vmem:[%s10119_s0 + $0x30] sm:$0xf] }
  0xd2   :  { %v8511_v7 = vpop.permute.xlu1 %632  ;;  %v1215_v60 = vsel %vm1194_vm1, %v7748_v54, %v8433_v49 }
  0xd3   :  { %v8519_v9 = vpop.permute.xlu0 %630 }
  0xd4   :  { %564 = vrot.lane.b32.xlu1 %v6312_v5, %s7801_s12  ;;  %v6231_v5 = vld [vmem:[%s10119_s0 + $0x70] sm:$0xf] }
  0xd5   :  { %562 = vrot.lane.b32.xlu0 %v6311_v6, %s7801_s12  ;;  %v7745_v6 = vld [vmem:[%s10119_s0 + $0x28] sm:$0xf] }
  0xd6   :  { %v8526_v56 = vpop.permute.xlu1 %820  ;;  %v1212_v50 = vsel %vm1194_vm1, %v7745_v6, %v8379_v47  ;;  %v6359_v47 = vcombine.low %v6231_v5, %v6231_v5 }
  0xd7   :  { %v8531_v20 = vpop.permute.xlu0 %818  ;;  %v1255_v14 = vsel %vm1243_vm2, %v1212_v50, %v8453_v3  ;;  %v6233_v3 = vld [vmem:[%s10119_s0 + $0x80] sm:$0xf] }
  0xd8   :  { %568 = vrot.lane.b32.xlu1 %v6314_v51, %s7801_s12  ;;  %v1209_v51 = vsel %vm1194_vm1, %v7746_v12, %v8386_v58  ;;  %v1288_v18 = vsel %vm1276_vm3, %v1255_v14, %v8481_v21  ;;  %v6263_v58 = vld [vmem:[%s10119_s0 + $0x74] sm:$0x1] }
  0xd9   :  { %566 = vrot.lane.b32.xlu0 %v6313_v16, %s7801_s12  ;;  %v1253_v16 = vsel %vm1243_vm2, %v1209_v51, %v8463_v31  ;;  %v1321_v24 = vsel %vm1309_vm4, %v1288_v18, %v8496_v0  ;;  %v8601_v31 = vcombine.low %v6232_v28, %v6264_v8  ;;  %v6391_v35 = vcombine.low %v6231_v5, %v6263_v58  ;;  %v6266_v0 = vld [vmem:[%s10119_s0 + $0x8c] sm:$0x1] }
  0xda   :  { %v8541_v32 = vpop.permute.xlu1 %824 }
  0xdb   :  { %v8543_v19 = vpop.permute.xlu0 %822  ;;  %v1144_v42 = vshll.u32 %v8601_v31, 16  ;;  %v1137_v28 = vshll.u32 %v6391_v35, 16  ;;  %v1142_v50 = vshrl.u32 %v8601_v31, 16 }
  0xdc   :  { %644 = vrot.lane.b32.xlu1 %v7545_v57, %s7802_s23  ;;  %v1286_v57 = vsel %vm1276_vm3, %v1253_v16, %v8483_v52 }
  0xdd   :  { %642 = vrot.lane.b32.xlu0 %v7546_v26, %s7802_s23  ;;  %v1319_v21 = vsel %vm1309_vm4, %v1286_v57, %v8501_v4  ;;  %v1354_v26 = vsel %vm1342_vm5, %v1321_v24, %v8526_v56  ;;  %v6265_v4 = vld [vmem:[%s10119_s0 + $0x84] sm:$0x1]  ;;  %v6361_v56 = vcombine.low %v6233_v3, %v6233_v3  ;;  %v1146_v8 = vrot.slane %v1144_v42, 1 }
  0xde   :  { %v901_v43 = vpop.permute.xlu1 %900  ;;  %v6393_v53 = vcombine.low %v6233_v3, %v6265_v4 }
  0xdf   :  { %v899_v44 = vpop.permute.xlu0 %898  ;;  %v1387_v52 = vsel %vm1375_vm6, %v1354_v26, %v901_v43  ;;  %v7747_v43 = vld [vmem:[%s10119_s0 + $0x38] sm:$0xf]  ;;  %v1147_v3 = vor.u32 %v1146_v8, %v1142_v50 }
  0xe0   :  { %648 = vrot.lane.b32.xlu1 %v7547_v34, %s7802_s23  ;;  %v1352_v34 = vsel %vm1342_vm5, %v1319_v21, %v8531_v20  ;;  %v1151_v14 = vshll.u32 %v6393_v53, 16 }
  0xe1   :  { %646 = vrot.lane.b32.xlu0 %v7548_v40, %s7802_s23  ;;  %v1385_v36 = vsel %vm1375_vm6, %v1352_v34, %v899_v44  ;;  %v6394_v44 = vcombine.low %v6234_v15, %v6266_v0 }
  0xe2   :  { %v8555_v61 = vpop.permute.xlu1 %904  ;;  %v1153_v26 = vrot.slane %v1151_v14, 1 }
  0xe3   :  { %v8557_v10 = vpop.permute.xlu0 %902  ;;  %v1156_v57 = vshrl.u32 %v6394_v44, 16 }
  0xe4   :  { %836 = vrot.lane.b32.xlu1 %v795_v45, %s7803_s28  ;;  %v1218_v45 = vsel %vm1194_vm1, %v7747_v43, %v8422_v22 }
  0xe5   :  { %834 = vrot.lane.b32.xlu0 %v788_v55, %s7803_s28  ;;  %v7557_v55 = vld [vmem:[%s10119_s0 + $0x108] ss:$0 sps:$4 sm:$0xff]   ;;  %v1259_v22 = vsel %vm1243_vm2, %v1218_v45, %v8469_v38 }
  0xe6   :  { %v981_v1 = vpop.permute.xlu1 %980  ;;  %v1292_v5 = vsel %vm1276_vm3, %v1259_v22, %v8487_v59 }
  0xe7   :  { %v979_v29 = vpop.permute.xlu0 %978  ;;  %v1420_v37 = vsel %vm1408_vm7, %v1387_v52, %v981_v1  ;;  %v1257_v1 = vsel %vm1243_vm2, %v1215_v60, %v8471_v39  ;;  %v1325_v38 = vsel %vm1309_vm4, %v1292_v5, %v8511_v7  ;;  %v1135_v7 = vshrl.u32 %v6391_v35, 16 }
  0xe8   :  { %840 = vrot.lane.b32.xlu1 %v809_v63, %s7803_s28  ;;  %v1418_v20 = vsel %vm1408_vm7, %v1385_v36, %v979_v29  ;;  %v1290_v49 = vsel %vm1276_vm3, %v1257_v1, %v8489_v62  ;;  %v1358_v59 = vsel %vm1342_vm5, %v1325_v38, %v8541_v32  ;;  %v7559_v62 = vld [vmem:[%s10119_s0 + $0x118] ss:$0 sps:$4 sm:$0xff]   ;;  %v1139_v32 = vrot.slane %v1137_v28, 1  ;;  %v7750_v1 = vld [vmem:[%s10119_s0 + $0x48] sm:$0xf] }
  0xe9   :  { %838 = vrot.lane.b32.xlu0 %v802_v11, %s7803_s28  ;;  %v7558_v11 = vld [vmem:[%s10119_s0 + $0x100] ss:$0 sps:$4 sm:$0xff]   ;;  %v1323_v39 = vsel %vm1309_vm4, %v1290_v49, %v8519_v9  ;;  %v1391_v51 = vsel %vm1375_vm6, %v1358_v59, %v8555_v61  ;;  %v7560_v9 = vld [vmem:[%s10119_s0 + $0x110] ss:$0 sps:$4 sm:$0xff]  }
  0xea   :  { %v985_v23 = vpop.permute.xlu1 %984  ;;  %v1356_v12 = vsel %vm1342_vm5, %v1323_v39, %v8543_v19  ;;  %v1140_v21 = vor.u32 %v1139_v32, %v1135_v7 }
  0xeb   :  { %v983_v2 = vpop.permute.xlu0 %982  ;;  %v1424_v15 = vsel %vm1408_vm7, %v1391_v51, %v985_v23 }
  0xec   :  { %916 = vrot.lane.b32.xlu1 %v6360_v33, %s7804_s25  ;;  %v1158_v33 = vshll.u32 %v6394_v44, 16 }
  0xed   :  { %914 = vrot.lane.b32.xlu0 %v6359_v47, %s7804_s25  ;;  %v1389_v47 = vsel %vm1375_vm6, %v1356_v12, %v8557_v10  ;;  %v1149_v10 = vshrl.u32 %v6393_v53, 16 }
  0xee   :  { %v1173_v40 = vpop.permute.xlu1 %1172  ;;  %v1422_v18 = vsel %vm1408_vm7, %v1389_v47, %v983_v2  ;;  %v1160_v24 = vrot.slane %v1158_v33, 1 }
  0xef   :  { %v1453_v30 = vsel %vm1441_vm8, %v1420_v37, %v1173_v40  ;;  %v1171_v41 = vpop.permute.xlu0 %1170  ;;  %v1154_v34 = vor.u32 %v1153_v26, %v1149_v10 }
  0xf0   :  { %v1451_v46 = vsel %vm1441_vm8, %v1418_v20, %v1171_v41  ;;  %920 = vrot.lane.b32.xlu1 %v6362_v17, %s7804_s25  ;;  %v1161_v17 = vor.u32 %v1160_v24, %v1156_v57 }
  0xf1   :  { %v6397_v63 = vcombine.low %v1451_v46, %v1453_v30  ;;  %918 = vrot.lane.b32.xlu0 %v6361_v56, %s7804_s25 }
  0xf2   :  { %v8648_v29 = vpop.permute.xlu1 %252 }
  0xf3   :  { %7355 = vmatprep.mubr.msk.bf16.mxu0 %vm1534_vm9, %v6397_v63  ;;  %v8655_v6 = vpop.permute.xlu0 %250 }
  0xf4   :  { %996 = vrot.lane.b32.xlu1 %v7557_v55, %s7805_s16  ;;  %v1221_v5 = vsel %vm1194_vm1, %v7750_v1, %v8655_v6 }
  0xf5   :  { %994 = vrot.lane.b32.xlu0 %v7558_v11, %s7805_s16  ;;  %v7749_v11 = vld [vmem:[%s10119_s0 + $0x50] sm:$0xf] }
  0xf6   :  { %v1177_v16 = vpop.permute.xlu1 %1176  ;;  %v1224_v28 = vsel %vm1194_vm1, %v7749_v11, %v8648_v29 }
  0xf7   :  { %v1457_v19 = vsel %vm1441_vm8, %v1424_v15, %v1177_v16  ;;  %v1175_v58 = vpop.permute.xlu0 %1174  ;;  %v7751_v15 = vld [vmem:[%s10119_s0 + $0x60] sm:$0xf] }
  0xf8   :  { %v1455_v61 = vsel %vm1441_vm8, %v1422_v18, %v1175_v58  ;;  %1000 = vrot.lane.b32.xlu1 %v7559_v62, %s7805_s16 }
  0xf9   :  { %v6398_v31 = vcombine.low %v1455_v61, %v1457_v19  ;;  %998 = vrot.lane.b32.xlu0 %v7560_v9, %s7805_s16  ;;  %v7752_v19 = vld [vmem:[%s10119_s0 + $0x58] sm:$0xf] }
  0xfa   :  { %v257_v23 = vpop.permute.xlu1 %256 }
  0xfb   :  { %7356 = vmatmul.mubr.msk.bf16.gmra.mrb[4].mxu0 %vm1534_vm9, %v6398_v31  ;;  %v255_v2 = vpop.permute.xlu0 %254  ;;  %v1230_v16 = vsel %vm1194_vm1, %v7751_v15, %v257_v23 }
  0xfc   :  { %1188 = vrot.lane.b32.xlu1 %v1147_v3, %s7806_s22  ;;  %v1227_v58 = vsel %vm1194_vm1, %v7752_v19, %v255_v2 }
  0xfd   :  { %1186 = vrot.lane.b32.xlu0 %v1140_v21, %s7806_s22 }
  0xfe   :  { %v477_v52 = vpop.permute.xlu1 %476 }
  0xff   :  { %v475_v35 = vpop.permute.xlu0 %474  ;;  %v1263_v49 = vsel %vm1243_vm2, %v1224_v28, %v477_v52 }
 0x100   :  { %1192 = vrot.lane.b32.xlu1 %v1161_v17, %s7806_s22  ;;  %v1261_v38 = vsel %vm1243_vm2, %v1221_v5, %v475_v35 }
 0x101   :  { %1190 = vrot.lane.b32.xlu0 %v1154_v34, %s7806_s22 }
 0x102   :  { %v481_v0 = vpop.permute.xlu1 %480 }
 0x103   :  { %v479_v4 = vpop.permute.xlu0 %478  ;;  %v1267_v61 = vsel %vm1243_vm2, %v1230_v16, %v481_v0 }
 0x104   :  { %v1265_v57 = vsel %vm1243_vm2, %v1227_v58, %v479_v4 }
 0x106   :  { %v557_v56 = vpop.permute.xlu1 %556 }
 0x107   :  { %v555_v36 = vpop.permute.xlu0 %554  ;;  %v1296_v50 = vsel %vm1276_vm3, %v1263_v49, %v557_v56 }
 0x108   :  { %v1294_v39 = vsel %vm1276_vm3, %v1261_v38, %v555_v36 }
 0x10a   :  { %v561_v37 = vpop.permute.xlu1 %560 }
 0x10b   :  { %v559_v40 = vpop.permute.xlu0 %558  ;;  %v1300_v24 = vsel %vm1276_vm3, %v1267_v61, %v561_v37 }
 0x10c   :  { %v1298_v21 = vsel %vm1276_vm3, %v1265_v57, %v559_v40 }
 0x10e   :  { %v637_v20 = vpop.permute.xlu1 %636 }
 0x10f   :  { %v635_v30 = vpop.permute.xlu0 %634  ;;  %v1329_v59 = vsel %vm1309_vm4, %v1296_v50, %v637_v20 }
 0x110   :  { %v1327_v29 = vsel %vm1309_vm4, %v1294_v39, %v635_v30 }
 0x112   :  { %v641_v41 = vpop.permute.xlu1 %640 }
 0x113   :  { %v639_v42 = vpop.permute.xlu0 %638  ;;  %v1333_v10 = vsel %vm1309_vm4, %v1300_v24, %v641_v41 }
 0x114   :  { %v1331_v23 = vsel %vm1309_vm4, %v1298_v21, %v639_v42 }
 0x116   :  { %v829_v43 = vpop.permute.xlu1 %828 }
 0x117   :  { %v827_v45 = vpop.permute.xlu0 %826  ;;  %v1362_v7 = vsel %vm1342_vm5, %v1329_v59, %v829_v43 }
 0x118   :  { %v1360_v33 = vsel %vm1342_vm5, %v1327_v29, %v827_v45 }
 0x11a   :  { %v833_v46 = vpop.permute.xlu1 %832 }
 0x11b   :  { %v831_v44 = vpop.permute.xlu0 %830  ;;  %v1366_v17 = vsel %vm1342_vm5, %v1333_v10, %v833_v46 }
 0x11c   :  { %v1364_v2 = vsel %vm1342_vm5, %v1331_v23, %v831_v44 }
 0x11e   :  { %v909_v53 = vpop.permute.xlu1 %908 }
 0x11f   :  { %v907_v55 = vpop.permute.xlu0 %906  ;;  %v1395_v6 = vsel %vm1375_vm6, %v1362_v7, %v909_v53 }
 0x120   :  { %v1393_v12 = vsel %vm1375_vm6, %v1360_v33, %v907_v55 }
 0x122   :  { %v913_v54 = vpop.permute.xlu1 %912 }
 0x123   :  { %v911_v60 = vpop.permute.xlu0 %910  ;;  %v1399_v34 = vsel %vm1375_vm6, %v1366_v17, %v913_v54 }
 0x124   :  { %v1397_v52 = vsel %vm1375_vm6, %v1364_v2, %v911_v60 }
 0x126   :  { %v989_v22 = vpop.permute.xlu1 %988 }
 0x127   :  { %v987_v63 = vpop.permute.xlu0 %986  ;;  %v1428_v51 = vsel %vm1408_vm7, %v1395_v6, %v989_v22 }
 0x128   :  { %v1426_v32 = vsel %vm1408_vm7, %v1393_v12, %v987_v63 }
 0x12a   :  { %v993_v8 = vpop.permute.xlu1 %992 }
 0x12b   :  { %v991_v62 = vpop.permute.xlu0 %990  ;;  %v1432_v35 = vsel %vm1408_vm7, %v1399_v34, %v993_v8 }
 0x12c   :  { %v1430_v4 = vsel %vm1408_vm7, %v1397_v52, %v991_v62 }
 0x12e   :  { %v1181_v9 = vpop.permute.xlu1 %1180 }
 0x12f   :  { %v1461_v14 = vsel %vm1441_vm8, %v1428_v51, %v1181_v9  ;;  %v1179_v47 = vpop.permute.xlu0 %1178 }
 0x130   :  { %v1459_v18 = vsel %vm1441_vm8, %v1426_v32, %v1179_v47 }
 0x131   :  { %v6399_v3 = vcombine.low %v1459_v18, %v1461_v14 }
 0x132   :  { %v261_v31 = vpop.permute.xlu1 %260 }
 0x133   :  { %7359 = vmatprep.mubr.msk.bf16.mxu0 %vm1534_vm9, %v6399_v3  ;;  %v259_v26 = vpop.permute.xlu0 %258  ;;  %v1236_v62 = vsel %vm1194_vm1, %v8417_v13, %v261_v31 }
 0x134   :  { %v1233_v29 = vsel %vm1194_vm1, %v8427_v48, %v259_v26 }
 0x136   :  { %v1185_v0 = vpop.permute.xlu1 %1184 }
 0x137   :  { %v1465_v56 = vsel %vm1441_vm8, %v1432_v35, %v1185_v0  ;;  %v1183_v36 = vpop.permute.xlu0 %1182 }
 0x138   :  { %v1463_v37 = vsel %vm1441_vm8, %v1430_v4, %v1183_v36 }
 0x139   :  { %v6400_v40 = vcombine.low %v1463_v37, %v1465_v56 }
 0x13a   :  { %v265_v20 = vpop.permute.xlu1 %264 }
 0x13b   :  { %7360 = vmatmul.mubr.msk.bf16.gmra.mrb[8].mxu0 %vm1534_vm9, %v6400_v40  ;;  %v263_v30 = vpop.permute.xlu0 %262  ;;  %v1242_v14 = vsel %vm1194_vm1, %v8448_v25, %v265_v20 }
 0x13c   :  { %v1239_v48 = vsel %vm1194_vm1, %v8458_v27, %v263_v30 }
 0x13e   :  { %v485_v41 = vpop.permute.xlu1 %484 }
 0x13f   :  { %v483_v42 = vpop.permute.xlu0 %482  ;;  %v1271_v7 = vsel %vm1243_vm2, %v1236_v62, %v485_v41 }
 0x140   :  { %v1269_v33 = vsel %vm1243_vm2, %v1233_v29, %v483_v42 }
 0x142   :  { %v489_v43 = vpop.permute.xlu1 %488 }
 0x143   :  { %v487_v45 = vpop.permute.xlu0 %486  ;;  %v1275_v15 = vsel %vm1243_vm2, %v1242_v14, %v489_v43  ;;  %v7563_v14 = vld [vmem:[%s10123_s4] sm:$0xff]  }
 0x144   :  { %v1273_v19 = vsel %vm1243_vm2, %v1239_v48, %v487_v45  ;;  %v7565_v48 = vld [vmem:[%s10123_s4 + $0x48] sm:$0xff]  }
 0x146   :  { %v565_v46 = vpop.permute.xlu1 %564 }
 0x147   :  { %v563_v44 = vpop.permute.xlu0 %562  ;;  %v1304_v6 = vsel %vm1276_vm3, %v1271_v7, %v565_v46 }
 0x148   :  { %v1302_v51 = vsel %vm1276_vm3, %v1269_v33, %v563_v44 }
 0x14a   :  { %v569_v53 = vpop.permute.xlu1 %568 }
 0x14b   :  { %v567_v55 = vpop.permute.xlu0 %566  ;;  %v1308_v58 = vsel %vm1276_vm3, %v1275_v15, %v569_v53  ;;  %v7568_v15 = vld [vmem:[%s10123_s4 + $0x88] sm:$0xff]  }
 0x14c   :  { %v1306_v57 = vsel %vm1276_vm3, %v1273_v19, %v567_v55  ;;  %v7570_v19 = vld [vmem:[%s10123_s4 + $0xd0] sm:$0xff]  }
 0x14e   :  { %v645_v54 = vpop.permute.xlu1 %644 }
 0x14f   :  { %v643_v60 = vpop.permute.xlu0 %642  ;;  %v1337_v9 = vsel %vm1309_vm4, %v1304_v6, %v645_v54 }
 0x150   :  { %v1335_v13 = vsel %vm1309_vm4, %v1302_v51, %v643_v60  ;;  %v7562_v51 = vld [vmem:[%s10123_s4 + $0xc0] sm:$0xff]  }
 0x151   :  { %7128 = vmatprep.subr.bf16.mxu0 %v7562_v51 }
 0x152   :  { %v649_v22 = vpop.permute.xlu1 %648 }
 0x153   :  { %v647_v63 = vpop.permute.xlu0 %646  ;;  %v1341_v24 = vsel %vm1309_vm4, %v1308_v58, %v649_v22  ;;  %v7571_v58 = vld [vmem:[%s10123_s4 + $0x10] sm:$0xff]  }
 0x154   :  { %v1339_v10 = vsel %vm1309_vm4, %v1306_v57, %v647_v63  ;;  %v7576_v57 = vld [vmem:[%s10123_s4 + $0x98] sm:$0xff]  }
 0x156   :  { %v837_v11 = vpop.permute.xlu1 %836 }
 0x157   :  { %v835_v28 = vpop.permute.xlu0 %834  ;;  %v1370_v47 = vsel %vm1342_vm5, %v1337_v9, %v837_v11  ;;  %v7561_v9 = vld [vmem:[%s10123_s4 + $0x40] sm:$0xff]  }
 0x158   :  { %v1368_v16 = vsel %vm1342_vm5, %v1335_v13, %v835_v28  ;;  %7064 = vmatprep.subr.bf16.mxu1 %v7561_v9  ;;  %v7566_v13 = vld [vmem:[%s10123_s4 + $0xc8] sm:$0xff]  }
 0x159   :  { %7065 = vmatpush3.bf16.msra.mxu1 %v7563_v14 }
 0x15a   :  { %v841_v1 = vpop.permute.xlu1 %840  ;;  %7066 = vmatprep.subr.bf16.mxu1 %v7565_v48 }
 0x15b   :  { %v839_v5 = vpop.permute.xlu0 %838  ;;  %v1374_v26 = vsel %vm1342_vm5, %v1341_v24, %v841_v1  ;;  %v7575_v24 = vld [vmem:[%s10123_s4 + $0x18] sm:$0xff]  }
 0x15c   :  { %v1372_v17 = vsel %vm1342_vm5, %v1339_v10, %v839_v5  ;;  %v7579_v10 = vld [vmem:[%s10123_s4 + $0x20] sm:$0xff]  }
 0x15e   :  { %v917_v49 = vpop.permute.xlu1 %916 }
 0x15f   :  { %v915_v38 = vpop.permute.xlu0 %914  ;;  %v1403_v18 = vsel %vm1375_vm6, %v1370_v47, %v917_v49  ;;  %v7807_v47 = vmov 0  }
 0x160   :  { %v1401_v61 = vsel %vm1375_vm6, %v1368_v16, %v915_v38  ;;  %1790 = vst [vmem:[#allocation2 + $0x4] sm:$0xf] %v7807_v47  ;;  %1791 = vst [vmem:[#allocation2 + $0x8] sm:$0xf] %v7807_v47  ;;  %v7567_v16 = vld [vmem:[%s10123_s4 + $0x8] sm:$0xff]  }
 0x161   :  { %1803 = vst [vmem:[#allocation2 + $0xc] sm:$0xf] %v7807_v47  ;;  %1804 = vst [vmem:[#allocation2 + $0x18] sm:$0xf] %v7807_v47  ;;  %7067 = vmatpush3.bf16.msra.mxu1 %v7567_v16 }
 0x162   :  { %v921_v50 = vpop.permute.xlu1 %920  ;;  %1819 = vst [vmem:[#allocation2 + $0x14] sm:$0xf] %v7807_v47  ;;  %1789 = vst [vmem:[#allocation2] sm:$0xf] %v7807_v47 }
 0x163   :  { %v919_v8 = vpop.permute.xlu0 %918  ;;  %v1407_v2 = vsel %vm1375_vm6, %v1374_v26, %v921_v50  ;;  %1792 = vst [vmem:[#allocation2 + $0x78] sm:$0xf] %v7807_v47  ;;  %1793 = vst [vmem:[#allocation2 + $0x7c] sm:$0xf] %v7807_v47  ;;  %v7582_v26 = vld [vmem:[%s10123_s4 + $0xe8] sm:$0xff]  }
 0x164   :  { %v1405_v52 = vsel %vm1375_vm6, %v1372_v17, %v919_v8  ;;  %1794 = vst [vmem:[#allocation2 + $0x80] sm:$0xf] %v7807_v47  ;;  %1796 = vst [vmem:[#allocation2 + $0x6c] sm:$0xf] %v7807_v47  ;;  %v7584_v17 = vld [vmem:[%s10123_s4 + $0xa8] sm:$0xff]  }
 0x165   :  { %1797 = vst [vmem:[#allocation2 + $0x70] sm:$0xf] %v7807_v47  ;;  %1798 = vst [vmem:[#allocation2 + $0x74] sm:$0xf] %v7807_v47 }
 0x166   :  { %v997_v39 = vpop.permute.xlu1 %996  ;;  %1799 = vst [vmem:[#allocation2 + $0xe4] sm:$0xf] %v7807_v47  ;;  %1800 = vst [vmem:[#allocation2 + $0xe8] sm:$0xf] %v7807_v47 }
 0x167   :  { %v995_v59 = vpop.permute.xlu0 %994  ;;  %v1436_v25 = vsel %vm1408_vm7, %v1403_v18, %v997_v39  ;;  %1801 = vst [vmem:[#allocation2 + $0xec] sm:$0xf] %v7807_v47  ;;  %1805 = vst [vmem:[#allocation2 + $0x24] sm:$0xf] %v7807_v47  ;;  %v7569_v18 = vld [vmem:[%s10123_s4 + $0x50] sm:$0xff]  }
 0x168   :  { %v1434_v27 = vsel %vm1408_vm7, %v1401_v61, %v995_v59  ;;  %1806 = vst [vmem:[#allocation2 + $0x30] sm:$0xf] %v7807_v47  ;;  %1807 = vst [vmem:[#allocation2 + $0x3c] sm:$0xf] %v7807_v47  ;;  %v7572_v61 = vld [vmem:[%s10123_s4 + $0x90] sm:$0xff]   ;;  %7068 = vmatprep.subr.bf16.mxu1 %v7569_v18 }
 0x169   :  { %1808 = vst [vmem:[#allocation2 + $0x48] sm:$0xf] %v7807_v47  ;;  %1809 = vst [vmem:[#allocation2 + $0x54] sm:$0xf] %v7807_v47  ;;  %7069 = vmatpush3.bf16.msra.mxu1 %v7571_v58 }
 0x16a   :  { %v1001_v12 = vpop.permute.xlu1 %1000  ;;  %1810 = vst [vmem:[#allocation2 + $0x60] sm:$0xf] %v7807_v47  ;;  %1811 = vst [vmem:[#allocation2 + $0x84] sm:$0xf] %v7807_v47 }
 0x16b   :  { %v999_v32 = vpop.permute.xlu0 %998  ;;  %v1440_v35 = vsel %vm1408_vm7, %v1407_v2, %v1001_v12  ;;  %1812 = vst [vmem:[#allocation2 + $0x90] sm:$0xf] %v7807_v47  ;;  %1813 = vst [vmem:[#allocation2 + $0x9c] sm:$0xf] %v7807_v47  ;;  %v7583_v2 = vld [vmem:[%s10123_s4 + $0x28] sm:$0xff]  }
 0x16c   :  { %v1438_v4 = vsel %vm1408_vm7, %v1405_v52, %v999_v32  ;;  %v7564_v32 = vld [vmem:[%s10123_s4 + $0x80] sm:$0xff]   ;;  %1814 = vst [vmem:[#allocation2 + $0xa8] sm:$0xf] %v7807_v47  ;;  %1815 = vst [vmem:[#allocation2 + $0xb4] sm:$0xf] %v7807_v47 }
 0x16d   :  { %7129 = vmatpush3.bf16.msra.mxu0 %v7564_v32  ;;  %1816 = vst [vmem:[#allocation2 + $0xc0] sm:$0xf] %v7807_v47  ;;  %1817 = vst [vmem:[#allocation2 + $0xcc] sm:$0xf] %v7807_v47 }
 0x16e   :  { %v1189_v3 = vpop.permute.xlu1 %1188  ;;  %1818 = vst [vmem:[#allocation2 + $0xd8] sm:$0xf] %v7807_v47  ;;  %1820 = vst [vmem:[#allocation2 + $0x20] sm:$0xf] %v7807_v47  ;;  %7130 = vmatprep.subr.bf16.mxu0 %v7566_v13 }
 0x16f   :  { %v1469_v31 = vsel %vm1441_vm8, %v1436_v25, %v1189_v3  ;;  %v1187_v21 = vpop.permute.xlu0 %1186  ;;  %1821 = vst [vmem:[#allocation2 + $0x2c] sm:$0xf] %v7807_v47  ;;  %1822 = vst [vmem:[#allocation2 + $0x38] sm:$0xf] %v7807_v47  ;;  %v7573_v25 = vld [vmem:[%s10123_s4 + $0x58] sm:$0xff]  }
 0x170   :  { %v1467_v23 = vsel %vm1441_vm8, %v1434_v27, %v1187_v21  ;;  %1823 = vst [vmem:[#allocation2 + $0x44] sm:$0xf] %v7807_v47  ;;  %1824 = vst [vmem:[#allocation2 + $0x50] sm:$0xf] %v7807_v47  ;;  %v7574_v3 = vld [vmem:[%s10123_s4 + $0xd8] sm:$0xff]   ;;  %v7578_v27 = vld [vmem:[%s10123_s4 + $0xe0] sm:$0xff]   ;;  %7070 = vmatprep.subr.bf16.mxu1 %v7573_v25 }
 0x171   :  { %v6401_v34 = vcombine.low %v1467_v23, %v1469_v31  ;;  %1825 = vst [vmem:[#allocation2 + $0x5c] sm:$0xf] %v7807_v47  ;;  %1826 = vst [vmem:[#allocation2 + $0x68] sm:$0xf] %v7807_v47  ;;  %7131 = vmatpush3.bf16.msra.mxu0 %v7568_v15  ;;  %v7577_v31 = vld [vmem:[%s10123_s4 + $0x60] sm:$0xff]   ;;  %7071 = vmatpush3.bf16.msra.mxu1 %v7575_v24  ;;  %v7581_v23 = vld [vmem:[%s10123_s4 + $0x68] sm:$0xff]  }
 0x172   :  { %v1193_v0 = vpop.permute.xlu1 %1192  ;;  %1827 = vst [vmem:[#allocation2 + $0x8c] sm:$0xf] %v7807_v47  ;;  %1828 = vst [vmem:[#allocation2 + $0x98] sm:$0xf] %v7807_v47  ;;  %7132 = vmatprep.subr.bf16.mxu0 %v7570_v19  ;;  %v7580_v21 = vld [vmem:[%s10123_s4 + $0xa0] sm:$0xff]   ;;  %7072 = vmatprep.subr.bf16.mxu1 %v7577_v31 }
 0x173   :  { %v1473_v56 = vsel %vm1441_vm8, %v1440_v35, %v1193_v0  ;;  %7363 = vmatprep.mubr.msk.bf16.mxu0 %vm1534_vm9, %v6401_v34  ;;  %v1191_v36 = vpop.permute.xlu0 %1190  ;;  %1829 = vst [vmem:[#allocation2 + $0xa4] sm:$0xf] %v7807_v47  ;;  %1830 = vst [vmem:[#allocation2 + $0xb0] sm:$0xf] %v7807_v47  ;;  %v7586_v34 = vld [vmem:[%s10123_s4 + $0xf0] sm:$0xff]  }
 0x174   :  { %v1471_v37 = vsel %vm1441_vm8, %v1438_v4, %v1191_v36  ;;  %1831 = vst [vmem:[#allocation2 + $0xbc] sm:$0xf] %v7807_v47  ;;  %1832 = vst [vmem:[#allocation2 + $0xc8] sm:$0xf] %v7807_v47  ;;  %v7585_v35 = vld [vmem:[%s10123_s4 + $0x70] sm:$0xff]  }
 0x175   :  { %v6402_v40 = vcombine.low %v1471_v37, %v1473_v56  ;;  %1833 = vst [vmem:[#allocation2 + $0xd4] sm:$0xf] %v7807_v47  ;;  %1834 = vst [vmem:[#allocation2 + $0xe0] sm:$0xf] %v7807_v47  ;;  %7133 = vmatpush3.bf16.msra.mxu0 %v7572_v61  ;;  %7073 = vmatpush3.bf16.msra.mxu1 %v7579_v10  ;;  %v7588_v37 = vld [vmem:[%s10123_s4 + $0xb0] sm:$0xff]  }
 0x176   :  { %7134 = vmatprep.subr.bf16.mxu0 %v7574_v3  ;;  %7074 = vmatprep.subr.bf16.mxu1 %v7581_v23  ;;  %v1916_v24 = vld [vmem:[#allocation2 + $0x4] sm:$0xf]  ;;  %v1932_v10 = vld [vmem:[#allocation2 + $0x7c] sm:$0xf] }
 0x177   :  { %7364 = vmatmul.mubr.msk.bf16.gmra.mrb[12].mxu0 %vm1534_vm9, %v6402_v40 }
 0x179   :  { %7135 = vmatpush3.bf16.msra.mxu0 %v7576_v57  ;;  %7075 = vmatpush3.bf16.msra.mxu1 %v7583_v2 }
 0x17a   :  { %7136 = vmatprep.subr.bf16.mxu0 %v7578_v27  ;;  %7076 = vmatprep.subr.bf16.mxu1 %v7585_v35 }
 0x17d   :  { %7137 = vmatpush3.bf16.msra.mxu0 %v7580_v21  ;;  %v6430_v21 = vcombine.low %v1916_v24, %v1916_v24 }
 0x17e   :  { %7138 = vmatprep.subr.bf16.mxu0 %v7582_v26  ;;  %v6438_v26 = vcombine.low %v1932_v10, %v1932_v10 }
 0x17f   :  { %v2141_v35 = vshrl.u32 %v6430_v21, 16 }
 0x181   :  { %7139 = vmatpush3.bf16.msra.mxu0 %v7584_v17 }
 0x182   :  { %7140 = vmatprep.subr.bf16.mxu0 %v7586_v34 }
 0x185   :  { %7141 = vmatpush3.bf16.msra.mxu0 %v7588_v37  ;;  %v2208_v37 = vshll.u32 %v6438_v26, 16 }
 0x18e   :  { %v8773_v20 = vpop.f32.mrb[0].mxu0 }
 0x18f   :  { %v8775_v30 = vpop.f32.mrb[1].mxu0  ;;  %v1685_v44 = vmul.f32 %v8773_v20, %v8773_v20 }
 0x190   :  { %v8777_v41 = vpop.f32.mrb[2].mxu0  ;;  %v1683_v43 = vmul.f32 %v8775_v30, %v8775_v30 }
 0x191   :  { %v8779_v42 = vpop.f32.mrb[3].mxu0  ;;  %v1686_v54 = vmul.f32 %v8777_v41, %v8777_v41 }
 0x192   :  { %v1662_v45 = vadd.f32 %v8779_v42, %v8775_v30  ;;  %v1684_v46 = vmul.f32 %v8779_v42, %v8779_v42 }
 0x194   :  { %v1663_v53 = vadd.f32 %v8773_v20, %v1662_v45  ;;  %v1699_v55 = vadd.f32 %v1684_v46, %v1683_v43  ;;  %v7587_v43 = vld [vmem:[%s10123_s4 + $0x30] sm:$0xff]   ;;  %v7590_v45 = vld [vmem:[%s10123_s4 + $0xf8] sm:$0xff]  }
 0x195   :  { %7077 = vmatpush3.bf16.msra.mxu1 %v7587_v43  ;;  %7142 = vmatprep.subr.bf16.mxu0 %v7590_v45 }
 0x196   :  { %v1700_v60 = vadd.f32 %v1699_v55, %v1685_v44  ;;  %v1664_v22 = vadd.f32 %v8777_v41, %v1663_v53  ;;  %v7589_v55 = vld [vmem:[%s10123_s4 + $0x78] sm:$0xff]  }
 0x197   :  { %7078 = vmatprep.subr.bf16.mxu1 %v7589_v55 }
 0x198   :  { %v1701_v63 = vadd.f32 %v1700_v60, %v1686_v54 }
 0x1ce   :  { %v8793_v11 = vpop.f32.mrb[4].mxu0 }
 0x1cf   :  { %v8795_v28 = vpop.f32.mrb[5].mxu0  ;;  %v1689_v59 = vmul.f32 %v8793_v11, %v8793_v11 }
 0x1d0   :  { %v1665_v1 = vadd.f32 %v1664_v22, %v8795_v28  ;;  %v1687_v5 = vmul.f32 %v8795_v28, %v8795_v28  ;;  %v8800_v49 = vpop.f32.mrb[6].mxu0 }
 0x1d1   :  { %v8802_v38 = vpop.f32.mrb[7].mxu0  ;;  %v1690_v7 = vmul.f32 %v8800_v49, %v8800_v49 }
 0x1d2   :  { %v1702_v50 = vadd.f32 %v1701_v63, %v1687_v5  ;;  %v1666_v8 = vadd.f32 %v1665_v1, %v8802_v38  ;;  %v1688_v39 = vmul.f32 %v8802_v38, %v8802_v38  ;;  %v7592_v63 = vld [vmem:[%s10123_s4 + $0xb8] sm:$0xff]  }
 0x1d3   :  { %v7591_v1 = vld [vmem:[%s10123_s4 + $0x38] sm:$0xff]   ;;  %7143 = vmatpush3.bf16.msra.mxu0 %v7592_v63 }
 0x1d4   :  { %v1667_v62 = vadd.f32 %v8793_v11, %v1666_v8  ;;  %v1703_v29 = vadd.f32 %v1702_v50, %v1688_v39  ;;  %7079 = vmatpush3.bf16.msra.mxu1 %v7591_v1 }
 0x1d6   :  { %v1704_v33 = vadd.f32 %v1703_v29, %v1689_v59  ;;  %v8813_v6 = vadd.f32 %v8800_v49, %v1667_v62  ;;  %v7596_v59 = vld [vmem:[%s10123_s4 + $0x140] sm:$0xff]  }
 0x1d7   :  { %7192 = vmatprep.subr.bf16.mxu1 %v7596_v59  ;;  %v7602_v62 = vld [vmem:[%s10123_s4 + $0x1c0] sm:$0xff]  }
 0x1d8   :  { %v8815_v12 = vadd.f32 %v1704_v33, %v1690_v7  ;;  %7256 = vmatprep.subr.bf16.mxu0 %v7602_v62  ;;  %v1915_v59 = vld [vmem:[#allocation2] sm:$0x8] }
 0x20e   :  { %v8892_v52 = vpop.f32.mrb[8].mxu0 }
 0x20f   :  { %v8897_v0 = vpop.f32.mrb[9].mxu0  ;;  %v1693_v54 = vmul.f32 %v8892_v52, %v8892_v52 }
 0x210   :  { %v1669_v4 = vadd.f32 %v8813_v6, %v8897_v0  ;;  %v1691_v56 = vmul.f32 %v8897_v0, %v8897_v0  ;;  %v8903_v36 = vpop.f32.mrb[10].mxu0 }
 0x211   :  { %v8908_v40 = vpop.f32.mrb[11].mxu0  ;;  %v1694_v5 = vmul.f32 %v8903_v36, %v8903_v36 }
 0x212   :  { %v1706_v46 = vadd.f32 %v8815_v12, %v1691_v56  ;;  %v1670_v44 = vadd.f32 %v1669_v4, %v8908_v40  ;;  %v1692_v53 = vmul.f32 %v8908_v40, %v8908_v40  ;;  %v2144_v4 = vshll.u32 %v6430_v21, 16 }
 0x213   :  { %v2205_v56 = vshrl.u32 %v6438_v26, 16 }
 0x214   :  { %v1671_v60 = vadd.f32 %v8892_v52, %v1670_v44  ;;  %v1707_v22 = vadd.f32 %v1706_v46, %v1692_v53  ;;  %v2143_v53 = vrot.slane %v2141_v35, 4  ;;  %v2146_v55 = vrot.slane %v2144_v4, 5 }
 0x216   :  { %v1708_v50 = vadd.f32 %v1707_v22, %v1693_v54  ;;  %v1672_v8 = vadd.f32 %v8903_v36, %v1671_v60  ;;  %v2207_v54 = vrot.slane %v2205_v56, 4  ;;  %v2210_v60 = vrot.slane %v2208_v37, 5 }
 0x217   :  { %v2147_v1 = vor.u32 %v2146_v55, %v2143_v53 }
 0x218   :  { %v1709_v39 = vadd.f32 %v1708_v50, %v1694_v5  ;;  %v2211_v5 = vor.u32 %v2210_v60, %v2207_v54  ;;  %v1730_v50 = vlaneseq }
 0x219   :  { %v6532_v62 = vsel %vm6531_vm10, %v1916_v24, %v2147_v1 }
 0x24a   :  { %v8941_v29 = vpop.f32.mrb[12].mxu0 }
 0x24b   :  { %v8943_v7 = vpop.f32.mrb[13].mxu0  ;;  %v1697_v13 = vmul.f32 %v8941_v29, %v8941_v29 }
 0x24c   :  { %v1673_v33 = vadd.f32 %v1672_v8, %v8943_v7  ;;  %v1695_v6 = vmul.f32 %v8943_v7, %v8943_v7  ;;  %v8948_v12 = vpop.f32.mrb[14].mxu0  ;;  %v1947_v8 = vld [vmem:[#allocation2 + $0x8] sm:$0x1] }
 0x24d   :  { %v8950_v51 = vpop.f32.mrb[15].mxu0  ;;  %v1698_v15 = vmul.f32 %v8948_v12, %v8948_v12 }
 0x24e   :  { %v1710_v9 = vadd.f32 %v1709_v39, %v1695_v6  ;;  %v1674_v32 = vadd.f32 %v1673_v33, %v8950_v51  ;;  %v1696_v14 = vmul.f32 %v8950_v51, %v8950_v51  ;;  %v1955_v39 = vld [vmem:[#allocation2 + $0x80] sm:$0x1]  ;;  %v6446_v33 = vcombine.low %v1916_v24, %v1947_v8  ;;  %v1931_v6 = vld [vmem:[#allocation2 + $0x78] sm:$0x8] }
 0x250   :  { %v1675_v47 = vadd.f32 %v8941_v29, %v1674_v32  ;;  %v1711_v48 = vadd.f32 %v1710_v9, %v1696_v14  ;;  %v6620_v9 = vsel %vm6531_vm10, %v1932_v10, %v2211_v5  ;;  %v1731_v32 = vshrl.u32 %v1730_v50, 7 }
 0x251   :  { %v6454_v14 = vcombine.low %v1932_v10, %v1955_v39 }
 0x252   :  { %v1676_v16 = vadd.f32 %v8948_v12, %v1675_v47  ;;  %v1712_v18 = vadd.f32 %v1711_v48, %v1697_v13  ;;  %v6526_v13 = vcombine.low %v1915_v59, %v2147_v1  ;;  %v3237_v47 = vshrl.u32 %v6532_v62, 16  ;;  %v1963_v48 = vld [vmem:[#allocation2 + $0xc] sm:$0x8] }
 0x254   :  { %v1677_v19 = vrot.slane %v1676_v16, 4  ;;  %v1713_v58 = vadd.f32 %v1712_v18, %v1698_v15  ;;  %v6614_v15 = vcombine.low %v1931_v6, %v2211_v5  ;;  %v8963_v18 = vrot.slane %v6446_v33, 5 }
 0x255   :  { %v3239_v24 = vrot.slane %v3237_v47, 7 }
 0x256   :  { %v1678_v61 = vadd.f32 %v1677_v19, %v1676_v16  ;;  %v1714_v25 = vrot.slane %v1713_v58, 4  ;;  %v3757_v16 = vshrl.u32 %v6620_v9, 16  ;;  %v1979_v19 = vld [vmem:[#allocation2 + $0x84] sm:$0x8]  ;;  %v8976_v10 = vshrl.u32 %v6614_v15, 16 }
 0x258   :  { %v1679_v3 = vrot.slane %v1678_v61, 2  ;;  %v1715_v57 = vadd.f32 %v1714_v25, %v1713_v58  ;;  %v1660_v58 = vld [vmem:[%s10121_s2] sm:$0x1]  ;;  %v8970_v25 = vrot.slane %v6454_v14, 5  ;;  %v3759_v26 = vrot.slane %v3757_v16, 7 }
 0x25a   :  { %v1680_v27 = vadd.f32 %v1679_v3, %v1678_v61  ;;  %v1716_v31 = vrot.slane %v1715_v57, 2  ;;  %v8968_v61 = vsub.s32 0, %v1731_v32  ;;  %v6527_v3 = vcombine.low %v8963_v18, %v1963_v48 }
 0x25b   :  { %v6615_v21 = vcombine.low %v8970_v25, %v1979_v19 }
 0x25c   :  { %v1681_v23 = vrot.slane %v1680_v27, 1  ;;  %v1717_v17 = vadd.f32 %v1716_v31, %v1715_v57  ;;  %10132 = vst [vmem:[#allocation6_spill] sm:$0xff] %v8968_v61  ;;  %v8973_v57 = vshrl.u32 %v6526_v13, 16  ;;  %v8984_v4 = vshrl.u32 %v6527_v3, 16 }
 0x25e   :  { %v1682_v2 = vadd.f32 %v1681_v23, %v1680_v27  ;;  %v1718_v34 = vrot.slane %v1717_v17, 1  ;;  %v3240_v27 = vshll.u32 %v6532_v62, 16  ;;  %v3760_v23 = vshll.u32 %v6620_v9, 16 }
 0x25f   :  { %v6702_v56 = vrot.slane %v8973_v57, 11 }
 0x260   :  { %v1719_v43 = vadd.f32 %v1718_v34, %v1717_v17  ;;  %v1720_v45 = vmul.f32 0.0078125, %v1682_v2  ;;  %v1661_v2 = vld [vmem:[%s10122_s3] sm:$0x1]  ;;  %v8987_v37 = vor.u32 %v3240_v27, %v3239_v24 }
 0x262   :  { %v1721_v46 = vmul.f32 0.0078125, %v1719_v43  ;;  %v1722_v44 = vmul.f32 %v1720_v45, %v1720_v45  ;;  %v8989_v43 = vshrl.u32 %v6615_v21, 16 }
 0x264   :  { %v1723_v22 = vsub.f32 %v1721_v46, %v1722_v44  ;;  %v6742_v46 = vrot.slane %v8976_v10, 11  ;;  %v8992_v44 = vor.u32 %v3760_v23, %v3759_v26 }
 0x266   :  { %v1724_v63 = vadd.f32 1e-05, %v1723_v22 }
 0x268   :  { %7735 = vrsqrt.f32 %v1724_v63 }
 0x272   :  { %v7736_v31 = vpop.eup %7735 }
 0x273   :  { %v1726_v17 = vmul.f32 %v7736_v31, %v1660_v58 }
 0x275   :  { %v1727_v34 = vmul.f32 %v1726_v17, %v1720_v45  ;;  %v8982_v35 = vrot.slane %v1726_v17, %v8968_v61 }
 0x277   :  { %v1728_v53 = vsub.f32 %v1661_v2, %v1727_v34  ;;  %v1748_v55 = vmul.f32 %v8982_v35, %v8950_v51  ;;  %v1735_v45 = vmul.f32 %v8982_v35, %v8775_v30  ;;  %v1736_v54 = vmul.f32 %v8982_v35, %v8779_v42 }
 0x278   :  { %v1737_v60 = vmul.f32 %v8773_v20, %v8982_v35  ;;  %v1738_v22 = vmul.f32 %v8777_v41, %v8982_v35  ;;  %v1739_v63 = vmul.f32 %v8982_v35, %v8795_v28  ;;  %v1740_v1 = vmul.f32 %v8982_v35, %v8802_v38 }
 0x279   :  { %v9009_v51 = vrot.slane %v1728_v53, %v8968_v61  ;;  %v1741_v30 = vmul.f32 %v8793_v11, %v8982_v35  ;;  %v1742_v42 = vmul.f32 %v8800_v49, %v8982_v35  ;;  %v1743_v20 = vmul.f32 %v8982_v35, %v8897_v0 }
 0x27a   :  { %v1744_v41 = vmul.f32 %v8982_v35, %v8908_v40  ;;  %v1745_v28 = vmul.f32 %v8892_v52, %v8982_v35  ;;  %v1746_v38 = vmul.f32 %v8903_v36, %v8982_v35  ;;  %v1747_v5 = vmul.f32 %v8982_v35, %v8943_v7 }
 0x27b   :  { %v1770_v11 = vadd.f32 %v9009_v51, %v1748_v55  ;;  %v1757_v50 = vadd.f32 %v9009_v51, %v1735_v45  ;;  %v1758_v49 = vadd.f32 %v9009_v51, %v1736_v54  ;;  %v1759_v0 = vadd.f32 %v9009_v51, %v1737_v60 }
 0x27c   :  { %v1760_v40 = vadd.f32 %v9009_v51, %v1738_v22  ;;  %v1761_v52 = vadd.f32 %v9009_v51, %v1739_v63  ;;  %v1762_v8 = vadd.f32 %v9009_v51, %v1740_v1  ;;  %v1763_v36 = vadd.f32 %v9009_v51, %v1741_v30 }
 0x27d   :  { %v1786_v39 = vmax.f32 %v1770_v11, 0.0  ;;  %v1773_v7 = vmax.f32 %v1757_v50, 0.0  ;;  %v1774_v59 = vmax.f32 %v1758_v49, 0.0  ;;  %v1775_v62 = vmax.f32 %v1759_v0, 0.0  ;;  %v1950_v11 = vld [vmem:[#allocation2 + $0x2c] sm:$0x1] }
 0x27e   :  { %v1776_v33 = vmax.f32 %v1760_v40, 0.0  ;;  %v1777_v6 = vmax.f32 %v1761_v52, 0.0  ;;  %v1778_v9 = vmax.f32 %v1762_v8, 0.0  ;;  %v1764_v32 = vadd.f32 %v9009_v51, %v1742_v42  ;;  %v1948_v42 = vld [vmem:[#allocation2 + $0x14] sm:$0x1] }
 0x27f   :  { %v6987_v14 = vpack.c.bf16 %v1786_v39, %v1786_v39  ;;  %v6974_v13 = vpack.c.bf16 %v1773_v7, %v1773_v7  ;;  %v6975_v47 = vpack.c.bf16 %v1774_v59, %v1774_v59  ;;  %v6976_v48 = vpack.c.bf16 %v1775_v62, %v1775_v62  ;;  %v1965_v62 = vld [vmem:[#allocation2 + $0x18] sm:$0x8] }
 0x280   :  { %v6977_v15 = vpack.c.bf16 %v1776_v33, %v1776_v33  ;;  %v6978_v16 = vpack.c.bf16 %v1777_v6, %v1777_v6  ;;  %v6979_v19 = vpack.c.bf16 %v1778_v9, %v1778_v9  ;;  %v1779_v58 = vmax.f32 %v1763_v36, 0.0 }
 0x281   :  { %1912 = vst [vmem:[#allocation2 + $0xc4] sm:$0xf] %v6987_v14  ;;  %1899 = vst [vmem:[#allocation2 + $0x10] sm:$0xf] %v6974_v13  ;;  %v1780_v3 = vmax.f32 %v1764_v32, 0.0  ;;  %v1765_v24 = vadd.f32 %v9009_v51, %v1743_v20  ;;  %v1766_v27 = vadd.f32 %v9009_v51, %v1744_v41  ;;  %v1767_v31 = vadd.f32 %v9009_v51, %v1745_v28 }
 0x282   :  { %1900 = vst [vmem:[#allocation2 + $0x1c] sm:$0xf] %v6975_v47  ;;  %1901 = vst [vmem:[#allocation2 + $0x28] sm:$0xf] %v6976_v48  ;;  %v6980_v21 = vpack.c.bf16 %v1779_v58, %v1779_v58  ;;  %v1768_v26 = vadd.f32 %v9009_v51, %v1746_v38  ;;  %v1769_v23 = vadd.f32 %v9009_v51, %v1747_v5  ;;  %v2883_v38 = vunpack.c.h.b16 %v8963_v18  ;;  %v1967_v47 = vld [vmem:[#allocation2 + $0x24] sm:$0x8] }
 0x283   :  { %1902 = vst [vmem:[#allocation2 + $0x34] sm:$0xf] %v6977_v15  ;;  %1903 = vst [vmem:[#allocation2 + $0x40] sm:$0xf] %v6978_v16  ;;  %v1749_v17 = vmul.f32 %v8941_v29, %v8982_v35  ;;  %v6981_v2 = vpack.c.bf16 %v1780_v3, %v1780_v3  ;;  %v1781_v34 = vmax.f32 %v1765_v24, 0.0  ;;  %v1782_v53 = vmax.f32 %v1766_v27, 0.0 }
 0x284   :  { %1904 = vst [vmem:[#allocation2 + $0x4c] sm:$0xf] %v6979_v19  ;;  %v1783_v55 = vmax.f32 %v1767_v31, 0.0  ;;  %1905 = vst [vmem:[#allocation2 + $0x58] sm:$0xf] %v6980_v21  ;;  %v1784_v45 = vmax.f32 %v1768_v26, 0.0  ;;  %v1750_v60 = vmul.f32 %v8948_v12, %v8982_v35  ;;  %v9061_v18 = vsel %vm9050_vm13, %v6702_v56, %v8987_v37 }
 0x285   :  { %v1785_v54 = vmax.f32 %v1769_v23, 0.0  ;;  %v1771_v22 = vadd.f32 %v9009_v51, %v1749_v17  ;;  %1906 = vst [vmem:[#allocation2 + $0x64] sm:$0xf] %v6981_v2  ;;  %v6982_v63 = vpack.c.bf16 %v1781_v34, %v1781_v34  ;;  %v6983_v1 = vpack.c.bf16 %v1782_v53, %v1782_v53  ;;  %v1949_v35 = vld [vmem:[#allocation2 + $0x20] sm:$0x1] }
 0x286   :  { %v6984_v30 = vpack.c.bf16 %v1783_v55, %v1783_v55  ;;  %v6985_v20 = vpack.c.bf16 %v1784_v45, %v1784_v45  ;;  %v9045_v29 = vadd.f32 %v9009_v51, %v1750_v60  ;;  %v6703_v12 = vrot.slane %v8984_v4, 11  ;;  %v1969_v31 = vld [vmem:[#allocation2 + $0x30] sm:$0x8]  ;;  %v1917_v55 = vld [vmem:[#allocation2 + $0xc] sm:$0x8] }
 0x287   :  { %v6986_v41 = vpack.c.bf16 %v1785_v54, %v1785_v54  ;;  %v1787_v28 = vmax.f32 %v1771_v22, 0.0  ;;  %1907 = vst [vmem:[#allocation2 + $0x88] sm:$0xf] %v6982_v63  ;;  %1908 = vst [vmem:[#allocation2 + $0x94] sm:$0xf] %v6983_v1  ;;  %v6743_v50 = vrot.slane %v8989_v43, 11  ;;  %v2979_v40 = vunpack.c.h.b16 %v8970_v25 }
 0x288   :  { %1909 = vst [vmem:[#allocation2 + $0xa0] sm:$0xf] %v6984_v30  ;;  %v1918_v51 = vld [vmem:[#allocation2 + $0x10] sm:$0xf]  ;;  %v9069_v52 = vsel %vm9050_vm13, %v6742_v46, %v8992_v44  ;;  %1910 = vst [vmem:[#allocation2 + $0xac] sm:$0xf] %v6985_v20 }
 0x289   :  { %v1964_v49 = vld [vmem:[#allocation2 + $0x10] sm:$0xf]  ;;  %v1966_v0 = vld [vmem:[#allocation2 + $0x1c] sm:$0xf]  ;;  %1911 = vst [vmem:[#allocation2 + $0xb8] sm:$0xf] %v6986_v41  ;;  %v6988_v8 = vpack.c.bf16 %v1787_v28, %v1787_v28  ;;  %v6447_v36 = vcombine.low %v1918_v51, %v1948_v42  ;;  %v6431_v57 = vcombine.low %v1918_v51, %v1918_v51 }
 0x28a   :  { %v2365_v39 = vunpack.c.l.b16 %v1964_v49  ;;  %v2367_v7 = vunpack.c.l.b16 %v1966_v0  ;;  %v9071_v59 = vld [vmem:[#allocation2 + $0x1c] sm:$0xf]  ;;  %v9073_v56 = vld [vmem:[#allocation2 + $0x28] sm:$0xf]  ;;  %v1970_v33 = vld [vmem:[#allocation2 + $0x34] sm:$0xf] }
 0x28b   :  { %v1968_v37 = vld [vmem:[#allocation2 + $0x28] sm:$0xf]  ;;  %v6448_v10 = vcombine.low %v9071_v59, %v1949_v35  ;;  %v6449_v6 = vcombine.low %v9073_v56, %v1950_v11  ;;  %v9079_v44 = vcombine.low %v9071_v59, %v9071_v59  ;;  %1913 = vst [vmem:[#allocation2 + $0xd0] sm:$0xf] %v6988_v8  ;;  %v2317_v9 = vrot.slane %v6447_v36, 5 }
 0x28c   :  { %v2369_v46 = vunpack.c.l.b16 %v1968_v37  ;;  %v3074_v32 = vpack.c.b16 %v2365_v39, %v2883_v38  ;;  %v2149_v14 = vshrl.u32 %v6431_v57, 16  ;;  %v2152_v13 = vshll.u32 %v6431_v57, 16 }
 0x28d   :  { %v2318_v48 = vrot.slane %v6448_v10, 5  ;;  %v2319_v15 = vrot.slane %v6449_v6, 5  ;;  %v2371_v16 = vunpack.c.l.b16 %v1970_v33  ;;  %v9083_v19 = vcombine.low %v9073_v56, %v9073_v56 }
 0x28e   :  { %v2895_v58 = vunpack.c.h.b16 %v2317_v9  ;;  %v6538_v3 = vcombine.low %v2317_v9, %v1965_v62  ;;  %v3250_v24 = vshrl.u32 %v3074_v32, 16  ;;  %v3253_v27 = vshll.u32 %v3074_v32, 16 }
 0x28f   :  { %v2151_v21 = vrot.slane %v2149_v14, 4  ;;  %v2154_v26 = vrot.slane %v2152_v13, 5  ;;  %v2907_v23 = vunpack.c.h.b16 %v2318_v48  ;;  %v2919_v17 = vunpack.c.h.b16 %v2319_v15  ;;  %v9093_v13 = vld [vmem:[#allocation2 + $0x34] sm:$0xf] }
 0x290   :  { %v3084_v2 = vpack.c.b16 %v2367_v7, %v2895_v58  ;;  %v3252_v34 = vrot.slane %v3250_v24, 7  ;;  %v3310_v53 = vshrl.u32 %v6538_v3, 16  ;;  %v6549_v45 = vcombine.low %v2318_v48, %v1967_v47  ;;  %v1951_v47 = vld [vmem:[#allocation2 + $0x38] sm:$0x1]  ;;  %v7603_v3 = vld [vmem:[%s10123_s4 + $0x180] sm:$0xff]  }
 0x291   :  { %v2155_v54 = vor.u32 %v2154_v26, %v2151_v21  ;;  %v3094_v60 = vpack.c.b16 %v2369_v46, %v2907_v23  ;;  %v6560_v22 = vcombine.low %v2319_v15, %v1969_v31  ;;  %v3104_v63 = vpack.c.b16 %v2371_v16, %v2919_v17  ;;  %v9102_v24 = vld [vmem:[#allocation2 + $0x40] sm:$0xf]  ;;  %v7610_v17 = vld [vmem:[%s10123_s4 + $0x1c8] sm:$0xff]  }
 0x292   :  { %v3255_v1 = vor.u32 %v3253_v27, %v3252_v34  ;;  %v6708_v30 = vrot.slane %v3310_v53, 11  ;;  %v3315_v42 = vshrl.u32 %v3084_v2, 16  ;;  %v3318_v20 = vshll.u32 %v3084_v2, 16  ;;  %v1952_v27 = vld [vmem:[#allocation2 + $0x44] sm:$0x1] }
 0x293   :  { %v6537_v41 = vcombine.low %v1917_v55, %v2155_v54  ;;  %v6543_v28 = vsel %vm6531_vm10, %v1918_v51, %v2155_v54  ;;  %v3375_v38 = vshrl.u32 %v6549_v45, 16  ;;  %v3380_v35 = vshrl.u32 %v3094_v60, 16  ;;  %v7599_v53 = vld [vmem:[%s10123_s4 + $0x100] sm:$0xff]   ;;  %v1919_v55 = vld [vmem:[#allocation2 + $0x18] sm:$0x8] }
 0x294   :  { %v3256_v11 = vsel %vm9050_vm13, %v6703_v12, %v3255_v1  ;;  %v3317_v49 = vrot.slane %v3315_v42, 7  ;;  %v3302_v0 = vshrl.u32 %v6543_v28, 16  ;;  %v3305_v8 = vshll.u32 %v6543_v28, 16  ;;  %v1972_v54 = vld [vmem:[#allocation2 + $0x40] sm:$0xf] }
 0x295   :  { %v3297_v36 = vshrl.u32 %v6537_v41, 16  ;;  %v6713_v39 = vrot.slane %v3375_v38, 11  ;;  %v3382_v7 = vrot.slane %v3380_v35, 7  ;;  %v3383_v57 = vshll.u32 %v3094_v60, 16  ;;  %v1973_v28 = vld [vmem:[#allocation2 + $0x48] sm:$0x8] }
 0x296   :  { %v3320_v37 = vor.u32 %v3318_v20, %v3317_v49  ;;  %v3304_v62 = vrot.slane %v3302_v0, 7  ;;  %v3440_v33 = vshrl.u32 %v6560_v22, 16  ;;  %v3445_v10 = vshrl.u32 %v3104_v63, 16  ;;  %v7611_v35 = vld [vmem:[%s10123_s4 + $0x188] sm:$0xff]  }
 0x297   :  { %v6707_v6 = vrot.slane %v3297_v36, 11  ;;  %v3385_v51 = vor.u32 %v3383_v57, %v3382_v7  ;;  %v3448_v46 = vshll.u32 %v3104_v63, 16  ;;  %v2157_v9 = vshrl.u32 %v9079_v44, 16 }
 0x298   :  { %v3321_v4 = vsel %vm9050_vm13, %v6708_v30, %v3320_v37  ;;  %v3307_v12 = vor.u32 %v3305_v8, %v3304_v62  ;;  %v6718_v32 = vrot.slane %v3440_v33, 11  ;;  %v3447_v14 = vrot.slane %v3445_v10, 7  ;;  %v1971_v30 = vld [vmem:[#allocation2 + $0x3c] sm:$0x8]  ;;  %v7607_v62 = vld [vmem:[%s10123_s4 + $0x108] sm:$0xff]  }
 0x299   :  { %v6784_v48 = vcombine.low %v3256_v11, %v3321_v4  ;;  %v6785_v15 = vcombine.high %v3256_v11, %v3321_v4  ;;  %v9097_v16 = vsel %vm9050_vm13, %v6713_v39, %v3385_v51  ;;  %v2159_v58 = vrot.slane %v2157_v9, 4  ;;  %v1921_v11 = vld [vmem:[#allocation2 + $0x24] sm:$0x8]  ;;  %v7618_v39 = vld [vmem:[%s10123_s4 + $0x1d0] sm:$0xff]  }
 0x29a   :  { %v3308_v31 = vsel %vm9050_vm13, %v6707_v6, %v3307_v12  ;;  %v3450_v21 = vor.u32 %v3448_v46, %v3447_v14  ;;  %v2160_v26 = vshll.u32 %v9079_v44, 16  ;;  %v2165_v23 = vshrl.u32 %v9083_v19, 16  ;;  %v1974_v44 = vld [vmem:[#allocation2 + $0x4c] sm:$0xf]  ;;  %v7612_v9 = vld [vmem:[%s10123_s4 + $0x150] sm:$0xff]  }
 0x29b   :  { %5264 = vmatprep.mubr.bf16.mxu0 %v6785_v15  ;;  %v6782_v2 = vcombine.low %v9061_v18, %v3308_v31  ;;  %v6783_v34 = vcombine.high %v9061_v18, %v3308_v31  ;;  %v2168_v45 = vshll.u32 %v9083_v19, 16  ;;  %v6450_v60 = vcombine.low %v9093_v13, %v1951_v47  ;;  %v7604_v18 = vld [vmem:[%s10123_s4 + $0x148] sm:$0xff]   ;;  %v7619_v47 = vld [vmem:[%s10123_s4 + $0x190] sm:$0xff]  }
 0x29c   :  { %5265 = vmatmul.mubr.bf16.vlgmr.msra.gmra.mrb[16].mxu0 %v6784_v48  ;;  %v3451_v22 = vsel %vm9050_vm13, %v6718_v32, %v3450_v21  ;;  %v2162_v63 = vrot.slane %v2160_v26, 5  ;;  %v2167_v1 = vrot.slane %v2165_v23, 4  ;;  %v6451_v42 = vcombine.low %v9102_v24, %v1952_v27  ;;  %v7615_v21 = vld [vmem:[%s10123_s4 + $0x110] sm:$0xff]  }
 0x29d   :  { %5167 = vmatprep.mubr.bf16.mxu1 %v6783_v34  ;;  %v6794_v19 = vcombine.high %v9097_v16, %v3451_v22  ;;  %v2170_v20 = vrot.slane %v2168_v45, 5  ;;  %7257 = vmatpush3.bf16.msra.mxu0 %v7603_v3  ;;  %v6793_v41 = vcombine.low %v9097_v16, %v3451_v22  ;;  %v2320_v38 = vrot.slane %v6450_v60, 5  ;;  %v7620_v34 = vld [vmem:[%s10123_s4 + $0x158] sm:$0xff]  }
 0x29e   :  { %5168 = vmatmul.mubr.bf16.vlgmr.msra.gmra.mrb[0].mxu1 %v6782_v2  ;;  %v2163_v49 = vor.u32 %v2162_v63, %v2159_v58  ;;  %v2321_v0 = vrot.slane %v6451_v42, 5  ;;  %v2373_v8 = vunpack.c.l.b16 %v1972_v54  ;;  %v2375_v36 = vunpack.c.l.b16 %v1974_v44  ;;  %7258 = vmatprep.subr.bf16.mxu0 %v7610_v17  ;;  %v7626_v58 = vld [vmem:[%s10123_s4 + $0x1d8] sm:$0xff]   ;;  %v7634_v42 = vld [vmem:[%s10123_s4 + $0x1e0] sm:$0xff]  }
 0x29f   :  { %5272 = vmatprep.mubr.bf16.mxu0 %v6794_v19  ;;  %7193 = vmatpush3.bf16.msra.mxu1 %v7599_v53  ;;  %v2171_v7 = vor.u32 %v2170_v20, %v2167_v1  ;;  %v2931_v57 = vunpack.c.h.b16 %v2320_v38  ;;  %v6571_v37 = vcombine.low %v2320_v38, %v1971_v30  ;;  %v9137_v33 = vcombine.low %v9093_v13, %v9093_v13  ;;  %v7627_v44 = vld [vmem:[%s10123_s4 + $0x198] sm:$0xff]   ;;  %v9169_v38 = vld [vmem:[#allocation2 + $0x4c] sm:$0xf] }
 0x2a0   :  { %v6548_v10 = vcombine.low %v1919_v55, %v2163_v49  ;;  %v6554_v6 = vsel %vm6531_vm10, %v9071_v59, %v2163_v49  ;;  %7194 = vmatprep.subr.bf16.mxu1 %v7604_v18  ;;  %v2943_v51 = vunpack.c.h.b16 %v2321_v0  ;;  %v6582_v46 = vcombine.low %v2321_v0, %v1973_v28  ;;  %v1953_v18 = vld [vmem:[#allocation2 + $0x50] sm:$0x1]  ;;  %v1954_v30 = vld [vmem:[#allocation2 + $0x5c] sm:$0x1] }
 0x2a1   :  { %v6559_v4 = vcombine.low %v1921_v11, %v2171_v7  ;;  %v6565_v12 = vsel %vm6531_vm10, %v9073_v56, %v2171_v7  ;;  %v3367_v32 = vshrl.u32 %v6554_v6, 16  ;;  %v3370_v14 = vshll.u32 %v6554_v6, 16  ;;  %7259 = vmatpush3.bf16.msra.mxu0 %v7611_v35  ;;  %v7623_v35 = vld [vmem:[%s10123_s4 + $0x118] sm:$0xff]   ;;  %v7628_v11 = vld [vmem:[%s10123_s4 + $0x160] sm:$0xff]  }
 0x2a2   :  { %v3362_v48 = vshrl.u32 %v6548_v10, 16  ;;  %v3432_v59 = vshrl.u32 %v6565_v12, 16  ;;  %v3435_v15 = vshll.u32 %v6565_v12, 16  ;;  %v3114_v16 = vpack.c.b16 %v2373_v8, %v2931_v57  ;;  %7260 = vmatprep.subr.bf16.mxu0 %v7618_v39  ;;  %v9180_v39 = vld [vmem:[#allocation2 + $0x58] sm:$0xf]  ;;  %v7642_v12 = vld [vmem:[%s10123_s4 + $0x1e8] sm:$0xff]  }
 0x2a3   :  { %v3369_v3 = vrot.slane %v3367_v32, 7  ;;  %v3427_v27 = vshrl.u32 %v6559_v4, 16  ;;  %v3124_v31 = vpack.c.b16 %v2375_v36, %v2943_v51  ;;  %v3505_v56 = vshrl.u32 %v6571_v37, 16  ;;  %7195 = vmatpush3.bf16.msra.mxu1 %v7607_v62  ;;  %v9182_v7 = vld [vmem:[#allocation2 + $0x58] sm:$0xf]  ;;  %v7635_v51 = vld [vmem:[%s10123_s4 + $0x1a0] sm:$0xff]  }
 0x2a4   :  { %v6712_v26 = vrot.slane %v3362_v48, 11  ;;  %v3434_v23 = vrot.slane %v3432_v59, 7  ;;  %5273 = vmatmul.mubr.bf16.gmra.mrb[20].mxu0 %v6793_v41  ;;  %v3510_v17 = vshrl.u32 %v3114_v16, 16  ;;  %v3513_v2 = vshll.u32 %v3114_v16, 16  ;;  %7196 = vmatprep.subr.bf16.mxu1 %v7612_v9  ;;  %v9184_v6 = vld [vmem:[#allocation2 + $0x64] sm:$0xf] }
 0x2a5   :  { %v3372_v53 = vor.u32 %v3370_v14, %v3369_v3  ;;  %v6717_v55 = vrot.slane %v3427_v27, 11  ;;  %v6723_v45 = vrot.slane %v3505_v56, 11  ;;  %v3570_v54 = vshrl.u32 %v6582_v46, 16  ;;  %7261 = vmatpush3.bf16.msra.mxu0 %v7619_v47  ;;  %v1923_v32 = vld [vmem:[#allocation2 + $0x30] sm:$0x8]  ;;  %v7636_v56 = vld [vmem:[%s10123_s4 + $0x168] sm:$0xff]  }
 0x2a6   :  { %v3437_v60 = vor.u32 %v3435_v15, %v3434_v23  ;;  %v3512_v22 = vrot.slane %v3510_v17, 7  ;;  %v3575_v63 = vshrl.u32 %v3124_v31, 16  ;;  %v3578_v1 = vshll.u32 %v3124_v31, 16  ;;  %7262 = vmatprep.subr.bf16.mxu0 %v7626_v58  ;;  %v7631_v15 = vld [vmem:[%s10123_s4 + $0x120] sm:$0xff]   ;;  %v1925_v58 = vld [vmem:[#allocation2 + $0x3c] sm:$0x8] }
 0x2a7   :  { %v3373_v19 = vsel %vm9050_vm13, %v6712_v26, %v3372_v53  ;;  %v6728_v20 = vrot.slane %v3570_v54, 11  ;;  %v6435_v41 = vcombine.low %v9102_v24, %v9102_v24  ;;  %v2173_v28 = vshrl.u32 %v9137_v33, 16  ;;  %7197 = vmatpush3.bf16.msra.mxu1 %v7615_v21  ;;  %v1975_v23 = vld [vmem:[#allocation2 + $0x54] sm:$0x8] }
 0x2a8   :  { %v3438_v49 = vsel %vm9050_vm13, %v6717_v55, %v3437_v60  ;;  %v3515_v0 = vor.u32 %v3513_v2, %v3512_v22  ;;  %v3577_v8 = vrot.slane %v3575_v63, 7  ;;  %v2176_v36 = vshll.u32 %v9137_v33, 16  ;;  %7198 = vmatprep.subr.bf16.mxu1 %v7620_v34  ;;  %v7643_v34 = vld [vmem:[%s10123_s4 + $0x1a8] sm:$0xff]   ;;  %v1977_v63 = vld [vmem:[#allocation2 + $0x60] sm:$0x8] }
 0x2a9   :  { %v6792_v57 = vcombine.high %v3373_v19, %v3438_v49  ;;  %v6791_v37 = vcombine.low %v3373_v19, %v3438_v49  ;;  %v2175_v62 = vrot.slane %v2173_v28, 4  ;;  %v2181_v10 = vshrl.u32 %v6435_v41, 16  ;;  %7263 = vmatpush3.bf16.msra.mxu0 %v7627_v44  ;;  %v7650_v44 = vld [vmem:[%s10123_s4 + $0x1f0] sm:$0xff]  }
 0x2aa   :  { %v3516_v46 = vsel %vm9050_vm13, %v6723_v45, %v3515_v0  ;;  %v3580_v33 = vor.u32 %v3578_v1, %v3577_v8  ;;  %v2178_v9 = vrot.slane %v2176_v36, 5  ;;  %v2184_v4 = vshll.u32 %v6435_v41, 16  ;;  %7264 = vmatprep.subr.bf16.mxu0 %v7634_v42  ;;  %v7644_v41 = vld [vmem:[%s10123_s4 + $0x170] sm:$0xff]  }
 0x2ab   :  { %5175 = vmatprep.mubr.bf16.mxu1 %v6792_v57  ;;  %v2183_v14 = vrot.slane %v2181_v10, 4  ;;  %v6452_v47 = vcombine.low %v9169_v38, %v1953_v18  ;;  %v6453_v48 = vcombine.low %v9180_v39, %v1954_v30  ;;  %v2377_v59 = vunpack.c.l.b16 %v9182_v7  ;;  %7199 = vmatpush3.bf16.msra.mxu1 %v7623_v35  ;;  %v7651_v0 = vld [vmem:[%s10123_s4 + $0x1b0] sm:$0xff]   ;;  %v7659_v57 = vld [vmem:[%s10123_s4 + $0x1f8] sm:$0xff]  }
 0x2ac   :  { %5176 = vmatmul.mubr.bf16.gmra.mrb[4].mxu1 %v6791_v37  ;;  %v3581_v16 = vsel %vm9050_vm13, %v6728_v20, %v3580_v33  ;;  %v2179_v3 = vor.u32 %v2178_v9, %v2175_v62  ;;  %v2186_v27 = vrot.slane %v2184_v4, 5  ;;  %v2379_v31 = vunpack.c.l.b16 %v9184_v6  ;;  %7200 = vmatprep.subr.bf16.mxu1 %v7628_v11 }
 0x2ad   :  { %v6803_v21 = vcombine.high %v3516_v46, %v3581_v16  ;;  %v6802_v26 = vcombine.low %v3516_v46, %v3581_v16  ;;  %v2322_v17 = vrot.slane %v6452_v47, 5  ;;  %v2323_v2 = vrot.slane %v6453_v48, 5  ;;  %7265 = vmatpush3.bf16.msra.mxu0 %v7635_v51  ;;  %v7647_v51 = vld [vmem:[%s10123_s4 + $0x130] sm:$0xff]  }
 0x2ae   :  { %v2187_v53 = vor.u32 %v2186_v27, %v2183_v14  ;;  %v6570_v55 = vcombine.low %v1923_v32, %v2179_v3  ;;  %v6576_v45 = vsel %vm6531_vm10, %v9093_v13, %v2179_v3  ;;  %v9213_v54 = vcombine.low %v9169_v38, %v9169_v38  ;;  %7266 = vmatprep.subr.bf16.mxu0 %v7642_v12  ;;  %v7639_v13 = vld [vmem:[%s10123_s4 + $0x128] sm:$0xff]   ;;  %v7652_v12 = vld [vmem:[%s10123_s4 + $0x178] sm:$0xff]  }
 0x2af   :  { %5280 = vmatprep.mubr.bf16.mxu0 %v6803_v21  ;;  %v3497_v60 = vshrl.u32 %v6576_v45, 16  ;;  %v3500_v22 = vshll.u32 %v6576_v45, 16  ;;  %v2955_v1 = vunpack.c.h.b16 %v2322_v17  ;;  %v2967_v18 = vunpack.c.h.b16 %v2323_v2  ;;  %7201 = vmatpush3.bf16.msra.mxu1 %v7631_v15  ;;  %v7660_v15 = vld [vmem:[%s10123_s4 + $0x1b8] sm:$0xff]   ;;  %v1927_v45 = vld [vmem:[#allocation2 + $0x48] sm:$0x8] }
 0x2b0   :  { %v6581_v30 = vcombine.low %v1925_v58, %v2187_v53  ;;  %v6587_v42 = vsel %vm6531_vm10, %v9102_v24, %v2187_v53  ;;  %v3492_v19 = vshrl.u32 %v6570_v55, 16  ;;  %5281 = vmatmul.mubr.bf16.gmra.mrb[24].mxu0 %v6802_v26  ;;  %v6593_v20 = vcombine.low %v2322_v17, %v1975_v23  ;;  %7202 = vmatprep.subr.bf16.mxu1 %v7636_v56  ;;  %v1980_v17 = vld [vmem:[#allocation2 + $0x88] sm:$0xf] }
 0x2b1   :  { %v3499_v28 = vrot.slane %v3497_v60, 7  ;;  %v3562_v35 = vshrl.u32 %v6587_v42, 16  ;;  %v3565_v11 = vshll.u32 %v6587_v42, 16  ;;  %v3134_v49 = vpack.c.b16 %v2377_v59, %v2955_v1  ;;  %7267 = vmatpush3.bf16.msra.mxu0 %v7643_v34  ;;  %v1956_v59 = vld [vmem:[#allocation2 + $0x8c] sm:$0x1]  ;;  %v7653_v60 = vld [vmem:[%s10123_s4 + $0x138] sm:$0xff]  }
 0x2b2   :  { %v6722_v8 = vrot.slane %v3492_v19, 11  ;;  %v3557_v36 = vshrl.u32 %v6581_v30, 16  ;;  %v6604_v24 = vcombine.low %v2323_v2, %v1977_v63  ;;  %v3144_v7 = vpack.c.b16 %v2379_v31, %v2967_v18  ;;  %7268 = vmatprep.subr.bf16.mxu0 %v7650_v44  ;;  %v9245_v31 = vld [vmem:[#allocation2 + $0x88] sm:$0xf]  ;;  %v9254_v2 = vld [vmem:[%s10126_s7] sm:$0x3] }
 0x2b3   :  { %v3502_v37 = vor.u32 %v3500_v22, %v3499_v28  ;;  %v3564_v62 = vrot.slane %v3562_v35, 7  ;;  %v3635_v10 = vshrl.u32 %v6593_v20, 16  ;;  %v3640_v6 = vshrl.u32 %v3134_v49, 16  ;;  %7203 = vmatpush3.bf16.msra.mxu1 %v7639_v13  ;;  %v1982_v18 = vld [vmem:[#allocation2 + $0x94] sm:$0xf]  ;;  %v9269_v28 = vld [vmem:[%s10123_s4 + $0x200] sm:$0xff]  }
 0x2b4   :  { %v6727_v46 = vrot.slane %v3557_v36, 11  ;;  %v3643_v33 = vshll.u32 %v3134_v49, 16  ;;  %v3700_v9 = vshrl.u32 %v6604_v24, 16  ;;  %v3705_v4 = vshrl.u32 %v3144_v7, 16  ;;  %7204 = vmatprep.subr.bf16.mxu1 %v7644_v41  ;;  %v9264_v20 = vld [vmem:[#allocation2 + $0x94] sm:$0xf] }
 0x2b5   :  { %v3503_v32 = vsel %vm9050_vm13, %v6722_v8, %v3502_v37  ;;  %v3567_v14 = vor.u32 %v3565_v11, %v3564_v62  ;;  %v6733_v47 = vrot.slane %v3635_v10, 11  ;;  %v3642_v48 = vrot.slane %v3640_v6, 7  ;;  %7269 = vmatpush3.bf16.msra.mxu0 %v7651_v0  ;;  %v1957_v41 = vld [vmem:[#allocation2 + $0x98] sm:$0x1]  ;;  %v1981_v8 = vld [vmem:[#allocation2 + $0x90] sm:$0x8] }
 0x2b6   :  { %v6738_v16 = vrot.slane %v3700_v9, 11  ;;  %v3707_v58 = vrot.slane %v3705_v4, 7  ;;  %v3708_v3 = vshll.u32 %v3144_v7, 16  ;;  %v6437_v27 = vcombine.low %v9180_v39, %v9180_v39  ;;  %7270 = vmatprep.subr.bf16.mxu0 %v7659_v57  ;;  %v1929_v36 = vld [vmem:[#allocation2 + $0x54] sm:$0x8] }
 0x2b7   :  { %v3568_v56 = vsel %vm9050_vm13, %v6727_v46, %v3567_v14  ;;  %v3645_v21 = vor.u32 %v3643_v33, %v3642_v48  ;;  %v2189_v26 = vshrl.u32 %v9213_v54, 16  ;;  %v2192_v23 = vshll.u32 %v9213_v54, 16  ;;  %7205 = vmatpush3.bf16.msra.mxu1 %v7647_v51 }
 0x2b8   :  { %v6801_v34 = vcombine.high %v3503_v32, %v3568_v56  ;;  %v6800_v53 = vcombine.low %v3503_v32, %v3568_v56  ;;  %v3710_v55 = vor.u32 %v3708_v3, %v3707_v58  ;;  %v2197_v44 = vshrl.u32 %v6437_v27, 16  ;;  %7206 = vmatprep.subr.bf16.mxu1 %v7652_v12  ;;  %v1958_v3 = vld [vmem:[#allocation2 + $0xa4] sm:$0x1] }
 0x2b9   :  { %v3646_v54 = vsel %vm9050_vm13, %v6733_v47, %v3645_v21  ;;  %v2191_v22 = vrot.slane %v2189_v26, 4  ;;  %v2194_v63 = vrot.slane %v2192_v23, 5  ;;  %v2200_v1 = vshll.u32 %v6437_v27, 16  ;;  %7271 = vmatpush3.bf16.msra.mxu0 %v7660_v15  ;;  %v9283_v23 = vld [vmem:[#allocation2 + $0xa0] sm:$0xf] }
 0x2ba   :  { %5183 = vmatprep.mubr.bf16.mxu1 %v6801_v34  ;;  %v3711_v13 = vsel %vm9050_vm13, %v6738_v16, %v3710_v55  ;;  %v2199_v30 = vrot.slane %v2197_v44, 4  ;;  %v6455_v42 = vcombine.low %v9245_v31, %v1956_v59  ;;  %v2381_v19 = vunpack.c.l.b16 %v1980_v17  ;;  %7418 = vmatprep.subr.msk.bf16.mxu0 %vm1559_vm0, %v9254_v2  ;;  %v1984_v55 = vld [vmem:[#allocation2 + $0xa0] sm:$0xf] }
 0x2bb   :  { %5184 = vmatmul.mubr.bf16.gmra.mrb[8].mxu1 %v6800_v53  ;;  %v6812_v35 = vcombine.high %v3646_v54, %v3711_v13  ;;  %v2195_v11 = vor.u32 %v2194_v63, %v2191_v22  ;;  %v2202_v49 = vrot.slane %v2200_v1, 5  ;;  %v6811_v0 = vcombine.low %v3646_v54, %v3711_v13  ;;  %v1986_v13 = vld [vmem:[#allocation2 + $0xac] sm:$0xf] }
 0x2bc   :  { %v2325_v24 = vrot.slane %v6455_v42, 5  ;;  %v2383_v7 = vunpack.c.l.b16 %v1982_v18  ;;  %v3154_v57 = vpack.c.b16 %v2381_v19, %v2979_v40  ;;  %v6439_v37 = vcombine.low %v9245_v31, %v9245_v31  ;;  %7207 = vmatpush3.bf16.msra.mxu1 %v7653_v60  ;;  %v1983_v18 = vld [vmem:[#allocation2 + $0x9c] sm:$0x8] }
 0x2bd   :  { %5288 = vmatprep.mubr.bf16.mxu0 %v6812_v35  ;;  %v2203_v62 = vor.u32 %v2202_v49, %v2199_v30  ;;  %v6592_v10 = vcombine.low %v1927_v45, %v2195_v11  ;;  %v6598_v6 = vsel %vm6531_vm10, %v9169_v38, %v2195_v11  ;;  %v6456_v51 = vcombine.low %v9264_v20, %v1957_v41 }
 0x2be   :  { %v3627_v46 = vshrl.u32 %v6598_v6, 16  ;;  %v3630_v33 = vshll.u32 %v6598_v6, 16  ;;  %5289 = vmatmul.mubr.bf16.gmra.mrb[28].mxu0 %v6811_v0  ;;  %v2991_v9 = vunpack.c.h.b16 %v2325_v24  ;;  %v6626_v4 = vcombine.low %v2325_v24, %v1981_v8  ;;  %7367 = vmatprep.subr.bf16.mxu1 %v9269_v28  ;;  %v1985_v8 = vld [vmem:[#allocation2 + $0xa8] sm:$0x8] }
 0x2bf   :  { %v6603_v25 = vcombine.low %v1929_v36, %v2203_v62  ;;  %v6609_v40 = vsel %vm6531_vm10, %v9180_v39, %v2203_v62  ;;  %v3622_v12 = vshrl.u32 %v6592_v10, 16  ;;  %v3770_v32 = vshrl.u32 %v3154_v57, 16  ;;  %v1933_v36 = vld [vmem:[#allocation2 + $0x84] sm:$0x8] }
 0x2c0   :  { %v3629_v14 = vrot.slane %v3627_v46, 7  ;;  %v3692_v47 = vshrl.u32 %v6609_v40, 16  ;;  %v3695_v48 = vshll.u32 %v6609_v40, 16  ;;  %v3164_v59 = vpack.c.b16 %v2383_v7, %v2991_v9 }
 0x2c1   :  { %v6732_v38 = vrot.slane %v3622_v12, 11  ;;  %v3687_v15 = vshrl.u32 %v6603_v25, 16  ;;  %v3772_v16 = vrot.slane %v3770_v32, 7  ;;  %v3773_v58 = vshll.u32 %v3154_v57, 16 }
 0x2c2   :  { %v3632_v27 = vor.u32 %v3630_v33, %v3629_v14  ;;  %v3694_v56 = vrot.slane %v3692_v47, 7  ;;  %v3830_v21 = vshrl.u32 %v6626_v4, 16  ;;  %v3835_v26 = vshrl.u32 %v3164_v59, 16 }
 0x2c3   :  { %v6737_v17 = vrot.slane %v3687_v15, 11  ;;  %v3775_v34 = vor.u32 %v3773_v58, %v3772_v16  ;;  %v3838_v39 = vshll.u32 %v3164_v59, 16  ;;  %v2213_v53 = vshrl.u32 %v6439_v37, 16  ;;  %v1959_v59 = vld [vmem:[#allocation2 + $0xb0] sm:$0x1] }
 0x2c4   :  { %v3633_v45 = vsel %vm9050_vm13, %v6732_v38, %v3632_v27  ;;  %v3697_v44 = vor.u32 %v3695_v48, %v3694_v56  ;;  %v6748_v60 = vrot.slane %v3830_v21, 11  ;;  %v3837_v54 = vrot.slane %v3835_v26, 7 }
 0x2c5   :  { %v3776_v22 = vsel %vm9050_vm13, %v6743_v50, %v3775_v34  ;;  %v2215_v63 = vrot.slane %v2213_v53, 4  ;;  %v2216_v1 = vshll.u32 %v6439_v37, 16  ;;  %v6457_v30 = vcombine.low %v9283_v23, %v1958_v3  ;;  %v1960_v3 = vld [vmem:[#allocation2 + $0xbc] sm:$0x1] }
 0x2c6   :  { %v3698_v42 = vsel %vm9050_vm13, %v6737_v17, %v3697_v44  ;;  %v3840_v19 = vor.u32 %v3838_v39, %v3837_v54  ;;  %v2326_v41 = vrot.slane %v6456_v51, 5  ;;  %v2385_v35 = vunpack.c.l.b16 %v1984_v55  ;;  %v9304_v55 = vld [vmem:[#allocation2 + $0xb8] sm:$0xf] }
 0x2c7   :  { %v6810_v11 = vcombine.high %v3633_v45, %v3698_v42  ;;  %v6809_v49 = vcombine.low %v3633_v45, %v3698_v42  ;;  %v2218_v0 = vrot.slane %v2216_v1, 5  ;;  %v2327_v43 = vrot.slane %v6457_v30, 5  ;;  %v1935_v42 = vld [vmem:[#allocation2 + $0x90] sm:$0x8] }
 0x2c8   :  { %v3841_v50 = vsel %vm9050_vm13, %v6748_v60, %v3840_v19  ;;  %v2387_v24 = vunpack.c.l.b16 %v1986_v13  ;;  %v3003_v7 = vunpack.c.h.b16 %v2326_v41  ;;  %v6637_v57 = vcombine.low %v2326_v41, %v1983_v18  ;;  %v1988_v41 = vld [vmem:[#allocation2 + $0xb8] sm:$0xf] }
 0x2c9   :  { %5191 = vmatprep.mubr.bf16.mxu1 %v6810_v11  ;;  %v6821_v37 = vcombine.high %v3776_v22, %v3841_v50  ;;  %v2219_v62 = vor.u32 %v2218_v0, %v2215_v63  ;;  %v6820_v10 = vcombine.low %v3776_v22, %v3841_v50  ;;  %v3015_v6 = vunpack.c.h.b16 %v2327_v43 }
 0x2ca   :  { %5192 = vmatmul.mubr.bf16.gmra.mrb[12].mxu1 %v6809_v49  ;;  %v3174_v51 = vpack.c.b16 %v2385_v35, %v3003_v7  ;;  %v6648_v46 = vcombine.low %v2327_v43, %v1985_v8  ;;  %v3895_v33 = vshrl.u32 %v6637_v57, 16  ;;  %v6440_v9 = vcombine.low %v9264_v20, %v9264_v20  ;;  %v1990_v43 = vld [vmem:[#allocation2 + $0xc4] sm:$0xf]  ;;  %v1987_v7 = vld [vmem:[#allocation2 + $0xb4] sm:$0x8] }
 0x2cb   :  { %5296 = vmatprep.mubr.bf16.mxu0 %v6821_v37  ;;  %v6625_v4 = vcombine.low %v1933_v36, %v2219_v62  ;;  %v6631_v25 = vsel %vm6531_vm10, %v9245_v31, %v2219_v62  ;;  %v3184_v40 = vpack.c.b16 %v2387_v24, %v3015_v6  ;;  %v6441_v12 = vcombine.low %v9283_v23, %v9283_v23  ;;  %v9302_v31 = vld [vmem:[#allocation2 + $0xac] sm:$0xf]  ;;  %v1937_v37 = vld [vmem:[#allocation2 + $0x9c] sm:$0x8]  ;;  %v1989_v6 = vld [vmem:[#allocation2 + $0xc0] sm:$0x8] }
 0x2cc   :  { %v3822_v32 = vshrl.u32 %v6631_v25, 16  ;;  %v3825_v14 = vshll.u32 %v6631_v25, 16  ;;  %5297 = vmatmul.mubr.bf16.gmra.mrb[32].mxu0 %v6820_v10  ;;  %v6753_v47 = vrot.slane %v3895_v33, 11  ;;  %v3900_v48 = vshrl.u32 %v3174_v51, 16 }
 0x2cd   :  { %v3817_v38 = vshrl.u32 %v6625_v4, 16  ;;  %v3903_v15 = vshll.u32 %v3174_v51, 16  ;;  %v3960_v16 = vshrl.u32 %v6648_v46, 16  ;;  %v3965_v58 = vshrl.u32 %v3184_v40, 16 }
 0x2ce   :  { %v3824_v27 = vrot.slane %v3822_v32, 7  ;;  %v3902_v56 = vrot.slane %v3900_v48, 7  ;;  %v3968_v21 = vshll.u32 %v3184_v40, 16  ;;  %v2221_v26 = vshrl.u32 %v6440_v9, 16 }
 0x2cf   :  { %v6747_v17 = vrot.slane %v3817_v38, 11  ;;  %v6758_v34 = vrot.slane %v3960_v16, 11  ;;  %v3967_v39 = vrot.slane %v3965_v58, 7  ;;  %v2224_v53 = vshll.u32 %v6440_v9, 16 }
 0x2d0   :  { %v3827_v45 = vor.u32 %v3825_v14, %v3824_v27  ;;  %v3905_v44 = vor.u32 %v3903_v15, %v3902_v56  ;;  %v2223_v60 = vrot.slane %v2221_v26, 4  ;;  %v2229_v54 = vshrl.u32 %v6441_v12, 16  ;;  %v1962_v26 = vld [vmem:[#allocation2 + $0xd4] sm:$0x1] }
 0x2d1   :  { %v3970_v22 = vor.u32 %v3968_v21, %v3967_v39  ;;  %v2226_v63 = vrot.slane %v2224_v53, 5  ;;  %v2232_v1 = vshll.u32 %v6441_v12, 16  ;;  %v6458_v18 = vcombine.low %v9302_v31, %v1959_v59  ;;  %v1961_v21 = vld [vmem:[#allocation2 + $0xc8] sm:$0x1] }
 0x2d2   :  { %v3828_v13 = vsel %vm9050_vm13, %v6747_v17, %v3827_v45  ;;  %v3906_v30 = vsel %vm9050_vm13, %v6753_v47, %v3905_v44  ;;  %v2231_v19 = vrot.slane %v2229_v54, 4  ;;  %v6459_v35 = vcombine.low %v9304_v55, %v1960_v3  ;;  %v9320_v45 = vld [vmem:[#allocation2 + $0xc4] sm:$0xf] }
 0x2d3   :  { %v6819_v11 = vcombine.high %v9069_v52, %v3828_v13  ;;  %v6818_v49 = vcombine.low %v9069_v52, %v3828_v13  ;;  %v3971_v0 = vsel %vm9050_vm13, %v6758_v34, %v3970_v22  ;;  %v2227_v8 = vor.u32 %v2226_v63, %v2223_v60  ;;  %v9324_v22 = vld [vmem:[#allocation2 + $0xd0] sm:$0xf] }
 0x2d4   :  { %v6830_v50 = vcombine.high %v3906_v30, %v3971_v0  ;;  %v2234_v36 = vrot.slane %v2232_v1, 5  ;;  %v6829_v24 = vcombine.low %v3906_v30, %v3971_v0  ;;  %v2328_v57 = vrot.slane %v6458_v18, 5 }
 0x2d5   :  { %5199 = vmatprep.mubr.bf16.mxu1 %v6819_v11  ;;  %v6636_v62 = vcombine.low %v1935_v42, %v2227_v8  ;;  %v6642_v10 = vsel %vm6531_vm10, %v9264_v20, %v2227_v8  ;;  %v2329_v51 = vrot.slane %v6459_v35, 5  ;;  %v2389_v46 = vunpack.c.l.b16 %v1988_v41 }
 0x2d6   :  { %5200 = vmatmul.mubr.bf16.gmra.mrb[16].mxu1 %v6818_v49  ;;  %5304 = vmatprep.mubr.bf16.mxu0 %v6830_v50  ;;  %v2235_v52 = vor.u32 %v2234_v36, %v2231_v19  ;;  %v3887_v33 = vshrl.u32 %v6642_v10, 16  ;;  %v3890_v9 = vshll.u32 %v6642_v10, 16  ;;  %v2391_v4 = vunpack.c.l.b16 %v1990_v43 }
 0x2d7   :  { %v3882_v25 = vshrl.u32 %v6636_v62, 16  ;;  %5305 = vmatmul.mubr.bf16.gmra.mrb[36].mxu0 %v6829_v24  ;;  %v3027_v40 = vunpack.c.h.b16 %v2328_v57  ;;  %v3039_v12 = vunpack.c.h.b16 %v2329_v51  ;;  %v6659_v32 = vcombine.low %v2328_v57, %v1987_v7  ;;  %v1992_v62 = vld [vmem:[#allocation2 + $0xd0] sm:$0xf] }
 0x2d8   :  { %v6647_v14 = vcombine.low %v1937_v37, %v2235_v52  ;;  %v6653_v47 = vsel %vm6531_vm10, %v9283_v23, %v2235_v52  ;;  %v3889_v48 = vrot.slane %v3887_v33, 7  ;;  %v6670_v20 = vcombine.low %v2329_v51, %v1989_v6  ;;  %v1991_v51 = vld [vmem:[#allocation2 + $0xcc] sm:$0x8] }
 0x2d9   :  { %v6752_v59 = vrot.slane %v3882_v25, 11  ;;  %v3952_v38 = vshrl.u32 %v6653_v47, 16  ;;  %v3955_v15 = vshll.u32 %v6653_v47, 16  ;;  %v3194_v16 = vpack.c.b16 %v2389_v46, %v3027_v40  ;;  %v1993_v25 = vld [vmem:[#allocation2 + $0xd8] sm:$0x8] }
 0x2da   :  { %v3892_v58 = vor.u32 %v3890_v9, %v3889_v48  ;;  %v3947_v3 = vshrl.u32 %v6647_v14, 16  ;;  %v3204_v27 = vpack.c.b16 %v2391_v4, %v3039_v12  ;;  %v4025_v56 = vshrl.u32 %v6659_v32, 16  ;;  %v1939_v40 = vld [vmem:[#allocation2 + $0xa8] sm:$0x8]  ;;  %v1941_v12 = vld [vmem:[#allocation2 + $0xb4] sm:$0x8] }
 0x2db   :  { %v3954_v17 = vrot.slane %v3952_v38, 7  ;;  %v4030_v34 = vshrl.u32 %v3194_v16, 16  ;;  %v4033_v39 = vshll.u32 %v3194_v16, 16  ;;  %v4090_v53 = vshrl.u32 %v6670_v20, 16 }
 0x2dc   :  { %v3893_v23 = vsel %vm9050_vm13, %v6752_v59, %v3892_v58  ;;  %v6757_v44 = vrot.slane %v3947_v3, 11  ;;  %v6763_v60 = vrot.slane %v4025_v56, 11  ;;  %v4095_v54 = vshrl.u32 %v3204_v27, 16 }
 0x2dd   :  { %v3957_v63 = vor.u32 %v3955_v15, %v3954_v17  ;;  %v4032_v1 = vrot.slane %v4030_v34, 7  ;;  %v6768_v18 = vrot.slane %v4090_v53, 11  ;;  %v4098_v13 = vshll.u32 %v3204_v27, 16 }
 0x2de   :  { %v4097_v30 = vrot.slane %v4095_v54, 7  ;;  %v6442_v42 = vcombine.low %v9302_v31, %v9302_v31  ;;  %v6443_v19 = vcombine.low %v9304_v55, %v9304_v55  ;;  %v1788_v41 = vmax.f32 %v9045_v29, 0.0 }
 0x2df   :  { %v3958_v35 = vsel %vm9050_vm13, %v6757_v44, %v3957_v63  ;;  %v4035_v11 = vor.u32 %v4033_v39, %v4032_v1  ;;  %v6460_v49 = vcombine.low %v9320_v45, %v1961_v21  ;;  %v6461_v0 = vcombine.low %v9324_v22, %v1962_v26 }
 0x2e0   :  { %v6828_v8 = vcombine.high %v3893_v23, %v3958_v35  ;;  %v6827_v43 = vcombine.low %v3893_v23, %v3958_v35  ;;  %v4100_v50 = vor.u32 %v4098_v13, %v4097_v30  ;;  %v2237_v36 = vshrl.u32 %v6442_v42, 16 }
 0x2e1   :  { %v4036_v24 = vsel %vm9050_vm13, %v6763_v60, %v4035_v11  ;;  %v2240_v7 = vshll.u32 %v6442_v42, 16  ;;  %v2245_v57 = vshrl.u32 %v6443_v19, 16  ;;  %v2248_v37 = vshll.u32 %v6443_v19, 16 }
 0x2e2   :  { %5207 = vmatprep.mubr.bf16.mxu1 %v6828_v8  ;;  %v4101_v29 = vsel %vm9050_vm13, %v6768_v18, %v4100_v50  ;;  %v2239_v10 = vrot.slane %v2237_v36, 4  ;;  %v6989_v6 = vpack.c.bf16 %v1788_v41, %v1788_v41  ;;  %v2330_v46 = vrot.slane %v6460_v49, 5 }
 0x2e3   :  { %5208 = vmatmul.mubr.bf16.gmra.mrb[20].mxu1 %v6827_v43  ;;  %v6839_v52 = vcombine.high %v4036_v24, %v4101_v29  ;;  %v2242_v33 = vrot.slane %v2240_v7, 5  ;;  %v2247_v9 = vrot.slane %v2245_v57, 4  ;;  %v2250_v4 = vrot.slane %v2248_v37, 5 }
 0x2e4   :  { %v6838_v32 = vcombine.low %v4036_v24, %v4101_v29  ;;  %1914 = vst [vmem:[#allocation2 + $0xdc] sm:$0xf] %v6989_v6  ;;  %v2331_v14 = vrot.slane %v6461_v0, 5  ;;  %v2393_v47 = vunpack.c.l.b16 %v1992_v62  ;;  %v3051_v48 = vunpack.c.h.b16 %v2330_v46  ;;  %v9351_v62 = vld [vmem:[#allocation2 + $0x1c] sm:$0xf] }
 0x2e5   :  { %5312 = vmatprep.mubr.bf16.mxu0 %v6839_v52  ;;  %v2243_v20 = vor.u32 %v2242_v33, %v2239_v10  ;;  %v2251_v59 = vor.u32 %v2250_v4, %v2247_v9  ;;  %v6681_v38 = vcombine.low %v2330_v46, %v1991_v51  ;;  %v6444_v15 = vcombine.low %v9320_v45, %v9320_v45  ;;  %v9353_v29 = vld [vmem:[#allocation2 + $0x28] sm:$0xf]  ;;  %v9357_v52 = vld [vmem:[#allocation2 + $0x14] sm:$0x1] }
 0x2e6   :  { %5313 = vmatmul.mubr.bf16.gmra.mrb[40].mxu0 %v6838_v32  ;;  %v3063_v16 = vunpack.c.h.b16 %v2331_v14  ;;  %v3214_v58 = vpack.c.b16 %v2393_v47, %v3051_v48  ;;  %v6692_v3 = vcombine.low %v2331_v14, %v1993_v25  ;;  %v6445_v27 = vcombine.low %v9324_v22, %v9324_v22  ;;  %v9363_v47 = vld [vmem:[#allocation2 + $0x10] sm:$0xf] }
 0x2e7   :  { %v6658_v56 = vcombine.low %v1939_v40, %v2243_v20  ;;  %v6664_v21 = vsel %vm6531_vm10, %v9302_v31, %v2243_v20  ;;  %v6669_v26 = vcombine.low %v1941_v12, %v2251_v59  ;;  %v6675_v17 = vsel %vm6531_vm10, %v9304_v55, %v2251_v59  ;;  %v1943_v40 = vld [vmem:[#allocation2 + $0xc0] sm:$0x8]  ;;  %v1945_v59 = vld [vmem:[#allocation2 + $0xcc] sm:$0x8] }
 0x2e8   :  { %v4017_v34 = vshrl.u32 %v6664_v21, 16  ;;  %v4020_v39 = vshll.u32 %v6664_v21, 16  ;;  %v4082_v53 = vshrl.u32 %v6675_v17, 16  ;;  %v4085_v23 = vshll.u32 %v6675_v17, 16 }
 0x2e9   :  { %v4012_v44 = vshrl.u32 %v6658_v56, 16  ;;  %v4077_v60 = vshrl.u32 %v6669_v26, 16  ;;  %v4155_v54 = vshrl.u32 %v6681_v38, 16  ;;  %v4160_v63 = vshrl.u32 %v3214_v58, 16 }
 0x2ea   :  { %v4019_v1 = vrot.slane %v4017_v34, 7  ;;  %v4084_v18 = vrot.slane %v4082_v53, 7  ;;  %v4163_v13 = vshll.u32 %v3214_v58, 16  ;;  %v4220_v30 = vshrl.u32 %v6692_v3, 16 }
 0x2eb   :  { %v6762_v42 = vrot.slane %v4012_v44, 11  ;;  %v6767_v19 = vrot.slane %v4077_v60, 11  ;;  %v1994_v41 = vld [vmem:[#allocation2 + $0xdc] sm:$0xf]  ;;  %v6773_v31 = vrot.slane %v4155_v54, 11  ;;  %v4162_v35 = vrot.slane %v4160_v63, 7 }
 0x2ec   :  { %v4022_v11 = vor.u32 %v4020_v39, %v4019_v1  ;;  %v4087_v49 = vor.u32 %v4085_v23, %v4084_v18  ;;  %v2395_v55 = vunpack.c.l.b16 %v1994_v41  ;;  %v6778_v0 = vrot.slane %v4220_v30, 11 }
 0x2ed   :  { %v4165_v8 = vor.u32 %v4163_v13, %v4162_v35  ;;  %v2253_v43 = vshrl.u32 %v6444_v15, 16  ;;  %v2256_v50 = vshll.u32 %v6444_v15, 16  ;;  %v2261_v36 = vshrl.u32 %v6445_v27, 16  ;;  %v9369_v15 = vld [vmem:[#allocation2 + $0x1c] sm:$0xf] }
 0x2ee   :  { %v4023_v24 = vsel %vm9050_vm13, %v6762_v42, %v4022_v11  ;;  %v4088_v7 = vsel %vm9050_vm13, %v6767_v19, %v4087_v49  ;;  %v3224_v57 = vpack.c.b16 %v2395_v55, %v3063_v16  ;;  %v2264_v37 = vshll.u32 %v6445_v27, 16 }
 0x2ef   :  { %v6837_v10 = vcombine.high %v4023_v24, %v4088_v7  ;;  %v6836_v6 = vcombine.low %v4023_v24, %v4088_v7  ;;  %v4166_v51 = vsel %vm9050_vm13, %v6773_v31, %v4165_v8  ;;  %v2255_v46 = vrot.slane %v2253_v43, 4 }
 0x2f0   :  { %v4225_v33 = vshrl.u32 %v3224_v57, 16  ;;  %v4228_v9 = vshll.u32 %v3224_v57, 16  ;;  %v2258_v4 = vrot.slane %v2256_v50, 5  ;;  %v2263_v25 = vrot.slane %v2261_v36, 4 }
 0x2f1   :  { %5215 = vmatprep.mubr.bf16.mxu1 %v6837_v10  ;;  %v2266_v12 = vrot.slane %v2264_v37, 5  ;;  %v6494_v32 = vcombine.low %v9351_v62, %v9351_v62  ;;  %v6495_v14 = vcombine.low %v9353_v29, %v9353_v29  ;;  %v9367_v48 = vcombine.low %v9363_v47, %v9363_v47 }
 0x2f2   :  { %5216 = vmatmul.mubr.bf16.gmra.mrb[24].mxu1 %v6836_v6  ;;  %v4227_v20 = vrot.slane %v4225_v33, 7  ;;  %v2259_v38 = vor.u32 %v2258_v4, %v2255_v46  ;;  %v9373_v16 = vcombine.low %v9369_v15, %v9369_v15  ;;  %v6478_v58 = vcombine.low %v9363_v47, %v9357_v52 }
 0x2f3   :  { %v2267_v3 = vor.u32 %v2266_v12, %v2263_v25  ;;  %v2685_v27 = vshrl.u32 %v6494_v32, 16  ;;  %v2688_v56 = vshll.u32 %v6494_v32, 16  ;;  %v2693_v21 = vshrl.u32 %v6495_v14, 16 }
 0x2f4   :  { %v4230_v26 = vor.u32 %v4228_v9, %v4227_v20  ;;  %v6680_v17 = vcombine.low %v1943_v40, %v2259_v38  ;;  %v6686_v34 = vsel %vm6531_vm10, %v9320_v45, %v2259_v38  ;;  %v2696_v39 = vshll.u32 %v6495_v14, 16  ;;  %v1996_v20 = vld [vmem:[#allocation2 + $0x20] sm:$0x1] }
 0x2f5   :  { %v6691_v53 = vcombine.low %v1945_v59, %v2267_v3  ;;  %v6697_v23 = vsel %vm6531_vm10, %v9324_v22, %v2267_v3  ;;  %v4147_v44 = vshrl.u32 %v6686_v34, 16  ;;  %v4150_v60 = vshll.u32 %v6686_v34, 16  ;;  %v2012_v22 = vld [vmem:[#allocation2 + $0x18] sm:$0x8] }
 0x2f6   :  { %v4231_v54 = vsel %vm9050_vm13, %v6778_v0, %v4230_v26  ;;  %v4142_v63 = vshrl.u32 %v6680_v17, 16  ;;  %v4212_v1 = vshrl.u32 %v6697_v23, 16  ;;  %v4215_v18 = vshll.u32 %v6697_v23, 16  ;;  %v2014_v0 = vld [vmem:[#allocation2 + $0x24] sm:$0x8] }
 0x2f7   :  { %v6848_v13 = vcombine.high %v4166_v51, %v4231_v54  ;;  %v4149_v30 = vrot.slane %v4147_v44, 7  ;;  %v4207_v42 = vshrl.u32 %v6691_v53, 16  ;;  %v6847_v19 = vcombine.low %v4166_v51, %v4231_v54  ;;  %v9395_v17 = vld [vmem:[#allocation2 + $0x40] sm:$0xf] }
 0x2f8   :  { %v6772_v41 = vrot.slane %v4142_v63, 11  ;;  %v4214_v31 = vrot.slane %v4212_v1, 7  ;;  %v2687_v45 = vrot.slane %v2685_v27, 4  ;;  %v2690_v35 = vrot.slane %v2688_v56, 5  ;;  %v2017_v27 = vld [vmem:[#allocation2 + $0x34] sm:$0xf] }
 0x2f9   :  { %5320 = vmatprep.mubr.bf16.mxu0 %v6848_v13  ;;  %v4152_v11 = vor.u32 %v4150_v60, %v4149_v30  ;;  %v6777_v49 = vrot.slane %v4207_v42, 11  ;;  %v2695_v55 = vrot.slane %v2693_v21, 4  ;;  %v2698_v8 = vrot.slane %v2696_v39, 5 }
 0x2fa   :  { %v4217_v43 = vor.u32 %v4215_v18, %v4214_v31  ;;  %5321 = vmatmul.mubr.bf16.gmra.mrb[44].mxu0 %v6847_v19  ;;  %v2691_v50 = vor.u32 %v2690_v35, %v2687_v45  ;;  %v2413_v36 = vshrl.u32 %v9367_v48, 16  ;;  %v2416_v24 = vshll.u32 %v9367_v48, 16 }
 0x2fb   :  { %v4153_v7 = vsel %vm9050_vm13, %v6772_v41, %v4152_v11  ;;  %v2699_v57 = vor.u32 %v2698_v8, %v2695_v55  ;;  %v2421_v37 = vshrl.u32 %v9373_v16, 16  ;;  %v2424_v10 = vshll.u32 %v9373_v16, 16  ;;  %v2046_v11 = vld [vmem:[#allocation2 + $0x38] sm:$0x1] }
 0x2fc   :  { %v4218_v6 = vsel %vm9050_vm13, %v6777_v49, %v4217_v43  ;;  %v6529_v51 = vcombine.low %v2012_v22, %v2691_v50  ;;  %v6535_v46 = vsel %vm6531_vm10, %v9351_v62, %v2691_v50  ;;  %v2415_v33 = vrot.slane %v2413_v36, 4  ;;  %v2047_v43 = vld [vmem:[#allocation2 + $0x44] sm:$0x1] }
 0x2fd   :  { %v6846_v9 = vcombine.high %v4153_v7, %v4218_v6  ;;  %v6845_v4 = vcombine.low %v4153_v7, %v4218_v6  ;;  %v6540_v25 = vcombine.low %v2014_v0, %v2699_v57  ;;  %v6546_v40 = vsel %vm6531_vm10, %v9353_v29, %v2699_v57 }
 0x2fe   :  { %v3271_v12 = vshrl.u32 %v6529_v51, 16  ;;  %v3276_v32 = vshrl.u32 %v6535_v46, 16  ;;  %v3279_v14 = vshll.u32 %v6535_v46, 16  ;;  %v3341_v48 = vshrl.u32 %v6546_v40, 16 }
 0x2ff   :  { %5223 = vmatprep.mubr.bf16.mxu1 %v6846_v9  ;;  %v3336_v59 = vshrl.u32 %v6540_v25, 16  ;;  %v3344_v38 = vshll.u32 %v6546_v40, 16  ;;  %v2418_v16 = vrot.slane %v2416_v24, 5  ;;  %v2423_v3 = vrot.slane %v2421_v37, 4  ;;  %v2016_v24 = vld [vmem:[#allocation2 + $0x30] sm:$0x8] }
 0x300   :  { %5224 = vmatmul.mubr.bf16.gmra.mrb[28].mxu1 %v6845_v4  ;;  %v6705_v62 = vrot.slane %v3271_v12, 11  ;;  %v3278_v56 = vrot.slane %v3276_v32, 7  ;;  %v3343_v21 = vrot.slane %v3341_v48, 7  ;;  %v2426_v26 = vrot.slane %v2424_v10, 5  ;;  %v2018_v40 = vld [vmem:[#allocation2 + $0x3c] sm:$0x8] }
 0x301   :  { %v6710_v34 = vrot.slane %v3336_v59, 11  ;;  %v2419_v29 = vor.u32 %v2418_v16, %v2415_v33  ;;  %v6479_v39 = vcombine.low %v9369_v15, %v1996_v20  ;;  %v2588_v53 = vrot.slane %v6478_v58, 5 }
 0x302   :  { %v3281_v23 = vor.u32 %v3279_v14, %v3278_v56  ;;  %v3346_v44 = vor.u32 %v3344_v38, %v3343_v21  ;;  %v2427_v60 = vor.u32 %v2426_v26, %v2423_v3  ;;  %v6496_v54 = vcombine.low %v2017_v27, %v2017_v27 }
 0x303   :  { %v2589_v63 = vrot.slane %v6479_v39, 5  ;;  %v6528_v1 = vcombine.low %v2419_v29, %v2588_v53  ;;  %v6533_v18 = vcombine.high %v2419_v29, %v2588_v53  ;;  %v6497_v13 = vcombine.low %v9395_v17, %v9395_v17  ;;  %v1997_v29 = vld [vmem:[#allocation2 + $0x2c] sm:$0x1]  ;;  %v1998_v39 = vld [vmem:[#allocation2 + $0x38] sm:$0x1] }
 0x304   :  { %v3282_v30 = vsel %vm9050_vm13, %v6705_v62, %v3281_v23  ;;  %v3347_v15 = vsel %vm9050_vm13, %v6710_v34, %v3346_v44  ;;  %v2701_v42 = vshrl.u32 %v6496_v54, 16  ;;  %v2704_v19 = vshll.u32 %v6496_v54, 16  ;;  %v7670_v54 = vld [vmem:[%s10123_s4 + $0x208] sm:$0xff]  }
 0x305   :  { %v6788_v52 = vcombine.low %v3282_v30, %v3347_v15  ;;  %v6789_v47 = vcombine.high %v3282_v30, %v3347_v15  ;;  %v6539_v58 = vcombine.low %v2427_v60, %v2589_v63  ;;  %v6544_v41 = vcombine.high %v2427_v60, %v2589_v63  ;;  %v7756_v30 = vld [vmem:[#allocation2 + $0x34] sm:$0xf] }
 0x306   :  { %v3258_v31 = vshrl.u32 %v6528_v1, 16  ;;  %v3263_v45 = vshrl.u32 %v6533_v18, 16  ;;  %v3266_v35 = vshll.u32 %v6533_v18, 16  ;;  %v2703_v49 = vrot.slane %v2701_v42, 4  ;;  %v7755_v18 = vld [vmem:[#allocation2 + $0x28] sm:$0xf] }
 0x307   :  { %5458 = vmatprep.mubr.bf16.mxu0 %v6789_v47  ;;  %v3323_v22 = vshrl.u32 %v6539_v58, 16  ;;  %v3328_v55 = vshrl.u32 %v6544_v41, 16  ;;  %v3331_v8 = vshll.u32 %v6544_v41, 16  ;;  %v2706_v0 = vrot.slane %v2704_v19, 5 }
 0x308   :  { %v6704_v50 = vrot.slane %v3258_v31, 11  ;;  %v3265_v36 = vrot.slane %v3263_v45, 7  ;;  %5459 = vmatmul.mubr.bf16.vlgmr.msra.gmra.mrb[48].mxu0 %v6788_v52  ;;  %v2709_v7 = vshrl.u32 %v6497_v13, 16  ;;  %v2712_v57 = vshll.u32 %v6497_v13, 16  ;;  %v2021_v45 = vld [vmem:[#allocation2 + $0x4c] sm:$0xf] }
 0x309   :  { %v6709_v37 = vrot.slane %v3323_v22, 11  ;;  %v3330_v10 = vrot.slane %v3328_v55, 7  ;;  %v2707_v6 = vor.u32 %v2706_v0, %v2703_v49  ;;  %v6512_v51 = vcombine.low %v2017_v27, %v2046_v11  ;;  %v9433_v55 = vld [vmem:[#allocation2 + $0x58] sm:$0xf] }
 0x30a   :  { %v3268_v46 = vor.u32 %v3266_v35, %v3265_v36  ;;  %v2711_v33 = vrot.slane %v2709_v7, 4  ;;  %v2714_v9 = vrot.slane %v2712_v57, 5  ;;  %v6513_v4 = vcombine.low %v9395_v17, %v2047_v43 }
 0x30b   :  { %v3333_v25 = vor.u32 %v3331_v8, %v3330_v10  ;;  %v9408_v12 = vrot.slane %v6512_v51, 5  ;;  %v6551_v32 = vcombine.low %v2016_v24, %v2707_v6  ;;  %v6557_v14 = vsel %vm6531_vm10, %v2017_v27, %v2707_v6 }
 0x30c   :  { %v3269_v48 = vsel %vm9050_vm13, %v6704_v50, %v3268_v46  ;;  %v2715_v20 = vor.u32 %v2714_v9, %v2711_v33  ;;  %v9413_v59 = vrot.slane %v6513_v4, 5  ;;  %v3406_v38 = vshrl.u32 %v6557_v14, 16  ;;  %v9444_v4 = vld [vmem:[#allocation2 + $0x40] sm:$0xf] }
 0x30d   :  { %v3334_v16 = vsel %vm9050_vm13, %v6709_v37, %v3333_v25  ;;  %v9419_v3 = vcombine.high %v9408_v12, %v9408_v12  ;;  %v3401_v62 = vshrl.u32 %v6551_v32, 16  ;;  %v3409_v56 = vshll.u32 %v6557_v14, 16 }
 0x30e   :  { %v6786_v21 = vcombine.low %v3269_v48, %v3334_v16  ;;  %v6787_v26 = vcombine.high %v3269_v48, %v3334_v16  ;;  %v6562_v34 = vcombine.low %v2018_v40, %v2715_v20  ;;  %v6568_v27 = vsel %vm6531_vm10, %v9395_v17, %v2715_v20  ;;  %v7684_v48 = vld [vmem:[%s10123_s4 + $0x218] sm:$0xff]  }
 0x30f   :  { %v9425_v53 = vcombine.high %v9413_v59, %v9413_v59  ;;  %v6715_v23 = vrot.slane %v3401_v62, 11  ;;  %v3408_v44 = vrot.slane %v3406_v38, 7  ;;  %v3471_v60 = vshrl.u32 %v6568_v27, 16 }
 0x310   :  { %5361 = vmatprep.mubr.bf16.mxu1 %v6787_v26  ;;  %v3466_v63 = vshrl.u32 %v6562_v34, 16  ;;  %v3474_v1 = vshll.u32 %v6568_v27, 16  ;;  %v6464_v13 = vcombine.low %v7755_v18, %v7755_v18  ;;  %v6465_v17 = vcombine.low %v7756_v30, %v7756_v30  ;;  %v2020_v34 = vld [vmem:[#allocation2 + $0x48] sm:$0x8] }
 0x311   :  { %5362 = vmatmul.mubr.bf16.vlgmr.msra.gmra.mrb[32].mxu1 %v6786_v21  ;;  %v3411_v15 = vor.u32 %v3409_v56, %v3408_v44  ;;  %v3473_v42 = vrot.slane %v3471_v60, 7  ;;  %v6480_v19 = vcombine.low %v7755_v18, %v1997_v29  ;;  %v6481_v52 = vcombine.low %v7756_v30, %v1998_v39 }
 0x312   :  { %v6720_v47 = vrot.slane %v3466_v63, 11  ;;  %7368 = vmatpush3.bf16.msra.mxu1 %v9269_v28  ;;  %v2429_v58 = vshrl.u32 %v6464_v13, 16  ;;  %v2432_v41 = vshll.u32 %v6464_v13, 16  ;;  %v2437_v31 = vshrl.u32 %v6465_v17, 16  ;;  %v7677_v28 = vld [vmem:[%s10123_s4 + $0x210] sm:$0xff]   ;;  %v7691_v13 = vld [vmem:[%s10123_s4 + $0x220] sm:$0xff]  }
 0x313   :  { %v3412_v35 = vsel %vm9050_vm13, %v6715_v23, %v3411_v15  ;;  %v3476_v11 = vor.u32 %v3474_v1, %v3473_v42  ;;  %v2440_v49 = vshll.u32 %v6465_v17, 16  ;;  %v2590_v22 = vrot.slane %v6480_v19, 5  ;;  %7369 = vmatprep.subr.bf16.mxu1 %v7670_v54  ;;  %v7758_v1 = vld [vmem:[#allocation2 + $0x4c] sm:$0xf]  ;;  %v2022_v15 = vld [vmem:[#allocation2 + $0x54] sm:$0x8] }
 0x314   :  { %v2431_v8 = vrot.slane %v2429_v58, 4  ;;  %v2434_v43 = vrot.slane %v2432_v41, 5  ;;  %v2439_v0 = vrot.slane %v2437_v31, 4  ;;  %v2591_v50 = vrot.slane %v6481_v52, 5 }
 0x315   :  { %v3477_v36 = vsel %vm9050_vm13, %v6720_v47, %v3476_v11  ;;  %v2442_v24 = vrot.slane %v2440_v49, 5  ;;  %v5815_v7 = vsel %vm1559_vm0, %v9254_v2, 0  ;;  %v6498_v57 = vcombine.low %v2021_v45, %v2021_v45 }
 0x316   :  { %v6798_v37 = vcombine.high %v3412_v35, %v3477_v36  ;;  %v2435_v10 = vor.u32 %v2434_v43, %v2431_v8  ;;  %7400 = vmatpush3.bf16.msra.mxu0 %v5815_v7  ;;  %v6797_v6 = vcombine.low %v3412_v35, %v3477_v36  ;;  %v6499_v51 = vcombine.low %v9433_v55, %v9433_v55  ;;  %v1999_v7 = vld [vmem:[#allocation2 + $0x44] sm:$0x1] }
 0x317   :  { %v2443_v46 = vor.u32 %v2442_v24, %v2439_v0  ;;  %v2717_v33 = vshrl.u32 %v6498_v57, 16  ;;  %v2720_v9 = vshll.u32 %v6498_v57, 16  ;;  %7370 = vmatpush3.bf16.msra.mxu1 %v7670_v54  ;;  %v9448_v25 = vcombine.low %v9444_v4, %v9444_v4 }
 0x318   :  { %5466 = vmatprep.mubr.bf16.mxu0 %v6798_v37  ;;  %v6550_v2 = vcombine.low %v2435_v10, %v2590_v22  ;;  %v6555_v40 = vcombine.high %v2435_v10, %v2590_v22  ;;  %v2725_v32 = vshrl.u32 %v6499_v51, 16  ;;  %v2728_v14 = vshll.u32 %v6499_v51, 16  ;;  %7371 = vmatprep.subr.bf16.mxu1 %v7677_v28  ;;  %v2000_v51 = vld [vmem:[#allocation2 + $0x50] sm:$0x1] }
 0x319   :  { %v6561_v20 = vcombine.low %v2443_v46, %v2591_v50  ;;  %v6566_v38 = vcombine.high %v2443_v46, %v2591_v50  ;;  %5467 = vmatmul.mubr.bf16.gmra.mrb[52].mxu0 %v6797_v6  ;;  %v2719_v16 = vrot.slane %v2717_v33, 4  ;;  %v2722_v62 = vrot.slane %v2720_v9, 5  ;;  %v9468_v46 = vld [vmem:[#allocation2 + $0x64] sm:$0xf] }
 0x31a   :  { %v3388_v56 = vshrl.u32 %v6550_v2, 16  ;;  %v3393_v21 = vshrl.u32 %v6555_v40, 16  ;;  %v3396_v26 = vshll.u32 %v6555_v40, 16  ;;  %v2727_v27 = vrot.slane %v2725_v32, 4  ;;  %v9470_v2 = vld [vmem:[#allocation2 + $0x70] sm:$0xf] }
 0x31b   :  { %v3453_v29 = vshrl.u32 %v6561_v20, 16  ;;  %v3458_v39 = vshrl.u32 %v6566_v38, 16  ;;  %v3461_v23 = vshll.u32 %v6566_v38, 16  ;;  %v2723_v44 = vor.u32 %v2722_v62, %v2719_v16  ;;  %7372 = vmatpush3.bf16.msra.mxu1 %v7677_v28  ;;  %v7705_v20 = vld [vmem:[%s10123_s4 + $0x230] sm:$0xff]  }
 0x31c   :  { %v6714_v60 = vrot.slane %v3388_v56, 11  ;;  %v3395_v54 = vrot.slane %v3393_v21, 7  ;;  %v2730_v63 = vrot.slane %v2728_v14, 5  ;;  %v6467_v18 = vcombine.low %v7758_v1, %v7758_v1  ;;  %7373 = vmatprep.subr.bf16.mxu1 %v7684_v48 }
 0x31d   :  { %v6719_v30 = vrot.slane %v3453_v29, 11  ;;  %v3460_v17 = vrot.slane %v3458_v39, 7  ;;  %v6573_v42 = vcombine.low %v2020_v34, %v2723_v44  ;;  %v6579_v19 = vsel %vm6531_vm10, %v2021_v45, %v2723_v44  ;;  %v7698_v45 = vld [vmem:[%s10123_s4 + $0x228] sm:$0xff]   ;;  %v9484_v39 = vld [vmem:[#allocation2 + $0x58] sm:$0xf] }
 0x31e   :  { %v3398_v52 = vor.u32 %v3396_v26, %v3395_v54  ;;  %v2731_v47 = vor.u32 %v2730_v63, %v2727_v27  ;;  %v3536_v58 = vshrl.u32 %v6579_v19, 16  ;;  %v3539_v41 = vshll.u32 %v6579_v19, 16  ;;  %v9488_v44 = vld [vmem:[#allocation2 + $0x64] sm:$0xf] }
 0x31f   :  { %v3463_v31 = vor.u32 %v3461_v23, %v3460_v17  ;;  %v3531_v35 = vshrl.u32 %v6573_v42, 16  ;;  %v2445_v11 = vshrl.u32 %v9448_v25, 16  ;;  %v2448_v49 = vshll.u32 %v9448_v25, 16  ;;  %7374 = vmatpush3.bf16.msra.mxu1 %v7684_v48 }
 0x320   :  { %v3399_v22 = vsel %vm9050_vm13, %v6714_v60, %v3398_v52  ;;  %v6584_v8 = vcombine.low %v2022_v15, %v2731_v47  ;;  %v6590_v43 = vsel %vm6531_vm10, %v9433_v55, %v2731_v47  ;;  %v3538_v0 = vrot.slane %v3536_v58, 7  ;;  %7375 = vmatprep.subr.bf16.mxu1 %v7691_v13 }
 0x321   :  { %v3464_v50 = vsel %vm9050_vm13, %v6719_v30, %v3463_v31  ;;  %v6725_v28 = vrot.slane %v3531_v35, 11  ;;  %v3601_v36 = vshrl.u32 %v6590_v43, 16  ;;  %v3604_v24 = vshll.u32 %v6590_v43, 16 }
 0x322   :  { %v6796_v57 = vcombine.high %v3399_v22, %v3464_v50  ;;  %v6795_v37 = vcombine.low %v3399_v22, %v3464_v50  ;;  %v3541_v10 = vor.u32 %v3539_v41, %v3538_v0  ;;  %v3596_v6 = vshrl.u32 %v6584_v8, 16  ;;  %v2024_v0 = vld [vmem:[#allocation2 + $0x60] sm:$0x8] }
 0x323   :  { %v3603_v55 = vrot.slane %v3601_v36, 7  ;;  %v2447_v33 = vrot.slane %v2445_v11, 4  ;;  %v2450_v9 = vrot.slane %v2448_v49, 5  ;;  %v2453_v25 = vshrl.u32 %v6467_v18, 16  ;;  %7376 = vmatpush3.bf16.msra.mxu1 %v7691_v13  ;;  %v7712_v13 = vld [vmem:[%s10123_s4 + $0x238] sm:$0xff]  }
 0x324   :  { %5369 = vmatprep.mubr.bf16.mxu1 %v6796_v57  ;;  %v3542_v40 = vsel %vm9050_vm13, %v6725_v28, %v3541_v10  ;;  %v6730_v32 = vrot.slane %v3596_v6, 11  ;;  %v2456_v14 = vshll.u32 %v6467_v18, 16  ;;  %v6482_v48 = vcombine.low %v9444_v4, %v1999_v7  ;;  %7377 = vmatprep.subr.bf16.mxu1 %v7698_v45 }
 0x325   :  { %5370 = vmatmul.mubr.bf16.gmra.mrb[36].mxu1 %v6795_v37  ;;  %v3606_v38 = vor.u32 %v3604_v24, %v3603_v55  ;;  %v2451_v16 = vor.u32 %v2450_v9, %v2447_v33  ;;  %v2455_v62 = vrot.slane %v2453_v25, 4  ;;  %v6483_v56 = vcombine.low %v7758_v1, %v2000_v51  ;;  %v2001_v55 = vld [vmem:[#allocation2 + $0x5c] sm:$0x1] }
 0x326   :  { %v2458_v21 = vrot.slane %v2456_v14, 5  ;;  %v2592_v26 = vrot.slane %v6482_v48, 5  ;;  %v6500_v34 = vcombine.low %v9468_v46, %v9468_v46  ;;  %v6501_v27 = vcombine.low %v9470_v2, %v9470_v2 }
 0x327   :  { %v3607_v4 = vsel %vm9050_vm13, %v6730_v32, %v3606_v38  ;;  %v2593_v29 = vrot.slane %v6483_v56, 5  ;;  %v6468_v23 = vcombine.low %v9484_v39, %v9484_v39  ;;  %v9492_v60 = vcombine.low %v9488_v44, %v9488_v44  ;;  %7378 = vmatpush3.bf16.msra.mxu1 %v7698_v45 }
 0x328   :  { %v6807_v54 = vcombine.high %v3542_v40, %v3607_v4  ;;  %v2459_v63 = vor.u32 %v2458_v21, %v2455_v62  ;;  %v6572_v1 = vcombine.low %v2451_v16, %v2592_v26  ;;  %v6577_v18 = vcombine.high %v2451_v16, %v2592_v26  ;;  %7379 = vmatprep.subr.bf16.mxu1 %v7705_v20 }
 0x329   :  { %v6806_v30 = vcombine.low %v3542_v40, %v3607_v4  ;;  %v2733_v17 = vshrl.u32 %v6500_v34, 16  ;;  %v2736_v15 = vshll.u32 %v6500_v34, 16  ;;  %v2741_v42 = vshrl.u32 %v6501_v27, 16  ;;  %v2026_v40 = vld [vmem:[#allocation2 + $0x6c] sm:$0x8] }
 0x32a   :  { %5474 = vmatprep.mubr.bf16.mxu0 %v6807_v54  ;;  %v6583_v19 = vcombine.low %v2459_v63, %v2593_v29  ;;  %v6588_v52 = vcombine.high %v2459_v63, %v2593_v29  ;;  %v3518_v47 = vshrl.u32 %v6572_v1, 16  ;;  %v3523_v58 = vshrl.u32 %v6577_v18, 16  ;;  %v2002_v29 = vld [vmem:[#allocation2 + $0x68] sm:$0x1] }
 0x32b   :  { %v3526_v41 = vshll.u32 %v6577_v18, 16  ;;  %5475 = vmatmul.mubr.bf16.gmra.mrb[56].mxu0 %v6806_v30  ;;  %v2735_v31 = vrot.slane %v2733_v17, 4  ;;  %v2738_v35 = vrot.slane %v2736_v15, 5  ;;  %v2743_v11 = vrot.slane %v2741_v42, 4  ;;  %7380 = vmatpush3.bf16.msra.mxu1 %v7705_v20 }
 0x32c   :  { %v6724_v49 = vrot.slane %v3518_v47, 11  ;;  %v3525_v22 = vrot.slane %v3523_v58, 7  ;;  %v3583_v8 = vshrl.u32 %v6583_v19, 16  ;;  %v3588_v43 = vshrl.u32 %v6588_v52, 16  ;;  %7381 = vmatprep.subr.bf16.mxu1 %v7712_v13 }
 0x32d   :  { %v3591_v45 = vshll.u32 %v6588_v52, 16  ;;  %v2739_v50 = vor.u32 %v2738_v35, %v2735_v31  ;;  %v2744_v28 = vshll.u32 %v6501_v27, 16  ;;  %v2461_v36 = vshrl.u32 %v6468_v23, 16 }
 0x32e   :  { %v3528_v24 = vor.u32 %v3526_v41, %v3525_v22  ;;  %v6729_v7 = vrot.slane %v3583_v8, 11  ;;  %v3590_v57 = vrot.slane %v3588_v43, 7  ;;  %v2464_v37 = vshll.u32 %v6468_v23, 16  ;;  %v9508_v23 = vld [vmem:[#allocation2 + $0x94] sm:$0xf] }
 0x32f   :  { %v2746_v10 = vrot.slane %v2744_v28, 5  ;;  %v6595_v6 = vcombine.low %v2024_v0, %v2739_v50  ;;  %v6601_v51 = vsel %vm6531_vm10, %v9468_v46, %v2739_v50  ;;  %v2463_v33 = vrot.slane %v2461_v36, 4  ;;  %7382 = vmatpush3.bf16.msra.mxu1 %v7712_v13  ;;  %v9510_v13 = vld [vmem:[#allocation2 + $0xa0] sm:$0xf] }
 0x330   :  { %v3529_v9 = vsel %vm9050_vm13, %v6724_v49, %v3528_v24  ;;  %v3593_v25 = vor.u32 %v3591_v45, %v3590_v57  ;;  %v3666_v32 = vshrl.u32 %v6601_v51, 16  ;;  %v3669_v14 = vshll.u32 %v6601_v51, 16 }
 0x331   :  { %v2747_v48 = vor.u32 %v2746_v10, %v2743_v11  ;;  %v3661_v20 = vshrl.u32 %v6595_v6, 16  ;;  %v2466_v38 = vrot.slane %v2464_v37, 5  ;;  %v2469_v16 = vshrl.u32 %v9492_v60, 16 }
 0x332   :  { %v3594_v62 = vsel %vm9050_vm13, %v6729_v7, %v3593_v25  ;;  %v3668_v56 = vrot.slane %v3666_v32, 7  ;;  %v2472_v46 = vshll.u32 %v9492_v60, 16  ;;  %v6484_v21 = vcombine.low %v9484_v39, %v2001_v55  ;;  %v2003_v55 = vld [vmem:[#allocation2 + $0x8c] sm:$0x1] }
 0x333   :  { %v6805_v26 = vcombine.high %v3529_v9, %v3594_v62  ;;  %v6804_v34 = vcombine.low %v3529_v9, %v3594_v62  ;;  %v6606_v27 = vcombine.low %v2026_v40, %v2747_v48  ;;  %v6612_v4 = vsel %vm6531_vm10, %v9470_v2, %v2747_v48  ;;  %v2028_v48 = vld [vmem:[#allocation2 + $0x90] sm:$0x8] }
 0x334   :  { %v6735_v54 = vrot.slane %v3661_v20, 11  ;;  %v3671_v63 = vor.u32 %v3669_v14, %v3668_v56  ;;  %v3731_v1 = vshrl.u32 %v6612_v4, 16  ;;  %v3734_v18 = vshll.u32 %v6612_v4, 16  ;;  %v2030_v56 = vld [vmem:[#allocation2 + $0x9c] sm:$0x8] }
 0x335   :  { %5377 = vmatprep.mubr.bf16.mxu1 %v6805_v26  ;;  %v3726_v30 = vshrl.u32 %v6606_v27, 16  ;;  %v2467_v60 = vor.u32 %v2466_v38, %v2463_v33  ;;  %v2471_v17 = vrot.slane %v2469_v16, 4  ;;  %v2474_v39 = vrot.slane %v2472_v46, 5  ;;  %v7761_v38 = vld [vmem:[#allocation2 + $0x88] sm:$0xf] }
 0x336   :  { %5378 = vmatmul.mubr.bf16.gmra.mrb[40].mxu1 %v6804_v34  ;;  %v3672_v15 = vsel %vm9050_vm13, %v6735_v54, %v3671_v63  ;;  %v3733_v42 = vrot.slane %v3731_v1, 7  ;;  %v6485_v2 = vcombine.low %v9488_v44, %v2002_v29  ;;  %v2594_v19 = vrot.slane %v6484_v21, 5  ;;  %v7762_v21 = vld [vmem:[#allocation2 + $0x94] sm:$0xf] }
 0x337   :  { %v6740_v52 = vrot.slane %v3726_v30, 11  ;;  %v2475_v47 = vor.u32 %v2474_v39, %v2471_v17  ;;  %v6502_v58 = vcombine.low %v9508_v23, %v9508_v23  ;;  %v6503_v41 = vcombine.low %v9510_v13, %v9510_v13 }
 0x338   :  { %v3736_v31 = vor.u32 %v3734_v18, %v3733_v42  ;;  %v2595_v35 = vrot.slane %v6485_v2, 5  ;;  %v6594_v11 = vcombine.low %v2467_v60, %v2594_v19  ;;  %v6599_v49 = vcombine.high %v2467_v60, %v2594_v19 }
 0x339   :  { %v2749_v22 = vshrl.u32 %v6502_v58, 16  ;;  %v2752_v8 = vshll.u32 %v6502_v58, 16  ;;  %v2757_v43 = vshrl.u32 %v6503_v41, 16  ;;  %v2760_v0 = vshll.u32 %v6503_v41, 16 }
 0x33a   :  { %v3737_v44 = vsel %vm9050_vm13, %v6740_v52, %v3736_v31  ;;  %v6605_v45 = vcombine.low %v2475_v47, %v2595_v35  ;;  %v6610_v50 = vcombine.high %v2475_v47, %v2595_v35  ;;  %v3648_v28 = vshrl.u32 %v6594_v11, 16  ;;  %v2004_v47 = vld [vmem:[#allocation2 + $0x98] sm:$0x1]  ;;  %v9529_v11 = vld [vmem:[#allocation2 + $0xac] sm:$0xf] }
 0x33b   :  { %v6816_v36 = vcombine.high %v3672_v15, %v3737_v44  ;;  %v3653_v24 = vshrl.u32 %v6599_v49, 16  ;;  %v3656_v7 = vshll.u32 %v6599_v49, 16  ;;  %v6815_v57 = vcombine.low %v3672_v15, %v3737_v44 }
 0x33c   :  { %v6734_v37 = vrot.slane %v3648_v28, 11  ;;  %v3713_v10 = vshrl.u32 %v6605_v45, 16  ;;  %v3718_v6 = vshrl.u32 %v6610_v50, 16  ;;  %v3721_v51 = vshll.u32 %v6610_v50, 16 }
 0x33d   :  { %5482 = vmatprep.mubr.bf16.mxu0 %v6816_v36  ;;  %v3655_v33 = vrot.slane %v3653_v24, 7  ;;  %v2751_v9 = vrot.slane %v2749_v22, 4  ;;  %v2754_v25 = vrot.slane %v2752_v8, 5  ;;  %v2759_v40 = vrot.slane %v2757_v43, 4 }
 0x33e   :  { %v6739_v32 = vrot.slane %v3713_v10, 11  ;;  %v3720_v14 = vrot.slane %v3718_v6, 7  ;;  %5483 = vmatmul.mubr.bf16.gmra.mrb[60].mxu0 %v6815_v57  ;;  %v2762_v20 = vrot.slane %v2760_v0, 5  ;;  %v6470_v16 = vcombine.low %v7761_v38, %v7761_v38  ;;  %v9531_v0 = vld [vmem:[#allocation2 + $0xb8] sm:$0xf] }
 0x33f   :  { %v3658_v62 = vor.u32 %v3656_v7, %v3655_v33  ;;  %v2755_v46 = vor.u32 %v2754_v25, %v2751_v9  ;;  %v6471_v26 = vcombine.low %v7762_v21, %v7762_v21  ;;  %v6486_v34 = vcombine.low %v7761_v38, %v2003_v55 }
 0x340   :  { %v3723_v27 = vor.u32 %v3721_v51, %v3720_v14  ;;  %v2763_v4 = vor.u32 %v2762_v20, %v2759_v40  ;;  %v2477_v29 = vshrl.u32 %v6470_v16, 16  ;;  %v2480_v54 = vshll.u32 %v6470_v16, 16 }
 0x341   :  { %v3659_v63 = vsel %vm9050_vm13, %v6734_v37, %v3658_v62  ;;  %v6617_v1 = vcombine.low %v2028_v48, %v2755_v46  ;;  %v6623_v18 = vsel %vm6531_vm10, %v9508_v23, %v2755_v46  ;;  %v2485_v30 = vshrl.u32 %v6471_v26, 16 }
 0x342   :  { %v3724_v60 = vsel %vm9050_vm13, %v6739_v32, %v3723_v27  ;;  %v6628_v17 = vcombine.low %v2030_v56, %v2763_v4  ;;  %v6634_v39 = vsel %vm6531_vm10, %v9510_v13, %v2763_v4  ;;  %v3796_v15 = vshrl.u32 %v6623_v18, 16 }
 0x343   :  { %v6814_v42 = vcombine.high %v3659_v63, %v3724_v60  ;;  %v6813_v2 = vcombine.low %v3659_v63, %v3724_v60  ;;  %v3791_v19 = vshrl.u32 %v6617_v1, 16  ;;  %v3799_v52 = vshll.u32 %v6623_v18, 16 }
 0x344   :  { %v3798_v58 = vrot.slane %v3796_v15, 7  ;;  %v3856_v41 = vshrl.u32 %v6628_v17, 16  ;;  %v3861_v31 = vshrl.u32 %v6634_v39, 16  ;;  %v3864_v35 = vshll.u32 %v6634_v39, 16  ;;  %v7763_v15 = vld [vmem:[#allocation2 + $0xa0] sm:$0xf] }
 0x345   :  { %5385 = vmatprep.mubr.bf16.mxu1 %v6814_v42  ;;  %v6745_v49 = vrot.slane %v3791_v19, 11  ;;  %v2479_v22 = vrot.slane %v2477_v29, 4  ;;  %v2482_v8 = vrot.slane %v2480_v54, 5  ;;  %v2487_v43 = vrot.slane %v2485_v30, 4  ;;  %v2005_v54 = vld [vmem:[#allocation2 + $0xa4] sm:$0x1] }
 0x346   :  { %5386 = vmatmul.mubr.bf16.gmra.mrb[44].mxu1 %v6813_v2  ;;  %v3801_v44 = vor.u32 %v3799_v52, %v3798_v58  ;;  %v6750_v45 = vrot.slane %v3856_v41, 11  ;;  %v3863_v50 = vrot.slane %v3861_v31, 7  ;;  %v2488_v28 = vshll.u32 %v6471_v26, 16  ;;  %v2032_v30 = vld [vmem:[#allocation2 + $0xa8] sm:$0x8] }
 0x347   :  { %v2483_v36 = vor.u32 %v2482_v8, %v2479_v22  ;;  %v6487_v24 = vcombine.low %v7762_v21, %v2004_v47  ;;  %v2596_v7 = vrot.slane %v6486_v34, 5  ;;  %v6504_v57 = vcombine.low %v9529_v11, %v9529_v11  ;;  %v7764_v2 = vld [vmem:[#allocation2 + $0xac] sm:$0xf] }
 0x348   :  { %v3802_v37 = vsel %vm9050_vm13, %v6745_v49, %v3801_v44  ;;  %v3866_v10 = vor.u32 %v3864_v35, %v3863_v50  ;;  %v2490_v6 = vrot.slane %v2488_v28, 5  ;;  %v6505_v51 = vcombine.low %v9531_v0, %v9531_v0  ;;  %v2034_v35 = vld [vmem:[#allocation2 + $0xb4] sm:$0x8] }
 0x349   :  { %v2597_v55 = vrot.slane %v6487_v24, 5  ;;  %v6616_v33 = vcombine.low %v2483_v36, %v2596_v7  ;;  %v6621_v9 = vcombine.high %v2483_v36, %v2596_v7  ;;  %v2765_v25 = vshrl.u32 %v6504_v57, 16 }
 0x34a   :  { %v3867_v40 = vsel %vm9050_vm13, %v6750_v45, %v3866_v10  ;;  %v2491_v32 = vor.u32 %v2490_v6, %v2487_v43  ;;  %v2768_v14 = vshll.u32 %v6504_v57, 16  ;;  %v2773_v48 = vshrl.u32 %v6505_v51, 16 }
 0x34b   :  { %v6825_v20 = vcombine.high %v3802_v37, %v3867_v40  ;;  %v3778_v38 = vshrl.u32 %v6616_v33, 16  ;;  %v3783_v16 = vshrl.u32 %v6621_v9, 16  ;;  %v3786_v62 = vshll.u32 %v6621_v9, 16 }
 0x34c   :  { %v6627_v56 = vcombine.low %v2491_v32, %v2597_v55  ;;  %v6632_v46 = vcombine.high %v2491_v32, %v2597_v55  ;;  %v6824_v21 = vcombine.low %v3802_v37, %v3867_v40  ;;  %v2767_v26 = vrot.slane %v2765_v25, 4 }
 0x34d   :  { %5490 = vmatprep.mubr.bf16.mxu0 %v6825_v20  ;;  %v6744_v34 = vrot.slane %v3778_v38, 11  ;;  %v3785_v27 = vrot.slane %v3783_v16, 7  ;;  %v2770_v4 = vrot.slane %v2768_v14, 5  ;;  %v2775_v29 = vrot.slane %v2773_v48, 4  ;;  %v9549_v20 = vld [vmem:[#allocation2 + $0xc4] sm:$0xf] }
 0x34e   :  { %v3843_v63 = vshrl.u32 %v6627_v56, 16  ;;  %v3848_v1 = vshrl.u32 %v6632_v46, 16  ;;  %v3851_v18 = vshll.u32 %v6632_v46, 16  ;;  %5491 = vmatmul.mubr.bf16.gmra.mrb[64].mxu0 %v6824_v21  ;;  %v2776_v60 = vshll.u32 %v6505_v51, 16  ;;  %v2006_v51 = vld [vmem:[#allocation2 + $0xb0] sm:$0x1] }
 0x34f   :  { %v3788_v17 = vor.u32 %v3786_v62, %v3785_v27  ;;  %v2771_v39 = vor.u32 %v2770_v4, %v2767_v26  ;;  %v6472_v42 = vcombine.low %v7763_v15, %v7763_v15  ;;  %v6473_v19 = vcombine.low %v7764_v2, %v7764_v2  ;;  %v9551_v46 = vld [vmem:[#allocation2 + $0xd0] sm:$0xf] }
 0x350   :  { %v6749_v52 = vrot.slane %v3843_v63, 11  ;;  %v3850_v47 = vrot.slane %v3848_v1, 7  ;;  %v2778_v58 = vrot.slane %v2776_v60, 5  ;;  %v6488_v41 = vcombine.low %v7763_v15, %v2005_v54  ;;  %v9559_v60 = vld [vmem:[#allocation2 + $0xb8] sm:$0xf] }
 0x351   :  { %v3789_v31 = vsel %vm9050_vm13, %v6744_v34, %v3788_v17  ;;  %v6639_v49 = vcombine.low %v2032_v30, %v2771_v39  ;;  %v6645_v22 = vsel %vm6531_vm10, %v9529_v11, %v2771_v39  ;;  %v2493_v8 = vshrl.u32 %v6472_v42, 16 }
 0x352   :  { %v3853_v43 = vor.u32 %v3851_v18, %v3850_v47  ;;  %v2779_v44 = vor.u32 %v2778_v58, %v2775_v29  ;;  %v3926_v45 = vshrl.u32 %v6645_v22, 16  ;;  %v3929_v50 = vshll.u32 %v6645_v22, 16 }
 0x353   :  { %v3921_v28 = vshrl.u32 %v6639_v49, 16  ;;  %v2495_v36 = vrot.slane %v2493_v8, 4  ;;  %v2496_v24 = vshll.u32 %v6472_v42, 16  ;;  %v2501_v7 = vshrl.u32 %v6473_v19, 16 }
 0x354   :  { %v3854_v57 = vsel %vm9050_vm13, %v6749_v52, %v3853_v43  ;;  %v6650_v37 = vcombine.low %v2034_v35, %v2779_v44  ;;  %v6656_v10 = vsel %vm6531_vm10, %v9531_v0, %v2779_v44  ;;  %v3928_v6 = vrot.slane %v3926_v45, 7 }
 0x355   :  { %v6823_v55 = vcombine.high %v3789_v31, %v3854_v57  ;;  %v6822_v33 = vcombine.low %v3789_v31, %v3854_v57  ;;  %v6755_v9 = vrot.slane %v3921_v28, 11  ;;  %v3991_v25 = vshrl.u32 %v6656_v10, 16 }
 0x356   :  { %v3931_v40 = vor.u32 %v3929_v50, %v3928_v6  ;;  %v3986_v32 = vshrl.u32 %v6650_v37, 16  ;;  %v3994_v14 = vshll.u32 %v6656_v10, 16  ;;  %v2498_v48 = vrot.slane %v2496_v24, 5  ;;  %v7766_v10 = vld [vmem:[#allocation2 + $0xc4] sm:$0xf] }
 0x357   :  { %5393 = vmatprep.mubr.bf16.mxu1 %v6823_v55  ;;  %v3993_v38 = vrot.slane %v3991_v25, 7  ;;  %v2503_v16 = vrot.slane %v2501_v7, 4  ;;  %v2504_v62 = vshll.u32 %v6473_v19, 16  ;;  %v6489_v56 = vcombine.low %v7764_v2, %v2006_v51 }
 0x358   :  { %5394 = vmatmul.mubr.bf16.gmra.mrb[48].mxu1 %v6822_v33  ;;  %v3932_v21 = vsel %vm9050_vm13, %v6755_v9, %v3931_v40  ;;  %v6760_v26 = vrot.slane %v3986_v32, 11  ;;  %v2499_v34 = vor.u32 %v2498_v48, %v2495_v36  ;;  %v2598_v27 = vrot.slane %v6488_v41, 5  ;;  %v2036_v36 = vld [vmem:[#allocation2 + $0xc0] sm:$0x8]  ;;  %v2038_v40 = vld [vmem:[#allocation2 + $0xcc] sm:$0x8] }
 0x359   :  { %v3996_v4 = vor.u32 %v3994_v14, %v3993_v38  ;;  %v2506_v29 = vrot.slane %v2504_v62, 5  ;;  %v2599_v54 = vrot.slane %v6489_v56, 5  ;;  %v6506_v63 = vcombine.low %v9549_v20, %v9549_v20 }
 0x35a   :  { %v6638_v1 = vcombine.low %v2499_v34, %v2598_v27  ;;  %v6643_v18 = vcombine.high %v2499_v34, %v2598_v27  ;;  %v6507_v30 = vcombine.low %v9551_v46, %v9551_v46  ;;  %v6474_v17 = vcombine.low %v9559_v60, %v9559_v60 }
 0x35b   :  { %v3997_v39 = vsel %vm9050_vm13, %v6760_v26, %v3996_v4  ;;  %v2507_v15 = vor.u32 %v2506_v29, %v2503_v16  ;;  %v2781_v42 = vshrl.u32 %v6506_v63, 16  ;;  %v2784_v2 = vshll.u32 %v6506_v63, 16 }
 0x35c   :  { %v6834_v19 = vcombine.high %v3932_v21, %v3997_v39  ;;  %v3908_v52 = vshrl.u32 %v6638_v1, 16  ;;  %v3913_v47 = vshrl.u32 %v6643_v18, 16  ;;  %v3916_v58 = vshll.u32 %v6643_v18, 16  ;;  %v2007_v1 = vld [vmem:[#allocation2 + $0xbc] sm:$0x1] }
 0x35d   :  { %v6649_v41 = vcombine.low %v2507_v15, %v2599_v54  ;;  %v6654_v31 = vcombine.high %v2507_v15, %v2599_v54  ;;  %v6833_v35 = vcombine.low %v3932_v21, %v3997_v39  ;;  %v2783_v49 = vrot.slane %v2781_v42, 4  ;;  %v2008_v15 = vld [vmem:[#allocation2 + $0xc8] sm:$0x1]  ;;  %v9573_v42 = vld [vmem:[#allocation2 + $0xdc] sm:$0xf] }
 0x35e   :  { %5498 = vmatprep.mubr.bf16.mxu0 %v6834_v19  ;;  %v6754_v22 = vrot.slane %v3908_v52, 11  ;;  %v3915_v8 = vrot.slane %v3913_v47, 7  ;;  %v2786_v43 = vrot.slane %v2784_v2, 5  ;;  %v2789_v44 = vshrl.u32 %v6507_v30, 16 }
 0x35f   :  { %v3973_v45 = vshrl.u32 %v6649_v41, 16  ;;  %v3978_v50 = vshrl.u32 %v6654_v31, 16  ;;  %v3981_v28 = vshll.u32 %v6654_v31, 16  ;;  %5499 = vmatmul.mubr.bf16.gmra.mrb[68].mxu0 %v6833_v35  ;;  %v2792_v24 = vshll.u32 %v6507_v30, 16 }
 0x360   :  { %v3918_v7 = vor.u32 %v3916_v58, %v3915_v8  ;;  %v2787_v57 = vor.u32 %v2786_v43, %v2783_v49  ;;  %v2791_v37 = vrot.slane %v2789_v44, 4  ;;  %v6475_v6 = vcombine.low %v7766_v10, %v7766_v10  ;;  %v9575_v58 = vld [vmem:[#allocation2 + $0xe8] sm:$0xf] }
 0x361   :  { %v6759_v51 = vrot.slane %v3973_v45, 11  ;;  %v3980_v55 = vrot.slane %v3978_v50, 7  ;;  %v2794_v33 = vrot.slane %v2792_v24, 5  ;;  %v2509_v9 = vshrl.u32 %v6474_v17, 16 }
 0x362   :  { %v3919_v25 = vsel %vm9050_vm13, %v6754_v22, %v3918_v7  ;;  %v6661_v32 = vcombine.low %v2036_v36, %v2787_v57  ;;  %v6667_v14 = vsel %vm6531_vm10, %v9549_v20, %v2787_v57  ;;  %v2512_v48 = vshll.u32 %v6474_v17, 16 }
 0x363   :  { %v3983_v38 = vor.u32 %v3981_v28, %v3980_v55  ;;  %v2795_v16 = vor.u32 %v2794_v33, %v2791_v37  ;;  %v4056_v62 = vshrl.u32 %v6667_v14, 16  ;;  %v4059_v56 = vshll.u32 %v6667_v14, 16  ;;  %v9584_v37 = vld [vmem:[#allocation2 + $0xd0] sm:$0xf] }
 0x364   :  { %v4051_v21 = vshrl.u32 %v6661_v32, 16  ;;  %v2511_v26 = vrot.slane %v2509_v9, 4  ;;  %v2514_v34 = vrot.slane %v2512_v48, 5  ;;  %v2517_v27 = vshrl.u32 %v6475_v6, 16 }
 0x365   :  { %v3984_v4 = vsel %vm9050_vm13, %v6759_v51, %v3983_v38  ;;  %v6672_v29 = vcombine.low %v2038_v40, %v2795_v16  ;;  %v6678_v54 = vsel %vm6531_vm10, %v9551_v46, %v2795_v16  ;;  %v4058_v63 = vrot.slane %v4056_v62, 7  ;;  %v2040_v16 = vld [vmem:[#allocation2 + $0xd8] sm:$0x8] }
 0x366   :  { %v6832_v18 = vcombine.high %v3919_v25, %v3984_v4  ;;  %v6831_v30 = vcombine.low %v3919_v25, %v3984_v4  ;;  %v6765_v17 = vrot.slane %v4051_v21, 11  ;;  %v4121_v39 = vshrl.u32 %v6678_v54, 16 }
 0x367   :  { %v4061_v2 = vor.u32 %v4059_v56, %v4058_v63  ;;  %v4116_v19 = vshrl.u32 %v6672_v29, 16  ;;  %v4124_v52 = vshll.u32 %v6678_v54, 16  ;;  %v2515_v47 = vor.u32 %v2514_v34, %v2511_v26 }
 0x368   :  { %5401 = vmatprep.mubr.bf16.mxu1 %v6832_v18  ;;  %v4123_v41 = vrot.slane %v4121_v39, 7  ;;  %v2519_v31 = vrot.slane %v2517_v27, 4  ;;  %v2520_v35 = vshll.u32 %v6475_v6, 16  ;;  %v6490_v49 = vcombine.low %v9559_v60, %v2007_v1 }
 0x369   :  { %5402 = vmatmul.mubr.bf16.gmra.mrb[52].mxu1 %v6831_v30  ;;  %v4062_v22 = vsel %vm9050_vm13, %v6765_v17, %v4061_v2  ;;  %v6770_v8 = vrot.slane %v4116_v19, 11  ;;  %v6491_v43 = vcombine.low %v7766_v10, %v2008_v15  ;;  %v6508_v44 = vcombine.low %v9573_v42, %v9573_v42 }
 0x36a   :  { %v4126_v45 = vor.u32 %v4124_v52, %v4123_v41  ;;  %v2522_v50 = vrot.slane %v2520_v35, 5  ;;  %v2600_v28 = vrot.slane %v6490_v49, 5  ;;  %v6509_v36 = vcombine.low %v9575_v58, %v9575_v58 }
 0x36b   :  { %v2601_v24 = vrot.slane %v6491_v43, 5  ;;  %v2797_v7 = vshrl.u32 %v6508_v44, 16  ;;  %v2800_v57 = vshll.u32 %v6508_v44, 16  ;;  %v9588_v60 = vcombine.low %v9584_v37, %v9584_v37 }
 0x36c   :  { %v4127_v10 = vsel %vm9050_vm13, %v6770_v8, %v4126_v45  ;;  %v2523_v6 = vor.u32 %v2522_v50, %v2519_v31  ;;  %v6660_v51 = vcombine.low %v2515_v47, %v2600_v28  ;;  %v6665_v55 = vcombine.high %v2515_v47, %v2600_v28  ;;  %v2042_v47 = vld [vmem:[#allocation2 + $0xe4] sm:$0x8]  ;;  %v7768_v28 = vld [vmem:[#allocation2 + $0xdc] sm:$0xf] }
 0x36d   :  { %v6843_v33 = vcombine.high %v4062_v22, %v4127_v10  ;;  %v6842_v9 = vcombine.low %v4062_v22, %v4127_v10  ;;  %v2799_v25 = vrot.slane %v2797_v7, 4  ;;  %v2802_v40 = vrot.slane %v2800_v57, 5 }
 0x36e   :  { %v6671_v32 = vcombine.low %v2523_v6, %v2601_v24  ;;  %v6676_v14 = vcombine.high %v2523_v6, %v2601_v24  ;;  %v4038_v48 = vshrl.u32 %v6660_v51, 16  ;;  %v4043_v38 = vshrl.u32 %v6665_v55, 16 }
 0x36f   :  { %5506 = vmatprep.mubr.bf16.mxu0 %v6843_v33  ;;  %v4046_v62 = vshll.u32 %v6665_v55, 16  ;;  %v2803_v56 = vor.u32 %v2802_v40, %v2799_v25  ;;  %v2805_v21 = vshrl.u32 %v6509_v36, 16  ;;  %v2808_v26 = vshll.u32 %v6509_v36, 16  ;;  %v9592_v34 = vpop.f32.mrb[16].mxu0  ;;  %v2009_v55 = vld [vmem:[#allocation2 + $0xd4] sm:$0x1] }
 0x370   :  { %v6764_v27 = vrot.slane %v4038_v48, 11  ;;  %v4045_v4 = vrot.slane %v4043_v38, 7  ;;  %v4103_v29 = vshrl.u32 %v6671_v32, 16  ;;  %v4108_v54 = vshrl.u32 %v6676_v14, 16  ;;  %5507 = vmatmul.mubr.bf16.gmra.mrb[72].mxu0 %v6842_v9  ;;  %v9594_v63 = vpop.f32.mrb[17].mxu0 }
 0x371   :  { %v4111_v1 = vshll.u32 %v6676_v14, 16  ;;  %v2807_v18 = vrot.slane %v2805_v21, 4  ;;  %v2810_v30 = vrot.slane %v2808_v26, 5  ;;  %v6683_v17 = vcombine.low %v2040_v16, %v2803_v56  ;;  %v9596_v39 = vpop.f32.mrb[0].mxu1  ;;  %v9598_v15 = vpop.f32.mrb[18].mxu0 }
 0x372   :  { %v4048_v2 = vor.u32 %v4046_v62, %v4045_v4  ;;  %v6769_v19 = vrot.slane %v4103_v29, 11  ;;  %v4110_v52 = vrot.slane %v4108_v54, 7  ;;  %v6689_v41 = vsel %vm6531_vm10, %v9573_v42, %v2803_v56  ;;  %v9602_v31 = vpop.f32.mrb[1].mxu1  ;;  %v9604_v35 = vpop.f32.mrb[19].mxu0  ;;  %v2010_v40 = vld [vmem:[#allocation2 + $0xe0] sm:$0x1] }
 0x373   :  { %v2811_v49 = vor.u32 %v2810_v30, %v2807_v18  ;;  %v4181_v22 = vshrl.u32 %v6683_v17, 16  ;;  %v4186_v8 = vshrl.u32 %v6689_v41, 16  ;;  %v4189_v43 = vshll.u32 %v6689_v41, 16  ;;  %v9606_v44 = vpop.f32.mrb[2].mxu1  ;;  %v2044_v62 = vld [vmem:[#allocation2 + $0x20] sm:$0x1] }
 0x374   :  { %v4049_v45 = vsel %vm9050_vm13, %v6764_v27, %v4048_v2  ;;  %v4113_v50 = vor.u32 %v4111_v1, %v4110_v52  ;;  %v6477_v36 = vcombine.low %v7768_v28, %v7768_v28  ;;  %v2525_v24 = vshrl.u32 %v9588_v60, 16  ;;  %v9611_v7 = vpop.f32.mrb[3].mxu1  ;;  %v2045_v56 = vld [vmem:[#allocation2 + $0x2c] sm:$0x1] }
 0x375   :  { %v6694_v57 = vcombine.low %v2042_v47, %v2811_v49  ;;  %v6700_v10 = vsel %vm6531_vm10, %v9575_v58, %v2811_v49  ;;  %v6775_v6 = vrot.slane %v4181_v22, 11  ;;  %v4188_v51 = vrot.slane %v4186_v8, 7  ;;  %v7769_v8 = vld [vmem:[#allocation2 + $0x1c] sm:$0xf] }
 0x376   :  { %v4114_v33 = vsel %vm9050_vm13, %v6769_v19, %v4113_v50  ;;  %v4251_v9 = vshrl.u32 %v6700_v10, 16  ;;  %v4254_v25 = vshll.u32 %v6700_v10, 16  ;;  %v2527_v32 = vrot.slane %v2525_v24, 4 }
 0x377   :  { %v6841_v14 = vcombine.high %v4049_v45, %v4114_v33  ;;  %v6840_v48 = vcombine.low %v4049_v45, %v4114_v33  ;;  %v4191_v38 = vor.u32 %v4189_v43, %v4188_v51  ;;  %v4246_v16 = vshrl.u32 %v6694_v57, 16  ;;  %v9617_v21 = vpop.f32.mrb[20].mxu0  ;;  %v7770_v45 = vld [vmem:[#allocation2 + $0x28] sm:$0xf] }
 0x378   :  { %v4253_v26 = vrot.slane %v4251_v9, 7  ;;  %v2528_v27 = vshll.u32 %v9588_v60, 16  ;;  %v2533_v4 = vshrl.u32 %v6477_v36, 16  ;;  %v2536_v29 = vshll.u32 %v6477_v36, 16  ;;  %v9620_v54 = vpop.f32.mrb[21].mxu0 }
 0x379   :  { %5409 = vmatprep.mubr.bf16.mxu1 %v6841_v14  ;;  %v4192_v1 = vsel %vm9050_vm13, %v6775_v6, %v4191_v38  ;;  %v6780_v18 = vrot.slane %v4246_v16, 11  ;;  %v6492_v30 = vcombine.low %v9584_v37, %v2009_v55  ;;  %v6493_v17 = vcombine.low %v7768_v28, %v2010_v40  ;;  %v9625_v2 = vpop.f32.mrb[22].mxu0  ;;  %v7715_v55 = vld [vmem:[%s10119_s0 + $0x1b0] ss:$8 sps:$4 sm:$0xff]  }
 0x37a   :  { %5410 = vmatmul.mubr.bf16.gmra.mrb[56].mxu1 %v6840_v48  ;;  %v4256_v19 = vor.u32 %v4254_v25, %v4253_v26  ;;  %v2530_v52 = vrot.slane %v2528_v27, 5  ;;  %v2535_v47 = vrot.slane %v2533_v4, 4  ;;  %v2538_v41 = vrot.slane %v2536_v29, 5  ;;  %v9627_v60 = vpop.f32.mrb[23].mxu0 }
 0x37b   :  { %v2602_v49 = vrot.slane %v6492_v30, 5  ;;  %v2603_v22 = vrot.slane %v6493_v17, 5  ;;  %v6510_v43 = vcombine.low %v7769_v8, %v2044_v62  ;;  %v6511_v50 = vcombine.low %v7770_v45, %v2045_v56 }
 0x37c   :  { %v4257_v36 = vsel %vm9050_vm13, %v6780_v18, %v4256_v19  ;;  %v2531_v37 = vor.u32 %v2530_v52, %v2527_v32  ;;  %v2539_v28 = vor.u32 %v2538_v41, %v2535_v47  ;;  %v6552_v24 = vcombine.low %v9408_v12, %v9408_v12 }
 0x37d   :  { %v6852_v57 = vcombine.high %v4192_v1, %v4257_v36  ;;  %v6851_v10 = vcombine.low %v4192_v1, %v4257_v36  ;;  %v2860_v6 = vrot.slane %v6510_v43, 5  ;;  %v2861_v51 = vrot.slane %v6511_v50, 5 }
 0x37e   :  { %v6682_v33 = vcombine.low %v2531_v37, %v2602_v49  ;;  %v6687_v9 = vcombine.high %v2531_v37, %v2602_v49  ;;  %v6693_v25 = vcombine.low %v2539_v28, %v2603_v22  ;;  %v6698_v40 = vcombine.high %v2539_v28, %v2603_v22  ;;  %v7716_v28 = vld [vmem:[%s10119_s0 + $0x1c0] ss:$8 sps:$4 sm:$0xff]  }
 0x37f   :  { %5514 = vmatprep.mubr.bf16.mxu0 %v6852_v57  ;;  %v6530_v14 = vcombine.low %v2860_v6, %v2860_v6  ;;  %v6536_v48 = vcombine.high %v2860_v6, %v2860_v6  ;;  %v6541_v32 = vcombine.low %v2861_v51, %v2861_v51  ;;  %v6547_v38 = vcombine.high %v2861_v51, %v2861_v51  ;;  %v9636_v16 = vpop.f32.mrb[4].mxu1 }
 0x380   :  { %v4168_v12 = vshrl.u32 %v6682_v33, 16  ;;  %v4173_v62 = vshrl.u32 %v6687_v9, 16  ;;  %v4176_v56 = vshll.u32 %v6687_v9, 16  ;;  %v4233_v26 = vshrl.u32 %v6693_v25, 16  ;;  %5515 = vmatmul.mubr.bf16.gmra.mrb[76].mxu0 %v6851_v10  ;;  %v9638_v27 = vpop.f32.mrb[5].mxu1 }
 0x381   :  { %v4238_v4 = vshrl.u32 %v6698_v40, 16  ;;  %v4241_v29 = vshll.u32 %v6698_v40, 16  ;;  %v3284_v1 = vshrl.u32 %v6530_v14, 16  ;;  %v3289_v18 = vshrl.u32 %v6536_v48, 16  ;;  %7401 = vmatprep.mubr.msk.bf16.mxu0 %vm1194_vm1, %v7715_v55  ;;  %v9641_v30 = vpop.f32.mrb[6].mxu1 }
 0x382   :  { %v6774_v17 = vrot.slane %v4168_v12, 11  ;;  %v4175_v19 = vrot.slane %v4173_v62, 7  ;;  %v6779_v52 = vrot.slane %v4233_v26, 11  ;;  %v3292_v47 = vshll.u32 %v6536_v48, 16  ;;  %v9643_v41 = vpop.f32.mrb[7].mxu1 }
 0x383   :  { %v4240_v49 = vrot.slane %v4238_v4, 7  ;;  %v6706_v22 = vrot.slane %v3284_v1, 11  ;;  %v3291_v8 = vrot.slane %v3289_v18, 7  ;;  %v3349_v43 = vshrl.u32 %v6541_v32, 16  ;;  %v9645_v45 = vpop.f32.mrb[24].mxu0 }
 0x384   :  { %v4178_v50 = vor.u32 %v4176_v56, %v4175_v19  ;;  %v3354_v36 = vshrl.u32 %v6547_v38, 16  ;;  %v3357_v37 = vshll.u32 %v6547_v38, 16  ;;  %v6563_v57 = vcombine.low %v9413_v59, %v9413_v59  ;;  %v9652_v10 = vpop.f32.mrb[25].mxu0  ;;  %v7719_v9 = vld [vmem:[%s10119_s0 + $0x1d0] ss:$8 sps:$4 sm:$0xff]  }
 0x385   :  { %v4243_v6 = vor.u32 %v4241_v29, %v4240_v49  ;;  %v3294_v51 = vor.u32 %v3292_v47, %v3291_v8  ;;  %v6711_v55 = vrot.slane %v3349_v43, 11  ;;  %v3414_v33 = vshrl.u32 %v6552_v24, 16  ;;  %v9657_v25 = vpop.f32.mrb[26].mxu0  ;;  %v2048_v32 = vld [vmem:[#allocation2 + $0x50] sm:$0x1] }
 0x386   :  { %v4179_v40 = vsel %vm9050_vm13, %v6774_v17, %v4178_v50  ;;  %v3356_v14 = vrot.slane %v3354_v36, 7  ;;  %v3419_v48 = vshrl.u32 %v9419_v3, 16  ;;  %v3422_v59 = vshll.u32 %v9419_v3, 16  ;;  %v9663_v38 = vpop.f32.mrb[27].mxu0  ;;  %v2049_v26 = vld [vmem:[#allocation2 + $0x5c] sm:$0x1] }
 0x387   :  { %v4244_v24 = vsel %vm9050_vm13, %v6779_v52, %v4243_v6  ;;  %v3295_v12 = vsel %vm9050_vm13, %v6706_v22, %v3294_v51  ;;  %v6716_v62 = vrot.slane %v3414_v33, 11  ;;  %v3479_v56 = vshrl.u32 %v6563_v57, 16  ;;  %v2050_v4 = vld [vmem:[#allocation2 + $0x68] sm:$0x1]  ;;  %v2051_v3 = vld [vmem:[#allocation2 + $0x74] sm:$0x1] }
 0x388   :  { %v6850_v29 = vcombine.high %v4179_v40, %v4244_v24  ;;  %v6849_v1 = vcombine.low %v4179_v40, %v4244_v24  ;;  %v3359_v18 = vor.u32 %v3357_v37, %v3356_v14  ;;  %7402 = vmatmul.mubr.msk.bf16.vlgmr.msra.gmra.mrb[80].mxu0 %vm1194_vm1, %v7716_v28  ;;  %v3421_v17 = vrot.slane %v3419_v48, 7  ;;  %v7771_v52 = vld [vmem:[#allocation2 + $0x4c] sm:$0xf]  ;;  %v9673_v22 = vld [vmem:[#allocation2 + $0x98] sm:$0x1] }
 0x389   :  { %v6721_v19 = vrot.slane %v3479_v56, 11  ;;  %v3484_v47 = vshrl.u32 %v9425_v53, 16  ;;  %v3487_v49 = vshll.u32 %v9425_v53, 16  ;;  %v6514_v8 = vcombine.low %v7771_v52, %v2048_v32  ;;  %7405 = vmatprep.mubr.msk.bf16.mxu0 %vm1194_vm1, %v7719_v9  ;;  %v7772_v36 = vld [vmem:[#allocation2 + $0x58] sm:$0xf] }
 0x38a   :  { %5417 = vmatprep.mubr.bf16.mxu1 %v6850_v29  ;;  %v3360_v43 = vsel %vm9050_vm13, %v6711_v55, %v3359_v18  ;;  %v3424_v50 = vor.u32 %v3422_v59, %v3421_v17  ;;  %v6515_v37 = vcombine.low %v7772_v36, %v2049_v26  ;;  %v7773_v28 = vld [vmem:[#allocation2 + $0x64] sm:$0xf]  ;;  %v7774_v53 = vld [vmem:[#allocation2 + $0x70] sm:$0xf]  ;;  %v7720_v48 = vld [vmem:[%s10119_s0 + $0x1e0] ss:$8 sps:$4 sm:$0xff]   ;;  %v6518_v59 = vcombine.low %v9508_v23, %v9673_v22 }
 0x38b   :  { %v6516_v57 = vcombine.low %v7773_v28, %v2050_v4  ;;  %5418 = vmatmul.mubr.bf16.gmra.mrb[60].mxu1 %v6849_v1  ;;  %v6790_v6 = vcombine.low %v3295_v12, %v3360_v43  ;;  %v3486_v51 = vrot.slane %v3484_v47, 7  ;;  %v2864_v33 = vrot.slane %v6514_v8, 5  ;;  %v7725_v26 = vld [vmem:[%s10119_s0 + $0x1f8] ss:$8 sps:$4 sm:$0xff]  }
 0x38c   :  { %v6517_v40 = vcombine.low %v7774_v53, %v2051_v3  ;;  %v3425_v9 = vsel %vm9050_vm13, %v6716_v62, %v3424_v50  ;;  %v2865_v14 = vrot.slane %v6515_v37, 5  ;;  %v2053_v50 = vld [vmem:[#allocation2 + $0xa4] sm:$0x1] }
 0x38d   :  { %v2866_v55 = vrot.slane %v6516_v57, 5  ;;  %7383 = vmatprep.mubr.bf16.mxu1 %v6790_v6  ;;  %v3489_v32 = vor.u32 %v3487_v49, %v3486_v51  ;;  %v6574_v24 = vcombine.low %v2864_v33, %v2864_v33  ;;  %v6580_v12 = vcombine.high %v2864_v33, %v2864_v33 }
 0x38e   :  { %v2867_v56 = vrot.slane %v6517_v40, 5  ;;  %v6585_v4 = vcombine.low %v2865_v14, %v2865_v14  ;;  %v6591_v62 = vcombine.high %v2865_v14, %v2865_v14  ;;  %v9687_v18 = vpop.f32.mrb[8].mxu1 }
 0x38f   :  { %v6596_v29 = vcombine.low %v2866_v55, %v2866_v55  ;;  %v6602_v1 = vcombine.high %v2866_v55, %v2866_v55  ;;  %v3490_v17 = vsel %vm9050_vm13, %v6721_v19, %v3489_v32  ;;  %v3544_v3 = vshrl.u32 %v6574_v24, 16  ;;  %v9691_v49 = vpop.f32.mrb[9].mxu1  ;;  %v2054_v19 = vld [vmem:[#allocation2 + $0xb0] sm:$0x1] }
 0x390   :  { %v3549_v23 = vshrl.u32 %v6580_v12, 16  ;;  %v3552_v47 = vshll.u32 %v6580_v12, 16  ;;  %v6799_v52 = vcombine.low %v3425_v9, %v3490_v17  ;;  %v3609_v8 = vshrl.u32 %v6585_v4, 16  ;;  %7406 = vmatmul.mubr.msk.bf16.gmra.mrb[84].mxu0 %vm1194_vm1, %v7720_v48  ;;  %v9694_v36 = vpop.f32.mrb[10].mxu1  ;;  %v2055_v4 = vld [vmem:[#allocation2 + $0xbc] sm:$0x1] }
 0x391   :  { %v3614_v22 = vshrl.u32 %v6591_v62, 16  ;;  %v3617_v43 = vshll.u32 %v6591_v62, 16  ;;  %v6726_v37 = vrot.slane %v3544_v3, 11  ;;  %v6607_v57 = vcombine.low %v2867_v56, %v2867_v56  ;;  %7409 = vmatprep.mubr.msk.bf16.mxu0 %vm1194_vm1, %v7725_v26  ;;  %v9697_v51 = vpop.f32.mrb[11].mxu1  ;;  %v9699_v33 = vpop.f32.mrb[28].mxu0 }
 0x392   :  { %v3551_v28 = vrot.slane %v3549_v23, 7  ;;  %v6613_v6 = vcombine.high %v2867_v56, %v2867_v56  ;;  %v6731_v53 = vrot.slane %v3609_v8, 11  ;;  %v3674_v9 = vshrl.u32 %v6596_v29, 16  ;;  %v9701_v55 = vpop.f32.mrb[29].mxu0  ;;  %v7726_v23 = vld [vmem:[%s10119_s0 + $0x208] ss:$8 sps:$4 sm:$0xff]  }
 0x393   :  { %v3616_v40 = vrot.slane %v3614_v22, 7  ;;  %v3679_v14 = vshrl.u32 %v6602_v1, 16  ;;  %7384 = vmatmul.mubr.bf16.vlgmr.msra.gmra.mrb[64].mxu1 %v6799_v52  ;;  %v3682_v32 = vshll.u32 %v6602_v1, 16  ;;  %v3739_v24 = vshrl.u32 %v6607_v57, 16  ;;  %v9703_v56 = vpop.f32.mrb[30].mxu0 }
 0x394   :  { %v3554_v48 = vor.u32 %v3552_v47, %v3551_v28  ;;  %v3744_v12 = vshrl.u32 %v6613_v6, 16  ;;  %v6736_v62 = vrot.slane %v3674_v9, 11  ;;  %v3747_v3 = vshll.u32 %v6613_v6, 16  ;;  %v9708_v29 = vpop.f32.mrb[31].mxu0  ;;  %v7731_v22 = vld [vmem:[%s10119_s0 + $0x218] ss:$8 sps:$4 sm:$0xff]  }
 0x395   :  { %v3619_v26 = vor.u32 %v3617_v43, %v3616_v40  ;;  %v3681_v17 = vrot.slane %v3679_v14, 7  ;;  %v6741_v47 = vrot.slane %v3739_v24, 11  ;;  %v6519_v8 = vcombine.low %v9510_v13, %v2053_v50 }
 0x396   :  { %v3555_v52 = vsel %vm9050_vm13, %v6726_v37, %v3554_v48  ;;  %v3746_v1 = vrot.slane %v3744_v12, 7  ;;  %v2868_v57 = vrot.slane %v6518_v59, 5  ;;  %v6520_v6 = vcombine.low %v9529_v11, %v2054_v19 }
 0x397   :  { %v3620_v43 = vsel %vm9050_vm13, %v6731_v53, %v3619_v26  ;;  %v3684_v28 = vor.u32 %v3682_v32, %v3681_v17  ;;  %v2869_v14 = vrot.slane %v6519_v8, 5  ;;  %v6521_v37 = vcombine.low %v9531_v0, %v2055_v4 }
 0x398   :  { %v6808_v40 = vcombine.low %v3555_v52, %v3620_v43  ;;  %v3749_v9 = vor.u32 %v3747_v3, %v3746_v1  ;;  %v6618_v13 = vcombine.low %v2868_v57, %v2868_v57  ;;  %v6624_v50 = vcombine.high %v2868_v57, %v2868_v57  ;;  %7410 = vmatmul.mubr.msk.bf16.gmra.mrb[88].mxu0 %vm1194_vm1, %v7726_v23  ;;  %v2056_v52 = vld [vmem:[#allocation2 + $0xc8] sm:$0x1] }
 0x399   :  { %v3685_v48 = vsel %vm9050_vm13, %v6736_v62, %v3684_v28  ;;  %v2870_v24 = vrot.slane %v6520_v6, 5  ;;  %v6629_v59 = vcombine.low %v2869_v14, %v2869_v14  ;;  %v6635_v32 = vcombine.high %v2869_v14, %v2869_v14  ;;  %7413 = vmatprep.mubr.msk.bf16.mxu0 %vm1194_vm1, %v7731_v22  ;;  %v7732_v28 = vld [vmem:[%s10119_s0 + $0x228] ss:$8 sps:$4 sm:$0xff]  }
 0x39a   :  { %7387 = vmatprep.mubr.bf16.mxu1 %v6808_v40  ;;  %v3750_v53 = vsel %vm9050_vm13, %v6741_v47, %v3749_v9  ;;  %v2871_v11 = vrot.slane %v6521_v37, 5  ;;  %v3804_v12 = vshrl.u32 %v6618_v13, 16  ;;  %v3809_v0 = vshrl.u32 %v6624_v50, 16  ;;  %v2057_v47 = vld [vmem:[#allocation2 + $0xd4] sm:$0x1] }
 0x39b   :  { %v6817_v19 = vcombine.low %v3685_v48, %v3750_v53  ;;  %v3812_v4 = vshll.u32 %v6624_v50, 16  ;;  %v3869_v26 = vshrl.u32 %v6629_v59, 16  ;;  %v3874_v62 = vshrl.u32 %v6635_v32, 16  ;;  %v2058_v9 = vld [vmem:[#allocation2 + $0xe0] sm:$0x1] }
 0x39c   :  { %v3877_v17 = vshll.u32 %v6635_v32, 16  ;;  %v6640_v3 = vcombine.low %v2870_v24, %v2870_v24  ;;  %v6746_v23 = vrot.slane %v3804_v12, 11  ;;  %v3811_v1 = vrot.slane %v3809_v0, 7  ;;  %v2059_v53 = vld [vmem:[#allocation2 + $0xec] sm:$0x1] }
 0x39d   :  { %7388 = vmatmul.mubr.bf16.gmra.mrb[68].mxu1 %v6817_v19  ;;  %v6646_v8 = vcombine.high %v2870_v24, %v2870_v24  ;;  %v6651_v43 = vcombine.low %v2871_v11, %v2871_v11  ;;  %v6751_v22 = vrot.slane %v3869_v26, 11  ;;  %v3876_v57 = vrot.slane %v3874_v62, 7  ;;  %v9729_v14 = vpop.f32.mrb[12].mxu1 }
 0x39e   :  { %v6657_v6 = vcombine.high %v2871_v11, %v2871_v11  ;;  %v3934_v40 = vshrl.u32 %v6640_v3, 16  ;;  %v3814_v37 = vor.u32 %v3812_v4, %v3811_v1  ;;  %v9731_v59 = vpop.f32.mrb[13].mxu1  ;;  %v6522_v4 = vcombine.low %v9549_v20, %v2056_v52 }
 0x39f   :  { %v3939_v48 = vshrl.u32 %v6646_v8, 16  ;;  %v3942_v13 = vshll.u32 %v6646_v8, 16  ;;  %v3999_v50 = vshrl.u32 %v6651_v43, 16  ;;  %v3879_v24 = vor.u32 %v3877_v17, %v3876_v57  ;;  %v9733_v0 = vpop.f32.mrb[14].mxu1  ;;  %v9735_v26 = vpop.f32.mrb[32].mxu0 }
 0x3a0   :  { %v6756_v32 = vrot.slane %v3934_v40, 11  ;;  %v4004_v19 = vshrl.u32 %v6657_v6, 16  ;;  %v4007_v12 = vshll.u32 %v6657_v6, 16  ;;  %v3815_v11 = vsel %vm9050_vm13, %v6746_v23, %v3814_v37  ;;  %7414 = vmatmul.mubr.msk.bf16.gmra.mrb[92].mxu0 %vm1194_vm1, %v7732_v28  ;;  %v9741_v1 = vpop.f32.mrb[15].mxu1  ;;  %v9743_v8 = vpop.f32.mrb[33].mxu0 }
 0x3a1   :  { %v3941_v62 = vrot.slane %v3939_v48, 7  ;;  %v6761_v3 = vrot.slane %v3999_v50, 11  ;;  %v3880_v17 = vsel %vm9050_vm13, %v6751_v22, %v3879_v24  ;;  %v6523_v57 = vcombine.low %v9551_v46, %v2057_v47  ;;  %v9749_v40 = vpop.f32.mrb[34].mxu0 }
 0x3a2   :  { %v4006_v43 = vrot.slane %v4004_v19, 7  ;;  %v6524_v6 = vcombine.low %v9573_v42, %v2058_v9  ;;  %v6826_v23 = vcombine.low %v3815_v11, %v3880_v17  ;;  %v2872_v48 = vrot.slane %v6522_v4, 5  ;;  %v9752_v52 = vpop.f32.mrb[35].mxu0 }
 0x3a3   :  { %v3944_v37 = vor.u32 %v3942_v13, %v3941_v62  ;;  %v6525_v20 = vcombine.low %v9575_v58, %v2059_v53  ;;  %10135 = vst [vmem:[#allocation7_spill] sm:$0xff] %v9752_v52  ;;  %v2873_v50 = vrot.slane %v6523_v57, 5  ;;  %v7146_v22 = vadd.f32 %v9594_v63, %v9592_v34 }
 0x3a4   :  { %v4009_v28 = vor.u32 %v4007_v12, %v4006_v43  ;;  %v2874_v61 = vrot.slane %v6524_v6, 5  ;;  %7391 = vmatprep.mubr.bf16.mxu1 %v6826_v23  ;;  %v6662_v42 = vcombine.low %v2872_v48, %v2872_v48  ;;  %v6668_v47 = vcombine.high %v2872_v48, %v2872_v48 }
 0x3a5   :  { %v3945_v46 = vsel %vm9050_vm13, %v6756_v32, %v3944_v37  ;;  %v2875_v9 = vrot.slane %v6525_v20, 5  ;;  %v6673_v24 = vcombine.low %v2873_v50, %v2873_v50  ;;  %v6679_v58 = vcombine.high %v2873_v50, %v2873_v50 }
 0x3a6   :  { %v4010_v13 = vsel %vm9050_vm13, %v6761_v3, %v4009_v28  ;;  %v6684_v53 = vcombine.low %v2874_v61, %v2874_v61  ;;  %v4064_v12 = vshrl.u32 %v6662_v42, 16  ;;  %v4069_v11 = vshrl.u32 %v6668_v47, 16 }
 0x3a7   :  { %v6835_v19 = vcombine.low %v3945_v46, %v4010_v13  ;;  %v4072_v62 = vshll.u32 %v6668_v47, 16  ;;  %v4129_v4 = vshrl.u32 %v6673_v24, 16  ;;  %v4134_v17 = vshrl.u32 %v6679_v58, 16 }
 0x3a8   :  { %v4137_v34 = vshll.u32 %v6679_v58, 16  ;;  %v6690_v63 = vcombine.high %v2874_v61, %v2874_v61  ;;  %v6766_v43 = vrot.slane %v4064_v12, 11  ;;  %v4071_v32 = vrot.slane %v4069_v11, 7 }
 0x3a9   :  { %7392 = vmatmul.mubr.bf16.gmra.mrb[72].mxu1 %v6835_v19  ;;  %v6695_v57 = vcombine.low %v2875_v9, %v2875_v9  ;;  %v6701_v6 = vcombine.high %v2875_v9, %v2875_v9  ;;  %v6771_v23 = vrot.slane %v4129_v4, 11  ;;  %v4136_v37 = vrot.slane %v4134_v17, 7  ;;  %v7104_v20 = vpop.f32.mrb[16].mxu1 }
 0x3aa   :  { %v4194_v48 = vshrl.u32 %v6684_v53, 16  ;;  %v4199_v3 = vshrl.u32 %v6690_v63, 16  ;;  %v4074_v28 = vor.u32 %v4072_v62, %v4071_v32  ;;  %v4202_v50 = vshll.u32 %v6690_v63, 16  ;;  %v7105_v13 = vpop.f32.mrb[17].mxu1  ;;  %v7174_v47 = vpop.f32.mrb[36].mxu0 }
 0x3ab   :  { %v4259_v46 = vshrl.u32 %v6695_v57, 16  ;;  %v4264_v42 = vshrl.u32 %v6701_v6, 16  ;;  %v4139_v24 = vor.u32 %v4137_v34, %v4136_v37  ;;  %v4267_v61 = vshll.u32 %v6701_v6, 16  ;;  %v7107_v19 = vpop.f32.mrb[18].mxu1  ;;  %v7175_v12 = vpop.f32.mrb[37].mxu0 }
 0x3ac   :  { %v6776_v52 = vrot.slane %v4194_v48, 11  ;;  %v4201_v58 = vrot.slane %v4199_v3, 7  ;;  %v4075_v9 = vsel %vm9050_vm13, %v6766_v43, %v4074_v28  ;;  %v7082_v53 = vadd.f32 %v9602_v31, %v9596_v39  ;;  %v7108_v62 = vpop.f32.mrb[19].mxu1  ;;  %v7177_v17 = vpop.f32.mrb[38].mxu0 }
 0x3ad   :  { %v6781_v11 = vrot.slane %v4259_v46, 11  ;;  %v4266_v4 = vrot.slane %v4264_v42, 7  ;;  %v4140_v63 = vsel %vm9050_vm13, %v6771_v23, %v4139_v24  ;;  %v7149_v34 = vadd.f32 %v9604_v35, %v9598_v15  ;;  %v7178_v6 = vpop.f32.mrb[39].mxu0 }
 0x3ae   :  { %v4204_v32 = vor.u32 %v4202_v50, %v4201_v58  ;;  %v7085_v57 = vadd.f32 %v9611_v7, %v9606_v44  ;;  %v6844_v37 = vcombine.low %v4075_v9, %v4140_v63  ;;  %v9770_v48 = vadd.f32 %v7146_v22, %v7082_v53 }
 0x3af   :  { %v4269_v43 = vor.u32 %v4267_v61, %v4266_v4  ;;  %v7152_v39 = vadd.f32 %v9620_v54, %v9617_v21  ;;  %v7088_v23 = vadd.f32 %v9638_v27, %v9636_v16  ;;  %v7155_v15 = vadd.f32 %v9627_v60, %v9625_v2 }
 0x3b0   :  { %v4205_v31 = vsel %vm9050_vm13, %v6776_v52, %v4204_v32  ;;  %v9776_v3 = vadd.f32 %v7149_v34, %v7085_v57  ;;  %7395 = vmatprep.mubr.bf16.mxu1 %v6844_v37  ;;  %v7091_v44 = vadd.f32 %v9643_v41, %v9641_v30  ;;  %v7158_v7 = vadd.f32 %v9652_v10, %v9645_v45 }
 0x3b1   :  { %v4270_v35 = vsel %vm9050_vm13, %v6781_v11, %v4269_v43  ;;  %v7094_v21 = vadd.f32 %v9691_v49, %v9687_v18  ;;  %v9790_v52 = vadd.f32 %v7152_v39, %v7088_v23  ;;  %v7161_v16 = vadd.f32 %v9663_v38, %v9657_v25  ;;  %v10136_v49 = vld [vmem:[#allocation7_spill] sm:$0xff] }
 0x3b2   :  { %v6853_v54 = vcombine.low %v4205_v31, %v4270_v35  ;;  %v7097_v2 = vadd.f32 %v9697_v51, %v9694_v36  ;;  %v9796_v5 = vadd.f32 %v7155_v15, %v7091_v44  ;;  %v7164_v27 = vadd.f32 %v9701_v55, %v9699_v33 }
 0x3b3   :  { %v9798_v60 = vadd.f32 %v7158_v7, %v7094_v21  ;;  %v7100_v30 = vadd.f32 %v9731_v59, %v9729_v14  ;;  %v7167_v45 = vadd.f32 %v9708_v29, %v9703_v56  ;;  %v7103_v10 = vadd.f32 %v9741_v1, %v9733_v0 }
 0x3b4   :  { %7396 = vmatmul.mubr.bf16.gmra.mrb[76].mxu1 %v6853_v54  ;;  %v9804_v41 = vadd.f32 %v7161_v16, %v7097_v2  ;;  %v7170_v25 = vadd.f32 %v9743_v8, %v9735_v26  ;;  %v7106_v18 = vadd.f32 %v7105_v13, %v7104_v20  ;;  %v7173_v36 = vadd.f32 %v10136_v49, %v9749_v40 }
 0x3b5   :  { %v9812_v38 = vadd.f32 %v7164_v27, %v7100_v30  ;;  %v7109_v51 = vadd.f32 %v7108_v62, %v7107_v19  ;;  %v9816_v33 = vadd.f32 %v7167_v45, %v7103_v10  ;;  %v7176_v55 = vadd.f32 %v7175_v12, %v7174_v47 }
 0x3b6   :  { %v7179_v14 = vadd.f32 %v7178_v6, %v7177_v17  ;;  %v9818_v59 = vadd.f32 %v7170_v25, %v7106_v18  ;;  %v7110_v29 = vpop.f32.mrb[20].mxu1 }
 0x3b7   :  { %v9820_v56 = vadd.f32 %v7173_v36, %v7109_v51  ;;  %v7111_v0 = vpop.f32.mrb[21].mxu1 }
 0x3b8   :  { %v7112_v1 = vadd.f32 %v7111_v0, %v7110_v29  ;;  %v7113_v22 = vpop.f32.mrb[22].mxu1 }
 0x3b9   :  { %v7114_v26 = vpop.f32.mrb[23].mxu1  ;;  %v7180_v8 = vpop.f32.mrb[40].mxu0 }
 0x3ba   :  { %v9822_v28 = vadd.f32 %v7176_v55, %v7112_v1  ;;  %v7115_v20 = vadd.f32 %v7114_v26, %v7113_v22  ;;  %v7181_v50 = vpop.f32.mrb[41].mxu0 }
 0x3bb   :  { %v7182_v40 = vadd.f32 %v7181_v50, %v7180_v8  ;;  %v7183_v46 = vpop.f32.mrb[42].mxu0 }
 0x3bc   :  { %v9824_v42 = vadd.f32 %v7179_v14, %v7115_v20  ;;  %v7184_v13 = vpop.f32.mrb[43].mxu0 }
 0x3bd   :  { %v7185_v47 = vadd.f32 %v7184_v13, %v7183_v46 }
 0x3c5   :  { %v7116_v24 = vpop.f32.mrb[24].mxu1 }
 0x3c6   :  { %v7117_v58 = vpop.f32.mrb[25].mxu1 }
 0x3c7   :  { %v7118_v61 = vadd.f32 %v7117_v58, %v7116_v24  ;;  %v7119_v19 = vpop.f32.mrb[26].mxu1 }
 0x3c8   :  { %v7120_v12 = vpop.f32.mrb[27].mxu1 }
 0x3c9   :  { %v9826_v9 = vadd.f32 %v7182_v40, %v7118_v61  ;;  %v7121_v11 = vadd.f32 %v7120_v12, %v7119_v19 }
 0x3cb   :  { %v9828_v4 = vadd.f32 %v7185_v47, %v7121_v11 }
 0x3cd   :  { %v7186_v53 = vpop.f32.mrb[44].mxu0 }
 0x3ce   :  { %v7187_v62 = vpop.f32.mrb[45].mxu0 }
 0x3cf   :  { %v7188_v17 = vadd.f32 %v7187_v62, %v7186_v53  ;;  %v7189_v63 = vpop.f32.mrb[46].mxu0 }
 0x3d0   :  { %v7190_v32 = vpop.f32.mrb[47].mxu0 }
 0x3d1   :  { %v7191_v34 = vadd.f32 %v7190_v32, %v7189_v63 }
 0x3d3   :  { %v7122_v57 = vpop.f32.mrb[28].mxu1 }
 0x3d4   :  { %v7123_v6 = vpop.f32.mrb[29].mxu1 }
 0x3d5   :  { %v7124_v37 = vadd.f32 %v7123_v6, %v7122_v57  ;;  %v7125_v43 = vpop.f32.mrb[30].mxu1 }
 0x3d6   :  { %v7126_v39 = vpop.f32.mrb[31].mxu1 }
 0x3d7   :  { %v9830_v31 = vadd.f32 %v7188_v17, %v7124_v37  ;;  %v7127_v23 = vadd.f32 %v7126_v39, %v7125_v43 }
 0x3d9   :  { %v9832_v15 = vadd.f32 %v7191_v34, %v7127_v23 }
 0x3db   :  { %v7272_v35 = vpop.f32.mrb[48].mxu0 }
 0x3dc   :  { %v7273_v44 = vpop.f32.mrb[49].mxu0 }
 0x3dd   :  { %v7274_v7 = vadd.f32 %v7273_v44, %v7272_v35  ;;  %v7275_v21 = vpop.f32.mrb[50].mxu0 }
 0x3de   :  { %v7276_v54 = vpop.f32.mrb[51].mxu0 }
 0x3df   :  { %v7277_v16 = vadd.f32 %v7276_v54, %v7275_v21 }
 0x3e4   :  { %v7208_v2 = vpop.f32.mrb[32].mxu1 }
 0x3e5   :  { %v7209_v27 = vpop.f32.mrb[33].mxu1 }
 0x3e6   :  { %v7210_v30 = vadd.f32 %v7209_v27, %v7208_v2  ;;  %v7211_v45 = vpop.f32.mrb[34].mxu1 }
 0x3e7   :  { %v7212_v10 = vpop.f32.mrb[35].mxu1 }
 0x3e8   :  { %v5364_v25 = vadd.f32 %v7210_v30, %v9770_v48  ;;  %v7213_v18 = vadd.f32 %v7212_v10, %v7211_v45 }
 0x3ea   :  { %v5367_v49 = vadd.f32 %v7213_v18, %v9776_v3  ;;  %v9836_v36 = vadd.f32 %v7274_v7, %v5364_v25 }
 0x3ec   :  { %v7278_v51 = vpop.f32.mrb[52].mxu0  ;;  %v9838_v55 = vadd.f32 %v7277_v16, %v5367_v49 }
 0x3ed   :  { %v7279_v14 = vpop.f32.mrb[53].mxu0 }
 0x3ee   :  { %v7280_v29 = vadd.f32 %v7279_v14, %v7278_v51  ;;  %v7281_v0 = vpop.f32.mrb[54].mxu0 }
 0x3ef   :  { %v7282_v1 = vpop.f32.mrb[55].mxu0 }
 0x3f0   :  { %v7283_v22 = vadd.f32 %v7282_v1, %v7281_v0 }
 0x3f8   :  { %v7214_v26 = vpop.f32.mrb[36].mxu1 }
 0x3f9   :  { %v7215_v8 = vpop.f32.mrb[37].mxu1 }
 0x3fa   :  { %v7216_v20 = vadd.f32 %v7215_v8, %v7214_v26  ;;  %v7217_v50 = vpop.f32.mrb[38].mxu1 }
 0x3fb   :  { %v7218_v40 = vpop.f32.mrb[39].mxu1 }
 0x3fc   :  { %v5372_v48 = vadd.f32 %v7216_v20, %v9790_v52  ;;  %v7219_v46 = vadd.f32 %v7218_v40, %v7217_v50 }
 0x3fe   :  { %v5375_v3 = vadd.f32 %v7219_v46, %v9796_v5  ;;  %v7284_v13 = vpop.f32.mrb[56].mxu0  ;;  %v9842_v47 = vadd.f32 %v7280_v29, %v5372_v48 }
 0x3ff   :  { %v7285_v24 = vpop.f32.mrb[57].mxu0 }
 0x400   :  { %v7286_v58 = vadd.f32 %v7285_v24, %v7284_v13  ;;  %v7287_v61 = vpop.f32.mrb[58].mxu0  ;;  %v9844_v19 = vadd.f32 %v7283_v22, %v5375_v3 }
 0x401   :  { %v7288_v12 = vpop.f32.mrb[59].mxu0 }
 0x402   :  { %v7289_v11 = vadd.f32 %v7288_v12, %v7287_v61 }
 0x409   :  { %v7220_v53 = vpop.f32.mrb[40].mxu1 }
 0x40a   :  { %v7221_v62 = vpop.f32.mrb[41].mxu1 }
 0x40b   :  { %v7222_v17 = vadd.f32 %v7221_v62, %v7220_v53  ;;  %v7223_v63 = vpop.f32.mrb[42].mxu1 }
 0x40c   :  { %v7224_v32 = vpop.f32.mrb[43].mxu1 }
 0x40d   :  { %v5380_v52 = vadd.f32 %v7222_v17, %v9798_v60  ;;  %v7225_v34 = vadd.f32 %v7224_v32, %v7223_v63 }
 0x40f   :  { %v5383_v5 = vadd.f32 %v7225_v34, %v9804_v41  ;;  %v9848_v57 = vadd.f32 %v7286_v58, %v5380_v52 }
 0x411   :  { %v7290_v6 = vpop.f32.mrb[60].mxu0  ;;  %v9850_v37 = vadd.f32 %v7289_v11, %v5383_v5 }
 0x412   :  { %v7291_v43 = vpop.f32.mrb[61].mxu0 }
 0x413   :  { %v7292_v39 = vadd.f32 %v7291_v43, %v7290_v6  ;;  %v7293_v23 = vpop.f32.mrb[62].mxu0 }
 0x414   :  { %v7294_v35 = vpop.f32.mrb[63].mxu0 }
 0x415   :  { %v7295_v44 = vadd.f32 %v7294_v35, %v7293_v23 }
 0x419   :  { %v7226_v7 = vpop.f32.mrb[44].mxu1 }
 0x41a   :  { %v7227_v21 = vpop.f32.mrb[45].mxu1 }
 0x41b   :  { %v7228_v54 = vadd.f32 %v7227_v21, %v7226_v7  ;;  %v7229_v16 = vpop.f32.mrb[46].mxu1 }
 0x41c   :  { %v7230_v2 = vpop.f32.mrb[47].mxu1 }
 0x41d   :  { %v5388_v60 = vadd.f32 %v7228_v54, %v9812_v38  ;;  %v7231_v27 = vadd.f32 %v7230_v2, %v7229_v16 }
 0x41f   :  { %v5391_v41 = vadd.f32 %v7231_v27, %v9816_v33  ;;  %v9854_v30 = vadd.f32 %v7292_v39, %v5388_v60 }
 0x421   :  { %v7296_v45 = vpop.f32.mrb[64].mxu0  ;;  %v9856_v10 = vadd.f32 %v7295_v44, %v5391_v41 }
 0x422   :  { %v7297_v25 = vpop.f32.mrb[65].mxu0 }
 0x423   :  { %v7298_v18 = vadd.f32 %v7297_v25, %v7296_v45  ;;  %v7299_v49 = vpop.f32.mrb[66].mxu0 }
 0x424   :  { %v7300_v51 = vpop.f32.mrb[67].mxu0 }
 0x425   :  { %v7301_v14 = vadd.f32 %v7300_v51, %v7299_v49 }
 0x42b   :  { %v7232_v29 = vpop.f32.mrb[48].mxu1 }
 0x42c   :  { %v7233_v0 = vpop.f32.mrb[49].mxu1 }
 0x42d   :  { %v7234_v1 = vadd.f32 %v7233_v0, %v7232_v29  ;;  %v7235_v22 = vpop.f32.mrb[50].mxu1 }
 0x42e   :  { %v7236_v26 = vpop.f32.mrb[51].mxu1 }
 0x42f   :  { %v5396_v38 = vadd.f32 %v7234_v1, %v9818_v59  ;;  %v7237_v8 = vadd.f32 %v7236_v26, %v7235_v22 }
 0x431   :  { %v5399_v33 = vadd.f32 %v7237_v8, %v9820_v56  ;;  %v9860_v20 = vadd.f32 %v7298_v18, %v5396_v38 }
 0x432   :  { %v7302_v50 = vpop.f32.mrb[68].mxu0 }
 0x433   :  { %v7303_v40 = vpop.f32.mrb[69].mxu0  ;;  %v9862_v48 = vadd.f32 %v7301_v14, %v5399_v33 }
 0x434   :  { %v7304_v46 = vadd.f32 %v7303_v40, %v7302_v50  ;;  %v7305_v3 = vpop.f32.mrb[70].mxu0 }
 0x435   :  { %v7306_v13 = vpop.f32.mrb[71].mxu0 }
 0x436   :  { %v7307_v24 = vadd.f32 %v7306_v13, %v7305_v3 }
 0x43c   :  { %v7238_v58 = vpop.f32.mrb[52].mxu1 }
 0x43d   :  { %v7239_v61 = vpop.f32.mrb[53].mxu1 }
 0x43e   :  { %v7240_v12 = vadd.f32 %v7239_v61, %v7238_v58  ;;  %v7241_v11 = vpop.f32.mrb[54].mxu1 }
 0x43f   :  { %v7242_v53 = vpop.f32.mrb[55].mxu1 }
 0x440   :  { %v5404_v59 = vadd.f32 %v7240_v12, %v9822_v28  ;;  %v7243_v62 = vadd.f32 %v7242_v53, %v7241_v11 }
 0x442   :  { %v5407_v56 = vadd.f32 %v7243_v62, %v9824_v42  ;;  %v9866_v17 = vadd.f32 %v7304_v46, %v5404_v59 }
 0x443   :  { %v7308_v63 = vpop.f32.mrb[72].mxu0 }
 0x444   :  { %v7309_v32 = vpop.f32.mrb[73].mxu0  ;;  %v9868_v52 = vadd.f32 %v7307_v24, %v5407_v56 }
 0x445   :  { %v7310_v34 = vadd.f32 %v7309_v32, %v7308_v63  ;;  %v7311_v5 = vpop.f32.mrb[74].mxu0 }
 0x446   :  { %v7312_v6 = vpop.f32.mrb[75].mxu0 }
 0x447   :  { %v7313_v43 = vadd.f32 %v7312_v6, %v7311_v5 }
 0x44d   :  { %v7244_v39 = vpop.f32.mrb[56].mxu1 }
 0x44e   :  { %v7245_v23 = vpop.f32.mrb[57].mxu1 }
 0x44f   :  { %v7246_v35 = vadd.f32 %v7245_v23, %v7244_v39  ;;  %v7247_v44 = vpop.f32.mrb[58].mxu1 }
 0x450   :  { %v7248_v7 = vpop.f32.mrb[59].mxu1 }
 0x451   :  { %v5412_v28 = vadd.f32 %v7246_v35, %v9826_v9  ;;  %v7249_v21 = vadd.f32 %v7248_v7, %v7247_v44 }
 0x453   :  { %v5415_v42 = vadd.f32 %v7249_v21, %v9828_v4  ;;  %v7314_v54 = vpop.f32.mrb[76].mxu0  ;;  %v9872_v16 = vadd.f32 %v7310_v34, %v5412_v28 }
 0x454   :  { %v7315_v2 = vpop.f32.mrb[77].mxu0 }
 0x455   :  { %v7316_v60 = vadd.f32 %v7315_v2, %v7314_v54  ;;  %v7317_v27 = vpop.f32.mrb[78].mxu0  ;;  %v9874_v41 = vadd.f32 %v7313_v43, %v5415_v42 }
 0x456   :  { %v7318_v45 = vpop.f32.mrb[79].mxu0 }
 0x457   :  { %v7319_v25 = vadd.f32 %v7318_v45, %v7317_v27 }
 0x45b   :  { %v9876_v18 = vpop.f32.mrb[80].mxu0 }
 0x45c   :  { %v9878_v49 = vpop.f32.mrb[81].mxu0  ;;  %v5939_v8 = vmul.f32 %v9876_v18, %v9876_v18 }
 0x45d   :  { %v5937_v9 = vmul.f32 %v9878_v49, %v9878_v49  ;;  %v9882_v51 = vpop.f32.mrb[82].mxu0 }
 0x45e   :  { %v7250_v4 = vpop.f32.mrb[60].mxu1  ;;  %v9884_v14 = vpop.f32.mrb[83].mxu0  ;;  %v5940_v3 = vmul.f32 %v9882_v51, %v9882_v51 }
 0x45f   :  { %v7251_v29 = vpop.f32.mrb[61].mxu1  ;;  %v5916_v0 = vadd.f32 %v9884_v14, %v9878_v49  ;;  %v5938_v1 = vmul.f32 %v9884_v14, %v9884_v14 }
 0x460   :  { %v7252_v22 = vadd.f32 %v7251_v29, %v7250_v4  ;;  %v7253_v26 = vpop.f32.mrb[62].mxu1 }
 0x461   :  { %v7254_v38 = vpop.f32.mrb[63].mxu1  ;;  %v5917_v33 = vadd.f32 %v9876_v18, %v5916_v0  ;;  %v5953_v50 = vadd.f32 %v5938_v1, %v5937_v9 }
 0x462   :  { %v5420_v40 = vadd.f32 %v7252_v22, %v9830_v31  ;;  %v7255_v46 = vadd.f32 %v7254_v38, %v7253_v26 }
 0x463   :  { %v5954_v13 = vadd.f32 %v5953_v50, %v5939_v8  ;;  %v9896_v24 = vpop.f32.mrb[84].mxu0  ;;  %v5918_v58 = vadd.f32 %v9882_v51, %v5917_v33 }
 0x464   :  { %v5423_v61 = vadd.f32 %v7255_v46, %v9832_v15  ;;  %v9900_v12 = vpop.f32.mrb[85].mxu0  ;;  %v9902_v11 = vadd.f32 %v7316_v60, %v5420_v40  ;;  %v5943_v7 = vmul.f32 %v9896_v24, %v9896_v24 }
 0x465   :  { %v5919_v53 = vadd.f32 %v5918_v58, %v9900_v12  ;;  %v5941_v31 = vmul.f32 %v9900_v12, %v9900_v12  ;;  %v5955_v59 = vadd.f32 %v5954_v13, %v5940_v3  ;;  %v9907_v62 = vpop.f32.mrb[86].mxu0 }
 0x466   :  { %v7385_v56 = vpop.f32.mrb[64].mxu1  ;;  %v9909_v63 = vpop.f32.mrb[87].mxu0  ;;  %v9911_v32 = vadd.f32 %v7319_v25, %v5423_v61  ;;  %v5944_v42 = vmul.f32 %v9907_v62, %v9907_v62 }
 0x467   :  { %v9914_v34 = vadd.f32 %v7385_v56, %v9842_v47  ;;  %v5557_v15 = vpop.f32.mrb[65].mxu1  ;;  %v5956_v5 = vadd.f32 %v5955_v59, %v5941_v31  ;;  %v5920_v6 = vadd.f32 %v5919_v53, %v9909_v63  ;;  %v5942_v43 = vmul.f32 %v9909_v63, %v9909_v63 }
 0x468   :  { %v9920_v39 = vadd.f32 %v5557_v15, %v9836_v36  ;;  %v7386_v23 = vpop.f32.mrb[66].mxu1 }
 0x469   :  { %v9923_v35 = vadd.f32 %v7386_v23, %v9844_v19  ;;  %v5560_v44 = vpop.f32.mrb[67].mxu1  ;;  %v5921_v47 = vadd.f32 %v9896_v24, %v5920_v6  ;;  %v5957_v28 = vadd.f32 %v5956_v5, %v5942_v43  ;;  %v5645_v29 = vmul.f32 %v9914_v34, %v9914_v34 }
 0x46a   :  { %v9929_v21 = vadd.f32 %v5560_v44, %v9838_v55  ;;  %v5643_v19 = vmul.f32 %v9920_v39, %v9920_v39 }
 0x46b   :  { %v5958_v54 = vadd.f32 %v5957_v28, %v5943_v7  ;;  %v9933_v36 = vpop.f32.mrb[88].mxu0  ;;  %v5922_v2 = vadd.f32 %v9907_v62, %v5921_v47  ;;  %v5646_v50 = vmul.f32 %v9923_v35, %v9923_v35 }
 0x46c   :  { %v5622_v60 = vadd.f32 %v9929_v21, %v9920_v39  ;;  %v5644_v27 = vmul.f32 %v9929_v21, %v9929_v21  ;;  %v9942_v45 = vpop.f32.mrb[89].mxu0  ;;  %v5947_v53 = vmul.f32 %v9933_v36, %v9933_v36 }
 0x46d   :  { %v5923_v55 = vadd.f32 %v5922_v2, %v9942_v45  ;;  %v5945_v25 = vmul.f32 %v9942_v45, %v9942_v45  ;;  %v5959_v9 = vadd.f32 %v5958_v54, %v5944_v42  ;;  %v9947_v4 = vpop.f32.mrb[90].mxu0 }
 0x46e   :  { %v5623_v0 = vadd.f32 %v5622_v60, %v9914_v34  ;;  %v5659_v1 = vadd.f32 %v5644_v27, %v5643_v19  ;;  %v9952_v22 = vpop.f32.mrb[91].mxu0  ;;  %v5948_v44 = vmul.f32 %v9947_v4, %v9947_v4 }
 0x46f   :  { %v5960_v38 = vadd.f32 %v5959_v9, %v5945_v25  ;;  %v5924_v8 = vadd.f32 %v5923_v55, %v9952_v22  ;;  %v5946_v33 = vmul.f32 %v9952_v22, %v9952_v22 }
 0x470   :  { %v7389_v26 = vpop.f32.mrb[68].mxu1  ;;  %v5660_v40 = vadd.f32 %v5659_v1, %v5645_v29  ;;  %v5624_v13 = vadd.f32 %v5623_v0, %v9923_v35 }
 0x471   :  { %v9960_v46 = vadd.f32 %v7389_v26, %v9854_v30  ;;  %v5573_v3 = vpop.f32.mrb[69].mxu1  ;;  %v5925_v31 = vadd.f32 %v9933_v36, %v5924_v8  ;;  %v5961_v59 = vadd.f32 %v5960_v38, %v5946_v33 }
 0x472   :  { %v9964_v58 = vadd.f32 %v5573_v3, %v9848_v57  ;;  %v7390_v61 = vpop.f32.mrb[70].mxu1  ;;  %v5661_v56 = vadd.f32 %v5660_v40, %v5646_v50 }
 0x473   :  { %v9970_v15 = vadd.f32 %v7390_v61, %v9856_v10  ;;  %v5576_v5 = vpop.f32.mrb[71].mxu1  ;;  %v5962_v43 = vadd.f32 %v5961_v59, %v5947_v53  ;;  %v9978_v23 = vpop.f32.mrb[92].mxu0  ;;  %v5926_v10 = vadd.f32 %v9947_v4, %v5925_v31  ;;  %v5649_v27 = vmul.f32 %v9960_v46, %v9960_v46 }
 0x474   :  { %v5625_v30 = vadd.f32 %v5624_v13, %v9964_v58  ;;  %v5647_v6 = vmul.f32 %v9964_v58, %v9964_v58  ;;  %v9976_v57 = vadd.f32 %v5576_v5, %v9850_v37  ;;  %v9982_v7 = vpop.f32.mrb[93].mxu0  ;;  %v5951_v8 = vmul.f32 %v9978_v23, %v9978_v23 }
 0x475   :  { %v5949_v37 = vmul.f32 %v9982_v7, %v9982_v7  ;;  %v9990_v54 = vpop.f32.mrb[94].mxu0  ;;  %v5927_v2 = vadd.f32 %v5926_v10, %v9982_v7  ;;  %v5963_v19 = vadd.f32 %v5962_v43, %v5948_v44  ;;  %v5650_v1 = vmul.f32 %v9970_v15, %v9970_v15 }
 0x476   :  { %v5662_v47 = vadd.f32 %v5661_v56, %v5647_v6  ;;  %v5626_v28 = vadd.f32 %v5625_v30, %v9976_v57  ;;  %v5648_v42 = vmul.f32 %v9976_v57, %v9976_v57  ;;  %v9993_v60 = vpop.f32.mrb[95].mxu0  ;;  %v5952_v53 = vmul.f32 %v9990_v54, %v9990_v54 }
 0x477   :  { %v5950_v9 = vmul.f32 %v9993_v60, %v9993_v60  ;;  %v5964_v29 = vadd.f32 %v5963_v19, %v5949_v37  ;;  %v5928_v0 = vadd.f32 %v5927_v2, %v9993_v60 }
 0x478   :  { %v5627_v55 = vadd.f32 %v5626_v28, %v9960_v46  ;;  %v5663_v25 = vadd.f32 %v5662_v47, %v5648_v42 }
 0x479   :  { %v5929_v33 = vadd.f32 %v9978_v23, %v5928_v0  ;;  %v5965_v50 = vadd.f32 %v5964_v29, %v5950_v9 }
 0x47a   :  { %v5664_v26 = vadd.f32 %v5663_v25, %v5649_v27  ;;  %v5628_v38 = vadd.f32 %v5627_v55, %v9970_v15 }
 0x47b   :  { %v5930_v31 = vadd.f32 %v9990_v54, %v5929_v33  ;;  %v5966_v59 = vadd.f32 %v5965_v50, %v5951_v8 }
 0x47c   :  { %v7393_v40 = vpop.f32.mrb[72].mxu1  ;;  %v5665_v3 = vadd.f32 %v5664_v26, %v5650_v1 }
 0x47d   :  { %v10008_v13 = vadd.f32 %v7393_v40, %v9866_v17  ;;  %v5589_v61 = vpop.f32.mrb[73].mxu1  ;;  %v5931_v43 = vrot.slane %v5930_v31, 4  ;;  %v5967_v44 = vadd.f32 %v5966_v59, %v5952_v53 }
 0x47e   :  { %v10014_v56 = vadd.f32 %v5589_v61, %v9860_v20  ;;  %v7394_v5 = vpop.f32.mrb[74].mxu1 }
 0x47f   :  { %v10017_v30 = vadd.f32 %v7394_v5, %v9868_v52  ;;  %v5592_v6 = vpop.f32.mrb[75].mxu1  ;;  %v5932_v28 = vadd.f32 %v5931_v43, %v5930_v31  ;;  %v5968_v42 = vrot.slane %v5967_v44, 4  ;;  %v5653_v27 = vmul.f32 %v10008_v13, %v10008_v13 }
 0x480   :  { %v5629_v17 = vadd.f32 %v5628_v38, %v10014_v56  ;;  %v5651_v10 = vmul.f32 %v10014_v56, %v10014_v56  ;;  %v10023_v47 = vadd.f32 %v5592_v6, %v9862_v48 }
 0x481   :  { %v5933_v2 = vrot.slane %v5932_v28, 2  ;;  %v5969_v19 = vadd.f32 %v5968_v42, %v5967_v44  ;;  %v5654_v48 = vmul.f32 %v10017_v30, %v10017_v30 }
 0x482   :  { %v5666_v37 = vadd.f32 %v5665_v3, %v5651_v10  ;;  %v5630_v20 = vadd.f32 %v5629_v17, %v10023_v47  ;;  %v5652_v52 = vmul.f32 %v10023_v47, %v10023_v47 }
 0x483   :  { %v5934_v9 = vadd.f32 %v5933_v2, %v5932_v28  ;;  %v5970_v29 = vrot.slane %v5969_v19, 2 }
 0x484   :  { %v5631_v55 = vadd.f32 %v5630_v20, %v10008_v13  ;;  %v5667_v25 = vadd.f32 %v5666_v37, %v5652_v52 }
 0x485   :  { %v5935_v38 = vrot.slane %v5934_v9, 1  ;;  %v5971_v8 = vadd.f32 %v5970_v29, %v5969_v19 }
 0x486   :  { %v5668_v0 = vadd.f32 %v5667_v25, %v5653_v27  ;;  %v5632_v1 = vadd.f32 %v5631_v55, %v10017_v30 }
 0x487   :  { %v7397_v26 = vpop.f32.mrb[76].mxu1  ;;  %v5936_v53 = vadd.f32 %v5935_v38, %v5934_v9  ;;  %v5972_v31 = vrot.slane %v5971_v8, 1 }
 0x488   :  { %v10035_v33 = vadd.f32 %v7397_v26, %v9902_v11  ;;  %v5605_v50 = vpop.f32.mrb[77].mxu1  ;;  %v5669_v40 = vadd.f32 %v5668_v0, %v5654_v48 }
 0x489   :  { %v10038_v3 = vadd.f32 %v5605_v50, %v9872_v16  ;;  %v7398_v61 = vpop.f32.mrb[78].mxu1  ;;  %v5973_v44 = vadd.f32 %v5972_v31, %v5971_v8  ;;  %v5974_v11 = vmul.f32 0.0078125, %v5936_v53  ;;  %v5914_v8 = vld [vmem:[%s10127_s8] sm:$0x1] }
 0x48a   :  { %v10041_v59 = vadd.f32 %v7398_v61, %v9911_v32  ;;  %v5608_v5 = vpop.f32.mrb[79].mxu1  ;;  %v5657_v20 = vmul.f32 %v10035_v33, %v10035_v33 }
 0x48b   :  { %v5633_v6 = vadd.f32 %v5632_v1, %v10038_v3  ;;  %v5655_v43 = vmul.f32 %v10038_v3, %v10038_v3  ;;  %v10047_v17 = vadd.f32 %v5608_v5, %v9874_v41  ;;  %v5975_v16 = vmul.f32 0.0078125, %v5973_v44  ;;  %v10137_v44 = vld [vmem:[#allocation6_spill] sm:$0xff] }
 0x48c   :  { %v5976_v28 = vmul.f32 %v5974_v11, %v5974_v11  ;;  %v5658_v41 = vmul.f32 %v10041_v59, %v10041_v59 }
 0x48d   :  { %v5670_v10 = vadd.f32 %v5669_v40, %v5655_v43  ;;  %v5634_v42 = vadd.f32 %v5633_v6, %v10047_v17  ;;  %v5656_v32 = vmul.f32 %v10047_v17, %v10047_v17  ;;  %v5915_v6 = vld [vmem:[%s10128_s9] sm:$0x1] }
 0x48e   :  { %v5977_v37 = vsub.f32 %v5975_v16, %v5976_v28 }
 0x48f   :  { %v5635_v52 = vadd.f32 %v5634_v42, %v10035_v33  ;;  %v5671_v2 = vadd.f32 %v5670_v10, %v5656_v32 }
 0x490   :  { %v5978_v19 = vadd.f32 1e-05, %v5977_v37 }
 0x491   :  { %v5636_v27 = vadd.f32 %v5635_v52, %v10041_v59  ;;  %v5672_v55 = vadd.f32 %v5671_v2, %v5657_v20 }
 0x492   :  { %7737 = vrsqrt.f32 %v5978_v19 }
 0x493   :  { %v5637_v25 = vrot.slane %v5636_v27, 4  ;;  %v5673_v9 = vadd.f32 %v5672_v55, %v5658_v41 }
 0x495   :  { %v5638_v29 = vadd.f32 %v5637_v25, %v5636_v27  ;;  %v5674_v48 = vrot.slane %v5673_v9, 4 }
 0x497   :  { %v5639_v0 = vrot.slane %v5638_v29, 2  ;;  %v5675_v1 = vadd.f32 %v5674_v48, %v5673_v9 }
 0x499   :  { %v5640_v26 = vadd.f32 %v5639_v0, %v5638_v29  ;;  %v5676_v38 = vrot.slane %v5675_v1, 2 }
 0x49b   :  { %v5641_v50 = vrot.slane %v5640_v26, 1  ;;  %v5677_v40 = vadd.f32 %v5676_v38, %v5675_v1 }
 0x49c   :  { %v7738_v61 = vpop.eup %7737 }
 0x49d   :  { %v5980_v53 = vmul.f32 %v7738_v61, %v5914_v8  ;;  %v5642_v31 = vadd.f32 %v5641_v50, %v5640_v26  ;;  %v5678_v5 = vrot.slane %v5677_v40, 1 }
 0x49f   :  { %v5981_v43 = vmul.f32 %v5980_v53, %v5974_v11  ;;  %v5987_v10 = vrot.slane %v5980_v53, %v10137_v44  ;;  %v5679_v16 = vadd.f32 %v5678_v5, %v5677_v40  ;;  %v5680_v28 = vmul.f32 0.0078125, %v5642_v31  ;;  %v5621_v5 = vld [vmem:[%s10125_s6] sm:$0x1] }
 0x4a1   :  { %v5982_v42 = vsub.f32 %v5915_v6, %v5981_v43  ;;  %v6002_v32 = vmul.f32 %v5987_v10, %v9993_v60  ;;  %v5681_v37 = vmul.f32 0.0078125, %v5679_v16  ;;  %v5682_v20 = vmul.f32 %v5680_v28, %v5680_v28 }
 0x4a2   :  { %v6001_v52 = vmul.f32 %v5987_v10, %v9982_v7  ;;  %v5989_v2 = vmul.f32 %v5987_v10, %v9878_v49  ;;  %v5990_v19 = vmul.f32 %v5987_v10, %v9884_v14  ;;  %v5991_v41 = vmul.f32 %v9876_v18, %v5987_v10 }
 0x4a3   :  { %v6009_v27 = vrot.slane %v5982_v42, %v10137_v44  ;;  %v5683_v11 = vsub.f32 %v5681_v37, %v5682_v20  ;;  %v5992_v55 = vmul.f32 %v9882_v51, %v5987_v10  ;;  %v5993_v25 = vmul.f32 %v5987_v10, %v9900_v12 }
 0x4a4   :  { %v5994_v9 = vmul.f32 %v5987_v10, %v9909_v63  ;;  %v5995_v60 = vmul.f32 %v9896_v24, %v5987_v10  ;;  %v5996_v29 = vmul.f32 %v9907_v62, %v5987_v10  ;;  %v5997_v7 = vmul.f32 %v5987_v10, %v9942_v45 }
 0x4a5   :  { %v6024_v49 = vadd.f32 %v6009_v27, %v6002_v32  ;;  %v5684_v48 = vadd.f32 1e-05, %v5683_v11  ;;  %v6023_v14 = vadd.f32 %v6009_v27, %v6001_v52  ;;  %v5998_v18 = vmul.f32 %v5987_v10, %v9952_v22 }
 0x4a6   :  { %v5999_v0 = vmul.f32 %v9933_v36, %v5987_v10  ;;  %v6000_v1 = vmul.f32 %v9947_v4, %v5987_v10  ;;  %v6003_v51 = vmul.f32 %v9978_v23, %v5987_v10  ;;  %v6004_v12 = vmul.f32 %v9990_v54, %v5987_v10  ;;  %v5620_v4 = vld [vmem:[%s10124_s5] sm:$0x1]  ;;  %s7808_s5 = smov [#allocation3]  }
 0x4a7   :  { %7739 = vrsqrt.f32 %v5684_v48  ;;  %v6011_v63 = vadd.f32 %v6009_v27, %v5989_v2  ;;  %v6012_v24 = vadd.f32 %v6009_v27, %v5990_v19  ;;  %v6013_v26 = vadd.f32 %v6009_v27, %v5991_v41  ;;  %s6144_s6 = sshll.u32 %s7808_s5, 4  ;;  %s6145_s6 = int_to_ptr.vmem [resolvable:$true] %s6144_s6 }
 0x4a8   :  { %v6014_v62 = vadd.f32 %v6009_v27, %v5992_v55  ;;  %v6015_v38 = vadd.f32 %v6009_v27, %v5993_v25  ;;  %v6016_v45 = vadd.f32 %v6009_v27, %v5994_v9  ;;  %v6017_v8 = vadd.f32 %v6009_v27, %v5995_v60  ;;  %s7775_s21 = scalar_lea.vmem %s6145_s6, 1024  ;;  %p7780_p1 = scmp.lt.s32.totalorder %s6145_s6, %s6145_s6 }
 0x4a9   :  { %v6018_v50 = vadd.f32 %v6009_v27, %v5996_v29  ;;  %v6019_v40 = vadd.f32 %v6009_v27, %v5997_v7  ;;  %v6020_v61 = vadd.f32 %v6009_v27, %v5998_v18  ;;  %v6021_v22 = vadd.f32 %v6009_v27, %v5999_v0  ;;  %p7776_p0 = scmp.ne.s32.totalorder %s6145_s6, %s7775_s21  ;;  %p7781_p2 = scmp.lt.s32.totalorder %s7775_s21, %s7775_s21 }
 0x4aa   :  { %v6022_v53 = vadd.f32 %v6009_v27, %v6000_v1  ;;  %v6025_v36 = vadd.f32 %v6009_v27, %v6003_v51  ;;  %v6026_v31 = vadd.f32 %v6009_v27, %v6004_v12 }
 0x4ab   :  { %p7782_p3 = por %p7781_p2, %p7780_p1 }
 0x4ad   :  { %p7783_p4 = pnand %p7782_p3, %p7776_p0 }
 0x4b1   :  { %v7740_v23 = vpop.eup %7739 }
 0x4b2   :  { %v5686_v54 = vmul.f32 %v7740_v23, %v5620_v4 }
 0x4b4   :  { %v5687_v6 = vmul.f32 %v5686_v54, %v5680_v28  ;;  %v5693_v43 = vrot.slane %v5686_v54, %v10137_v44 }
 0x4b6   :  { %v5688_v10 = vsub.f32 %v5621_v5, %v5687_v6  ;;  %v5707_v16 = vmul.f32 %v5693_v43, %v10038_v3  ;;  %v5708_v42 = vmul.f32 %v5693_v43, %v10047_v17  ;;  %v5695_v32 = vmul.f32 %v5693_v43, %v9920_v39 }
 0x4b7   :  { %v5696_v37 = vmul.f32 %v5693_v43, %v9929_v21  ;;  %v5697_v20 = vmul.f32 %v5693_v43, %v9914_v34  ;;  %v5698_v52 = vmul.f32 %v5693_v43, %v9923_v35  ;;  %v5699_v2 = vmul.f32 %v5693_v43, %v9964_v58 }
 0x4b8   :  { %v5715_v19 = vrot.slane %v5688_v10, %v10137_v44  ;;  %v5700_v28 = vmul.f32 %v5693_v43, %v9976_v57  ;;  %v5701_v41 = vmul.f32 %v5693_v43, %v9960_v46  ;;  %v5702_v3 = vmul.f32 %v5693_v43, %v9970_v15 }
 0x4b9   :  { %v5703_v17 = vmul.f32 %v5693_v43, %v10014_v56  ;;  %v5704_v39 = vmul.f32 %v5693_v43, %v10023_v47  ;;  %v5705_v21 = vmul.f32 %v5693_v43, %v10008_v13  ;;  %v5706_v34 = vmul.f32 %v5693_v43, %v10017_v30 }
 0x4ba   :  { %v5729_v27 = vadd.f32 %v5715_v19, %v5707_v16  ;;  %v5730_v35 = vadd.f32 %v5715_v19, %v5708_v42  ;;  %v5709_v58 = vmul.f32 %v5693_v43, %v10035_v33  ;;  %v5710_v44 = vmul.f32 %v5693_v43, %v10041_v59 }
 0x4bb   :  { %v5717_v11 = vadd.f32 %v5715_v19, %v5695_v32  ;;  %v5718_v57 = vadd.f32 %v5715_v19, %v5696_v37  ;;  %v5719_v55 = vadd.f32 %v5715_v19, %v5697_v20  ;;  %v5720_v46 = vadd.f32 %v5715_v19, %v5698_v52 }
 0x4bc   :  { %v6039_v25 = vadd.f32 %v6023_v14, %v5729_v27  ;;  %v6040_v15 = vadd.f32 %v6024_v49, %v5730_v35  ;;  %v5721_v9 = vadd.f32 %v5715_v19, %v5699_v2  ;;  %v5722_v56 = vadd.f32 %v5715_v19, %v5700_v28 }
 0x4bd   :  { %v5723_v60 = vadd.f32 %v5715_v19, %v5701_v41  ;;  %v5724_v47 = vadd.f32 %v5715_v19, %v5702_v3  ;;  %v5725_v29 = vadd.f32 %v5715_v19, %v5703_v17  ;;  %v5726_v13 = vadd.f32 %v5715_v19, %v5704_v39 }
 0x4be   :  { %v6055_v7 = vmax.f32 %v6039_v25, 0.0  ;;  %v6056_v30 = vmax.f32 %v6040_v15, 0.0  ;;  %v5727_v48 = vadd.f32 %v5715_v19, %v5705_v21  ;;  %v5728_v18 = vadd.f32 %v5715_v19, %v5706_v34 }
 0x4bf   :  { %v5731_v0 = vadd.f32 %v5715_v19, %v5709_v58  ;;  %v5732_v33 = vadd.f32 %v5715_v19, %v5710_v44  ;;  %v6027_v1 = vadd.f32 %v6011_v63, %v5717_v11  ;;  %v6028_v59 = vadd.f32 %v6012_v24, %v5718_v57 }
 0x4c0   :  { %v7039_v51 = vpack.c.bf16 %v6056_v30, %v6055_v7  ;;  %v6029_v12 = vadd.f32 %v6013_v26, %v5719_v55  ;;  %v6030_v4 = vadd.f32 %v6014_v62, %v5720_v46  ;;  %v6031_v23 = vadd.f32 %v6015_v38, %v5721_v9 }
 0x4c1   :  { %v6032_v14 = vadd.f32 %v6016_v45, %v5722_v56  ;;  %v6033_v49 = vadd.f32 %v6017_v8, %v5723_v60  ;;  %v6034_v54 = vadd.f32 %v6018_v50, %v5724_v47  ;;  %v6035_v5 = vadd.f32 %v6019_v40, %v5725_v29 }
 0x4c2   :  { %7051 = vst [vmem:[#allocation3 + $0x30] sm:$0xff] %v7039_v51   ;;  %v6036_v6 = vadd.f32 %v6020_v61, %v5726_v13  ;;  %v6037_v43 = vadd.f32 %v6021_v22, %v5727_v48  ;;  %v6038_v10 = vadd.f32 %v6022_v53, %v5728_v18  ;;  %v6041_v16 = vadd.f32 %v6025_v36, %v5731_v0 }
 0x4c3   :  { %v6042_v42 = vadd.f32 %v6026_v31, %v5732_v33  ;;  %v6043_v32 = vmax.f32 %v6027_v1, 0.0  ;;  %v6044_v37 = vmax.f32 %v6028_v59, 0.0  ;;  %v6045_v20 = vmax.f32 %v6029_v12, 0.0 }
 0x4c4   :  { %v6046_v52 = vmax.f32 %v6030_v4, 0.0  ;;  %v6047_v63 = vmax.f32 %v6031_v23, 0.0  ;;  %v6048_v24 = vmax.f32 %v6032_v14, 0.0  ;;  %v6049_v2 = vmax.f32 %v6033_v49, 0.0 }
 0x4c5   :  { %v6050_v26 = vmax.f32 %v6034_v54, 0.0  ;;  %v6051_v62 = vmax.f32 %v6035_v5, 0.0  ;;  %v6052_v38 = vmax.f32 %v6036_v6, 0.0  ;;  %v6053_v45 = vmax.f32 %v6037_v43, 0.0 }
 0x4c6   :  { %v6054_v8 = vmax.f32 %v6038_v10, 0.0  ;;  %v6057_v50 = vmax.f32 %v6041_v16, 0.0  ;;  %v6058_v40 = vmax.f32 %v6042_v42, 0.0  ;;  %v7009_v61 = vpack.c.bf16 %v6044_v37, %v6043_v32 }
 0x4c7   :  { %v7014_v22 = vpack.c.bf16 %v6046_v52, %v6045_v20  ;;  %v7019_v53 = vpack.c.bf16 %v6048_v24, %v6047_v63  ;;  %v7024_v36 = vpack.c.bf16 %v6050_v26, %v6049_v2  ;;  %v7029_v31 = vpack.c.bf16 %v6052_v38, %v6051_v62 }
 0x4c8   :  { %7010 = vst [vmem:[#allocation3] sm:$0xff] %v7009_v61   ;;  %v7034_v19 = vpack.c.bf16 %v6054_v8, %v6053_v45  ;;  %v7044_v28 = vpack.c.bf16 %v6058_v40, %v6057_v50 }
 0x4c9   :  { %7046 = vst [vmem:[#allocation3 + $0x8] sm:$0xff] %v7014_v22   ;;  %7047 = vst [vmem:[#allocation3 + $0x10] sm:$0xff] %v7019_v53  }
 0x4ca   :  { %7048 = vst [vmem:[#allocation3 + $0x18] sm:$0xff] %v7024_v36   ;;  %7049 = vst [vmem:[#allocation3 + $0x20] sm:$0xff] %v7029_v31  }
 0x4cb   :  { %7050 = vst [vmem:[#allocation3 + $0x28] sm:$0xff] %v7034_v19   ;;  %7052 = vst [vmem:[#allocation3 + $0x38] sm:$0xff] %v7044_v28  }
 0x4cc   :  { %7786 = shalt.err (!%p7783_p4)
}
 0x4cd   :  { %s7787_s4 = scalar_lea.hbm %s10129_s10, 1024 }
 0x4ce   :  { %p7788_p5 = scmp.ne.s32.totalorder %s10129_s10, %s7787_s4  ;;  %p7791_p6 = scmp.lt.u32.totalorder %s7787_s4, %s10129_s10 }
 0x4d0   :  { %p7793_p7 = pnand %p7791_p6, %p7788_p5 }
 0x4d2   :  { %7796 = shalt.err (!%p7793_p7)
}
 0x4d3   :  { %s7809_s30 = smov 64  }
 0x4d4   :  { %6150 = dma.vmem_to_hbm [thread:$0]  %s6145_s6, 1024, %s10129_s10, [#allocation4], %s7809_s30, %s7809_s30, %s7799_s17  }
 0x4d5   :  { %7797 = dma.done.wait [#allocation4], 1024  }
 0x4d6   :  { %7798 = vsyncadd [#allocation4], 4294966272 }
 0x4d7   :  { %6154 = vsyncpa [#allocation4], 1 }

</bundles_post_ra>
